<compile_context>
chip_gen: v5e
topology: v5e:2x2
jax: 0.10.0
libtpu: 0.0.40
codegen_flags: <defaults>
</compile_context>

<pallas_src>
import math
from functools import partial

import jax
import jax.numpy as jnp
import numpy as np
from jax import lax
from jax.experimental import pallas as pl
from jax.experimental.pallas import tpu as pltpu


# --------------------------- tiled linear kernel ----------------------------

def _linear_kernel(x_ref, w_ref, o_ref, acc_ref):
    @pl.when(pl.program_id(2) == 0)
    def _():
        acc_ref[...] = jnp.zeros_like(acc_ref)

    acc_ref[...] += jnp.dot(x_ref[...], w_ref[...],
                            preferred_element_type=jnp.float32)

    @pl.when(pl.program_id(2) == pl.num_programs(2) - 1)
    def _():
        o_ref[...] = acc_ref[...].astype(o_ref.dtype)


def pallas_linear(x, w_t, *, out_dtype, tm=512, tn=1024, tk=512):
    """y = x @ w_t.  x: (M, K) bf16, w_t: (K, N) bf16 (weight pre-transposed)."""
    M, K = x.shape
    K2, N = w_t.shape
    assert K2 == K
    tm, tn, tk = min(tm, M), min(tn, N), min(tk, K)
    assert M % tm == 0 and N % tn == 0 and K % tk == 0
    return pl.pallas_call(
        _linear_kernel,
        out_shape=jax.ShapeDtypeStruct((M, N), out_dtype),
        grid_spec=pltpu.PrefetchScalarGridSpec(
            num_scalar_prefetch=0,
            grid=(M // tm, N // tn, K // tk),
            in_specs=[pl.BlockSpec((tm, tk), lambda i, j, k: (i, k)),
                      pl.BlockSpec((tk, tn), lambda i, j, k: (k, j))],
            out_specs=pl.BlockSpec((tm, tn), lambda i, j, k: (i, j)),
            scratch_shapes=[pltpu.VMEM((tm, tn), jnp.float32)]),
        compiler_params=pltpu.CompilerParams(
            dimension_semantics=("parallel", "parallel", "arbitrary")),
    )(x, w_t)


# ------------------------------- RoPE kernel --------------------------------

def _rope_kernel(x_ref, cos_ref, sin_ref, o_ref, *, half):
    x = x_ref[...].astype(jnp.float32)        # (ts, D)
    # rotate_half(x) == roll(x, D/2) with the first half negated (XLU roll).
    rot = pltpu.roll(x, shift=half, axis=1)
    lane = lax.broadcasted_iota(jnp.int32, x.shape, 1)
    rot = jnp.where(lane < half, -rot, rot)
    o_ref[...] = (x * cos_ref[...] + rot * sin_ref[...]).astype(o_ref.dtype)


def pallas_rope(qkv4, cos, sin, *, n_rot_heads, ts=256):
    """Apply RoPE to the first `n_rot_heads` heads of qkv4 (Q and K heads).

    qkv4: (B, S, Htot, D) bf16 in token-major layout (no transposes);
    cos/sin: (B, S, D) f32.  Heads are the INNERMOST grid axis so the f32
    cos/sin tile is not re-fetched between consecutive head steps.
    Returns (B, S, n_rot_heads, D) bf16.  V heads are never touched.
    """
    B, S, Htot, D = qkv4.shape
    ts = min(ts, S)
    assert S % ts == 0 and D % 2 == 0 and n_rot_heads <= Htot
    kernel = partial(_rope_kernel, half=D // 2)
    return pl.pallas_call(
        kernel,
        grid=(B, S // ts, n_rot_heads),
        out_shape=jax.ShapeDtypeStruct((B, S, n_rot_heads, D), jnp.bfloat16),
        in_specs=[pl.BlockSpec((None, ts, None, D), lambda b, si, h: (b, si, h, 0)),
                  pl.BlockSpec((None, ts, D), lambda b, si, h: (b, si, 0)),
                  pl.BlockSpec((None, ts, D), lambda b, si, h: (b, si, 0))],
        out_specs=pl.BlockSpec((None, ts, None, D), lambda b, si, h: (b, si, h, 0)),
        compiler_params=pltpu.CompilerParams(
            dimension_semantics=("parallel", "parallel", "parallel")),
    )(qkv4, cos, sin)


# ------------------------- flash attention (causal) --------------------------

def _flash_kernel(q_ref, k_ref, v_ref, o_ref, m_sc, l_sc, acc_sc, *, tq, tk):
    qi = pl.program_id(2)
    ki = pl.program_id(3)

    @pl.when(ki == 0)
    def _():
        m_sc[...] = jnp.full_like(m_sc, -jnp.inf)
        l_sc[...] = jnp.zeros_like(l_sc)
        acc_sc[...] = jnp.zeros_like(acc_sc)

    # Skip KV tiles that lie entirely above the causal diagonal.
    @pl.when(ki * tk <= qi * tq + (tq - 1))
    def _():
        # q is pre-scaled by 1/sqrt(D) (folded into the QKV weights).
        s = lax.dot_general(q_ref[...], k_ref[...],
                            (((1,), (1,)), ((), ())),
                            preferred_element_type=jnp.float32)      # (tq, tk)
        # In-kernel causal mask from global indices (no mask DMA).
        row = qi * tq + lax.broadcasted_iota(jnp.int32, (tq, tk), 0)
        col = ki * tk + lax.broadcasted_iota(jnp.int32, (tq, tk), 1)
        s = jnp.where(col <= row, s, -1e9)

        m_prev = m_sc[...]
        m_new = jnp.maximum(m_prev, jnp.max(s, axis=-1, keepdims=True))
        alpha = jnp.exp(m_prev - m_new)
        p = jnp.exp(s - m_new)
        l_sc[...] = alpha * l_sc[...] + jnp.sum(p, axis=-1, keepdims=True)
        acc_sc[...] = alpha * acc_sc[...] + jnp.dot(
            p.astype(v_ref.dtype), v_ref[...], preferred_element_type=jnp.float32)
        m_sc[...] = m_new

    @pl.when(ki == pl.num_programs(3) - 1)
    def _():
        o_ref[...] = (acc_sc[...] *
                      pl.reciprocal(l_sc[...], approx=True)).astype(o_ref.dtype)


def pallas_flash_attention(qk_roped, qkv4, *, Hq, Hkv, n_rep, tq=256, tk=512):
    """Causal GQA flash attention, all operands in token-major layout.

    qk_roped: (B, S, Hq+Hkv, D) bf16 -- RoPE'd Q heads [0,Hq) and K heads
              [Hq, Hq+Hkv); Q already carries the 1/sqrt(D) scale.
    qkv4:     (B, S, Hq+2*Hkv, D) bf16 fused projection output; V heads live
              at [Hq+Hkv, Hq+2*Hkv) and are read directly (never copied).
    Returns (B, S, Hq, D) bf16 -- already in the layout the o-projection wants.
    """
    B, S, _, D = qk_roped.shape
    tq, tk = min(tq, S), min(tk, S)
    assert S % tq == 0 and S % tk == 0
    kernel = partial(_flash_kernel, tq=tq, tk=tk)
    return pl.pallas_call(
        kernel,
        out_shape=jax.ShapeDtypeStruct((B, S, Hq, D), jnp.bfloat16),
        grid_spec=pltpu.PrefetchScalarGridSpec(
            num_scalar_prefetch=0,
            grid=(B, Hq, S // tq, S // tk),
            in_specs=[
                pl.BlockSpec((None, tq, None, D),
                             lambda b, h, qi, ki: (b, qi, h, 0)),
                pl.BlockSpec((None, tk, None, D),
                             lambda b, h, qi, ki: (b, ki, Hq + h // n_rep, 0)),
                pl.BlockSpec((None, tk, None, D),
                             lambda b, h, qi, ki: (b, ki, Hq + Hkv + h // n_rep, 0)),
            ],
            out_specs=pl.BlockSpec((None, tq, None, D),
                                   lambda b, h, qi, ki: (b, qi, h, 0)),
            scratch_shapes=[pltpu.VMEM((tq, 1), jnp.float32),
                            pltpu.VMEM((tq, 1), jnp.float32),
                            pltpu.VMEM((tq, D), jnp.float32)]),
        compiler_params=pltpu.CompilerParams(
            dimension_semantics=("parallel", "parallel", "parallel", "arbitrary")),
    )(qk_roped, qk_roped, qkv4)


# ---------------- optional attention weights (debug / HF compat) ------------

def _attn_weights_kernel(q_ref, k_ref, w_ref, *, tq):
    qi = pl.program_id(2)
    s = lax.dot_general(q_ref[...], k_ref[...],
                        (((1,), (1,)), ((), ())),
                        preferred_element_type=jnp.float32)          # (tq, S)
    row = qi * tq + lax.broadcasted_iota(jnp.int32, s.shape, 0)
    col = lax.broadcasted_iota(jnp.int32, s.shape, 1)
    s = jnp.where(col <= row, s, -1e9)
    m = jnp.max(s, axis=-1, keepdims=True)
    p = jnp.exp(s - m)
    w_ref[...] = (p / jnp.sum(p, axis=-1, keepdims=True)).astype(w_ref.dtype)


def pallas_attn_weights(qk_roped, *, Hq, Hkv, n_rep, tq=256):
    """Debug-only dense causal attention weights, emitted in f32."""
    # TODO(synk): K is fully VMEM-resident per (b, h, qi); tile K for long S.
    B, S, _, D = qk_roped.shape
    tq = min(tq, S)
    assert S % tq == 0
    kernel = partial(_attn_weights_kernel, tq=tq)
    return pl.pallas_call(
        kernel,
        grid=(B, Hq, S // tq),
        out_shape=jax.ShapeDtypeStruct((B, Hq, S, S), jnp.float32),
        in_specs=[
            pl.BlockSpec((None, tq, None, D), lambda b, h, qi: (b, qi, h, 0)),
            pl.BlockSpec((None, S, None, D),
                         lambda b, h, qi: (b, 0, Hq + h // n_rep, 0)),
        ],
        out_specs=pl.BlockSpec((None, None, tq, S), lambda b, h, qi: (b, h, qi, 0)),
        compiler_params=pltpu.CompilerParams(
            dimension_semantics=("parallel", "parallel", "parallel")),
    )(qk_roped, qk_roped)


# ------------------------------ module wrapper -------------------------------

class GemmaAttentionPallas:
    def __init__(self, *, hidden_size, num_heads, num_kv_heads, head_dim,
                 rope_theta=10000.0, key=None):
        assert hidden_size % num_heads == 0
        self.hidden_size = hidden_size
        self.num_heads = num_heads
        self.num_kv_heads = num_kv_heads
        self.head_dim = head_dim
        self.rope_theta = rope_theta

        k1, k2, k3, k4 = jax.random.split(key, 4)
        s = 0.02
        # nn.Linear layout: (out_features, in_features), bias=False. Stored bf16.
        wq = (jax.random.normal(k1, (num_heads * head_dim, hidden_size)) * s).astype(jnp.bfloat16)
        wk = (jax.random.normal(k2, (num_kv_heads * head_dim, hidden_size)) * s).astype(jnp.bfloat16)
        wv = (jax.random.normal(k3, (num_kv_heads * head_dim, hidden_size)) * s).astype(jnp.bfloat16)
        wo = (jax.random.normal(k4, (hidden_size, num_heads * head_dim)) * s).astype(jnp.bfloat16)
        self.wq, self.wk, self.wv, self.wo = wq, wk, wv, wo
        # Fused QKV weight, pre-transposed once; 1/sqrt(D) folded into the Q
        # rows (scale commutes with the linear RoPE), so no score scaling and
        # no RoPE scale multiply are needed downstream.
        q_scale = 1.0 / math.sqrt(head_dim)
        wq_scaled = (wq.astype(jnp.float32) * q_scale).astype(jnp.bfloat16)
        self.w_qkv_t = jnp.concatenate([wq_scaled, wk, wv], axis=0).T  # (H, Htot*D)
        self.wo_t = wo.T                                               # (Hq*D, H)

    def rotary(self, position_ids):
        # position_ids: (B, S) -> cos, sin: (B, S, head_dim), f32.
        inv_freq = 1.0 / (self.rope_theta ** (
            jnp.arange(0, self.head_dim, 2, dtype=jnp.float32) / self.head_dim))
        freqs = position_ids[:, :, None].astype(jnp.float32) * inv_freq[None, None, :]
        emb = jnp.concatenate([freqs, freqs], axis=-1)
        return jnp.cos(emb), jnp.sin(emb)

    def __call__(self, hidden_states, attention_mask=None, position_ids=None,
                 output_attentions=False):
        # attention_mask is accepted for API parity but ignored: the causal
        # mask is generated inside the flash kernel (is_causal=True path).
        del attention_mask
        B, S, H = hidden_states.shape
        D = self.head_dim
        Hq, Hkv = self.num_heads, self.num_kv_heads
        Htot = Hq + 2 * Hkv
        n_rep = Hq // Hkv

        # Fused QKV projection (one pass over the activations); output stays
        # token-major: (B*S, Htot*D) -> free view (B, S, Htot, D).
        x2d = hidden_states.reshape(B * S, H).astype(jnp.bfloat16)
        qkv = pallas_linear(x2d, self.w_qkv_t, out_dtype=jnp.bfloat16)
        qkv4 = qkv.reshape(B, S, Htot, D)

        cos, sin = self.rotary(position_ids)
        # RoPE over Q+K heads only (V is read directly from qkv4 by flash).
        qk_roped = pallas_rope(qkv4, cos, sin, n_rot_heads=Hq + Hkv)

        # Causal GQA flash attention; output already (B, S, Hq, D).
        attn_out = pallas_flash_attention(qk_roped, qkv4,
                                          Hq=Hq, Hkv=Hkv, n_rep=n_rep)

        out2d = attn_out.reshape(B * S, Hq * D)          # free view
        out = pallas_linear(out2d, self.wo_t, out_dtype=jnp.bfloat16).reshape(B, S, H)

        attn_weights = None
        if output_attentions:
            attn_weights = pallas_attn_weights(qk_roped, Hq=Hq, Hkv=Hkv, n_rep=n_rep)
        return out, attn_weights


# --------------------------- pure-JAX reference ------------------------------

def reference_forward(mod: GemmaAttentionPallas, x, position_ids):
    f32, bf16 = jnp.float32, jnp.bfloat16
    B, S, H = x.shape
    D = mod.head_dim
    xb = x.reshape(B * S, H).astype(bf16).astype(f32)

    def proj(w):
        return (xb @ w.astype(f32).T).astype(bf16).astype(f32)

    q = proj(mod.wq).reshape(B, S, mod.num_heads, D).transpose(0, 2, 1, 3)
    k = proj(mod.wk).reshape(B, S, mod.num_kv_heads, D).transpose(0, 2, 1, 3)
    v = proj(mod.wv).reshape(B, S, mod.num_kv_heads, D).transpose(0, 2, 1, 3)

    cos, sin = mod.rotary(position_ids)
    cos_, sin_ = cos[:, None], sin[:, None]

    def rot_half(t):
        t1, t2 = t[..., :D // 2], t[..., D // 2:]
        return jnp.concatenate([-t2, t1], axis=-1)

    scale = 1.0 / math.sqrt(D)
    qr = ((q * cos_ + rot_half(q) * sin_) * scale).astype(bf16).astype(f32)
    kr = (k * cos_ + rot_half(k) * sin_).astype(bf16).astype(f32)

    n_rep = mod.num_heads // mod.num_kv_heads
    kr = jnp.repeat(kr, n_rep, axis=1)
    vr = jnp.repeat(v, n_rep, axis=1)

    causal = jnp.tril(jnp.ones((S, S), dtype=bool))
    mask = jnp.where(causal, 0.0, -1e9).astype(f32)[None, None]

    scores = jnp.einsum("bhqd,bhkd->bhqk", qr, kr) + mask
    w = jax.nn.softmax(scores, axis=-1)
    o = jnp.einsum("bhqk,bhkd->bhqd", w.astype(bf16).astype(f32), vr)
    o = o.astype(bf16).astype(f32)
    o = o.transpose(0, 2, 1, 3).reshape(B * S, mod.num_heads * D) @ mod.wo.astype(f32).T
    return o.reshape(B, S, H), w


# ----------------------------------- main ------------------------------------

if __name__ == "__main__":
    # Small but TPU-friendly Gemma-like config (lane-dense head_dim, tiled S).
    B, S, H = 2, 256, 256
    NUM_HEADS, NUM_KV_HEADS, HEAD_DIM = 4, 2, 128

    key = jax.random.PRNGKey(0)
    k_params, k_x = jax.random.split(key)

    mod = GemmaAttentionPallas(hidden_size=H, num_heads=NUM_HEADS,
                               num_kv_heads=NUM_KV_HEADS, head_dim=HEAD_DIM,
                               rope_theta=10000.0, key=k_params)

    x = jax.random.normal(k_x, (B, S, H), dtype=jnp.float32)
    position_ids = jnp.broadcast_to(jnp.arange(S, dtype=jnp.int32)[None, :], (B, S))

    out, attn_weights = mod(x, attention_mask=None, position_ids=position_ids,
                            output_attentions=True)
    out = jax.block_until_ready(out)
    attn_weights = jax.block_until_ready(attn_weights)

    ref_out, ref_w = reference_forward(mod, x, position_ids)
    np.testing.assert_allclose(np.asarray(out.astype(jnp.float32)),
                               np.asarray(ref_out), rtol=2e-2, atol=2e-2)
    np.testing.assert_allclose(np.asarray(attn_weights),
                               np.asarray(ref_w), rtol=2e-2, atol=5e-3)

    assert out.shape == (B, S, H)
    assert attn_weights.shape == (B, NUM_HEADS, S, S)
    print("KERNEL_OK")
</pallas_src>

<mosaic_0001>
module attributes {stable_mosaic.version = 11 : i64} {
  func.func @_linear_kernel(%arg0: i32, %arg1: i32, %arg2: i32, %arg3: memref<512x256xbf16, #tpu.memory_space<vmem>>, %arg4: memref<256x1024xbf16, #tpu.memory_space<vmem>>, %arg5: memref<512x1024xbf16, #tpu.memory_space<vmem>>, %arg6: memref<512x1024xf32, #tpu.memory_space<vmem>>) attributes {dimension_semantics = [#tpu.dimension_semantics<parallel>, #tpu.dimension_semantics<parallel>, #tpu.dimension_semantics<arbitrary>], iteration_bounds = array<i64: 1, 1, 1>, scalar_prefetch = 0 : i64, scratch_operands = 1 : i64, tpu.core_type = #tpu.core_type<tc>, window_params = [{transform_indices = @transform_0, window_bounds = array<i64: 512, 256>}, {transform_indices = @transform_1, window_bounds = array<i64: 256, 1024>}, {transform_indices = @transform_2, window_bounds = array<i64: 512, 1024>}]} {
    %c0_i32 = arith.constant 0 : i32
    %0 = arith.cmpi eq, %arg2, %c0_i32 : i32
    %1 = arith.extui %0 : i1 to i32
    %c0_i32_0 = arith.constant 0 : i32
    %2 = arith.cmpi ne, %1, %c0_i32_0 : i32
    scf.if %2 {
      %cst_10 = arith.constant 0.000000e+00 : f32
      %12 = vector.broadcast %cst_10 : f32 to vector<512x1024xf32>
      %c0_11 = arith.constant 0 : index
      %c0_12 = arith.constant 0 : index
      %13 = vector.load %arg6[%c0_11, %c0_12] : memref<512x1024xf32, #tpu.memory_space<vmem>>, vector<512x1024xf32>
      tpu.vector_store %arg6[%c0_11, %c0_12], %12 {strides = array<i32>} : memref<512x1024xf32, #tpu.memory_space<vmem>>, vector<512x1024xf32>,
    } else {
    }
    %c0 = arith.constant 0 : index
    %c0_1 = arith.constant 0 : index
    %3 = vector.load %arg6[%c0, %c0_1] : memref<512x1024xf32, #tpu.memory_space<vmem>>, vector<512x1024xf32>
    %c0_2 = arith.constant 0 : index
    %c0_3 = arith.constant 0 : index
    %4 = vector.load %arg3[%c0_2, %c0_3] : memref<512x256xbf16, #tpu.memory_space<vmem>>, vector<512x256xbf16>
    %c0_4 = arith.constant 0 : index
    %c0_5 = arith.constant 0 : index
    %5 = vector.load %arg4[%c0_4, %c0_5] : memref<256x1024xbf16, #tpu.memory_space<vmem>>, vector<256x1024xbf16>
    %cst = arith.constant dense<0.000000e+00> : vector<512x1024xf32>
    %6 = tpu.matmul %4, %5, %cst {dimension_numbers = #tpu.dot_dimension_numbers<[1], [0], [0], [1], [0, 0, 1, 1], [], []>} : vector<512x256xbf16>, vector<256x1024xbf16>, vector<512x1024xf32> -> vector<512x1024xf32>
    %7 = arith.addf %3, %6 : vector<512x1024xf32>
    %c0_6 = arith.constant 0 : index
    %c0_7 = arith.constant 0 : index
    %8 = vector.load %arg6[%c0_6, %c0_7] : memref<512x1024xf32, #tpu.memory_space<vmem>>, vector<512x1024xf32>
    tpu.vector_store %arg6[%c0_6, %c0_7], %7 {strides = array<i32>} : memref<512x1024xf32, #tpu.memory_space<vmem>>, vector<512x1024xf32>,
    %c0_i32_8 = arith.constant 0 : i32
    %9 = arith.cmpi eq, %arg2, %c0_i32_8 : i32
    %10 = arith.extui %9 : i1 to i32
    %c0_i32_9 = arith.constant 0 : i32
    %11 = arith.cmpi ne, %10, %c0_i32_9 : i32
    scf.if %11 {
      %c0_10 = arith.constant 0 : index
      %c0_11 = arith.constant 0 : index
      %12 = vector.load %arg6[%c0_10, %c0_11] : memref<512x1024xf32, #tpu.memory_space<vmem>>, vector<512x1024xf32>
      %13 = arith.truncf %12 : vector<512x1024xf32> to vector<512x1024xbf16>
      %c0_12 = arith.constant 0 : index
      %c0_13 = arith.constant 0 : index
      %14 = vector.load %arg5[%c0_12, %c0_13] : memref<512x1024xbf16, #tpu.memory_space<vmem>>, vector<512x1024xbf16>
      tpu.vector_store %arg5[%c0_12, %c0_13], %13 {strides = array<i32>} : memref<512x1024xbf16, #tpu.memory_space<vmem>>, vector<512x1024xbf16>,
    } else {
    }
    return
  }
  func.func @transform_0(%arg0: i32, %arg1: i32, %arg2: i32) -> (i32, i32) {
    %c0_i32 = arith.constant 0 : i32
    return %arg0, %arg2 : i32, i32
  }
  func.func @transform_1(%arg0: i32, %arg1: i32, %arg2: i32) -> (i32, i32) {
    %c0_i32 = arith.constant 0 : i32
    return %arg2, %arg1 : i32, i32
  }
  func.func @transform_2(%arg0: i32, %arg1: i32, %arg2: i32) -> (i32, i32) {
    %c0_i32 = arith.constant 0 : i32
    return %arg0, %arg1 : i32, i32
  }
}

</mosaic_0001>

<bundles_post_ra>
// kernel: tpu_custom_call.1
= control target key start
LH: loop header
LB: loop body
LE: loop exit
PB: predicated region body
PF: predicated region fallthrough
CT: control target
= control target key end

     0   :  { %7 = vsyncpa [#allocation4], 0  ;;  %s8721_s0 = inlined_call_operand.hbm [shape: bf16[512,256], index: 0, kind: input, shape index: {}]   ;;  %s8722_s1 = inlined_call_operand.hbm [shape: bf16[256,1024], index: 1, kind: input, shape index: {}]   ;;  %s8723_s2 = inlined_call_operand.hbm [shape: bf16[512,1024], index: 2, kind: output, shape index: {}]  }
   0x1   :  { %8 = vsyncpa [#allocation7], 0 }
   0x2   :  { %9 = vsyncpa [#allocation5], 0  ;;  %s14_s11 = sshll.u32 %s8721_s0, 4  ;;  %s8044_s12 = smov [#allocation3]   ;;  %s15_s11 = int_to_ptr.hbm [resolvable:$true] %s14_s11 }
   0x3   :  { %s16_s13 = sshll.u32 %s8044_s12, 4  ;;  %s27_s16 = sshll.u32 %s8722_s1, 4  ;;  %s17_s13 = int_to_ptr.vmem [resolvable:$true] %s16_s13  ;;  %s28_s16 = int_to_ptr.hbm [resolvable:$true] %s27_s16 }
   0x4   :  { %s8045_s17 = smov 128   ;;  %s8046_s18 = smov 8  }
   0x5   :  { %22 = dma.hbm_to_vmem [thread:$0]  %s15_s11, 8192, %s17_s13, [#allocation4], %s8045_s17, %s8045_s17, %s8046_s18  }
   0x6   :  { %s8047_s19 = smov [#allocation6]   ;;  %s8048_s21 = smov 512  }
   0x7   :  { %s29_s20 = sshll.u32 %s8047_s19, 4  ;;  %s8049_s22 = smov 32   ;;  %s30_s20 = int_to_ptr.vmem [resolvable:$true] %s29_s20 }
   0x8   :  { %35 = dma.hbm_to_vmem [thread:$0]  %s28_s16, 16384, %s30_s20, [#allocation7], %s8048_s21, %s8048_s21, %s8049_s22  }
   0x9   :  { %8038 = dma.done.wait [#allocation4], 8192  }
   0xa   :  { %8039 = vsyncadd [#allocation4], 4294959104 }
   0xb   :  { %8040 = dma.done.wait [#allocation7], 16384  }
   0xc   :  { %8041 = vsyncadd [#allocation7], 4294950912  ;;  %v7481_v0 = vld [vmem:[#allocation6 + $0x1c0] sm:$0xf]  ;;  %v7887_v5 = vld [vmem:[#allocation6 + $0x1c4] sm:$0xf] }
   0xd   :  { %v7891_v1 = vld [vmem:[#allocation6 + $0x1dc] sm:$0xf0]  ;;  %v7483_v6 = vld [vmem:[#allocation6 + $0x1e0] sm:$0xf0]  ;;  %s8050_s0 = smov [#allocation8]   ;;  %s6985_s25 = sshll.u32 %s8723_s2, 4  ;;  %s6986_s25 = int_to_ptr.hbm [resolvable:$true] %s6985_s25 }
   0xe   :  { %v7737_v2 = vld [vmem:[#allocation6 + $0x3c0] sm:$0xf]  ;;  %v7482_v3 = vor.u32 %v7891_v1, %v7481_v0  ;;  %v7486_v8 = vor.u32 %v7887_v5, %v7483_v6  ;;  %v7951_v9 = vld [vmem:[#allocation6 + $0x3c4] sm:$0xf]  ;;  %s6983_s1 = sshll.u32 %s8050_s0, 4  ;;  %s6984_s1 = int_to_ptr.vmem [resolvable:$true] %s6983_s1 }
   0xf   :  { %v7955_v4 = vld [vmem:[#allocation6 + $0x3dc] sm:$0xf0]  ;;  %v7739_v10 = vld [vmem:[#allocation6 + $0x3e0] sm:$0xf0] }
  0x10   :  { %v7738_v7 = vor.u32 %v7955_v4, %v7737_v2  ;;  %v7449_v11 = vld [vmem:[#allocation6 + $0x180] sm:$0xf]  ;;  %2224 = vmatpush.bf16.msra.mxu0 %v7482_v3  ;;  %v7742_v12 = vor.u32 %v7951_v9, %v7739_v10  ;;  %2562 = vmatpush.bf16.msra.mxu2 %v7486_v8  ;;  %v7879_v18 = vld [vmem:[#allocation6 + $0x184] sm:$0xf] }
  0x11   :  { %v7883_v13 = vld [vmem:[#allocation6 + $0x19c] sm:$0xf0]  ;;  %v7451_v19 = vld [vmem:[#allocation6 + $0x1a0] sm:$0xf0] }
  0x12   :  { %v7705_v14 = vld [vmem:[#allocation6 + $0x380] sm:$0xf]  ;;  %2393 = vmatpush.bf16.msra.mxu1 %v7738_v7  ;;  %v7450_v16 = vor.u32 %v7883_v13, %v7449_v11  ;;  %v7943_v20 = vld [vmem:[#allocation6 + $0x384] sm:$0xf]  ;;  %2731 = vmatpush.bf16.msra.mxu3 %v7742_v12  ;;  %v7454_v21 = vor.u32 %v7879_v18, %v7451_v19 }
  0x13   :  { %v7947_v15 = vld [vmem:[#allocation6 + $0x39c] sm:$0xf0]  ;;  %v7707_v22 = vld [vmem:[#allocation6 + $0x3a0] sm:$0xf0] }
  0x14   :  { %v7706_v17 = vor.u32 %v7947_v15, %v7705_v14  ;;  %v7417_v23 = vld [vmem:[#allocation6 + $0x140] sm:$0xf]  ;;  %v7710_v25 = vor.u32 %v7943_v20, %v7707_v22  ;;  %v7871_v28 = vld [vmem:[#allocation6 + $0x144] sm:$0xf]  ;;  %2225 = vmatpush.bf16.msra.mxu0 %v7450_v16  ;;  %2563 = vmatpush.bf16.msra.mxu2 %v7454_v21 }
  0x15   :  { %v7875_v24 = vld [vmem:[#allocation6 + $0x15c] sm:$0xf0]  ;;  %v7419_v30 = vld [vmem:[#allocation6 + $0x160] sm:$0xf0] }
  0x16   :  { %v7673_v26 = vld [vmem:[#allocation6 + $0x340] sm:$0xf]  ;;  %v7418_v29 = vor.u32 %v7875_v24, %v7417_v23  ;;  %v7935_v31 = vld [vmem:[#allocation6 + $0x344] sm:$0xf]  ;;  %2394 = vmatpush.bf16.msra.mxu1 %v7706_v17  ;;  %v7422_v34 = vor.u32 %v7871_v28, %v7419_v30  ;;  %2732 = vmatpush.bf16.msra.mxu3 %v7710_v25  ;;  %v7491_v30 = vld [vmem:[#allocation6 + $0x1e8] sm:$0xf0] }
  0x17   :  { %v7939_v27 = vld [vmem:[#allocation6 + $0x35c] sm:$0xf0]  ;;  %v7675_v32 = vld [vmem:[#allocation6 + $0x360] sm:$0xf0] }
  0x18   :  { %v7674_v33 = vor.u32 %v7939_v27, %v7673_v26  ;;  %v7385_v35 = vld [vmem:[#allocation6 + $0x100] sm:$0xf]  ;;  %v7678_v38 = vor.u32 %v7935_v31, %v7675_v32  ;;  %v7863_v40 = vld [vmem:[#allocation6 + $0x104] sm:$0xf]  ;;  %2226 = vmatpush.bf16.msra.mxu0 %v7418_v29  ;;  %2564 = vmatpush.bf16.msra.mxu2 %v7422_v34  ;;  %v7888_v29 = vld [vmem:[#allocation6 + $0x1cc] sm:$0xf] }
  0x19   :  { %v7867_v36 = vld [vmem:[#allocation6 + $0x11c] sm:$0xf0]  ;;  %v7387_v41 = vld [vmem:[#allocation6 + $0x120] sm:$0xf0]  ;;  %v7768_v32 = vld [vmem:[#allocation3 + $0x4] sm:$0xf0] }
  0x1a   :  { %v7641_v37 = vld [vmem:[#allocation6 + $0x300] sm:$0xf]  ;;  %v7927_v42 = vld [vmem:[#allocation6 + $0x304] sm:$0xf]  ;;  %v7386_v44 = vor.u32 %v7867_v36, %v7385_v35  ;;  %2395 = vmatpush.bf16.msra.mxu1 %v7674_v33  ;;  %v7390_v46 = vor.u32 %v7863_v40, %v7387_v41  ;;  %2733 = vmatpush.bf16.msra.mxu3 %v7678_v38  ;;  %v7952_v33 = vld [vmem:[#allocation6 + $0x3cc] sm:$0xf]  ;;  %v7494_v40 = vor.u32 %v7888_v29, %v7491_v30 }
  0x1b   :  { %v7931_v39 = vld [vmem:[#allocation6 + $0x31c] sm:$0xf0]  ;;  %v7643_v43 = vld [vmem:[#allocation6 + $0x320] sm:$0xf0]  ;;  %v7747_v34 = vld [vmem:[#allocation6 + $0x3e8] sm:$0xf0] }
  0x1c   :  { %v7642_v45 = vor.u32 %v7931_v39, %v7641_v37  ;;  %v7353_v47 = vld [vmem:[#allocation6 + $0xc0] sm:$0xf]  ;;  %v7646_v50 = vor.u32 %v7927_v42, %v7643_v43  ;;  %v7855_v52 = vld [vmem:[#allocation6 + $0xc4] sm:$0xf]  ;;  %2227 = vmatpush.bf16.msra.mxu0 %v7386_v44  ;;  %2565 = vmatpush.bf16.msra.mxu2 %v7390_v46  ;;  %v7003_v38 = vld [vmem:[#allocation3 + $0x8] sm:$0xf0]  ;;  %v7750_v44 = vor.u32 %v7952_v33, %v7747_v34 }
  0x1d   :  { %v7859_v48 = vld [vmem:[#allocation6 + $0xdc] sm:$0xf0]  ;;  %v7355_v53 = vld [vmem:[#allocation6 + $0xe0] sm:$0xf0]  ;;  %v7489_v41 = vld [vmem:[#allocation6 + $0x1c8] sm:$0xf] }
  0x1e   :  { %v7609_v49 = vld [vmem:[#allocation6 + $0x2c0] sm:$0xf]  ;;  %v7919_v54 = vld [vmem:[#allocation6 + $0x2c4] sm:$0xf]  ;;  %v7354_v56 = vor.u32 %v7859_v48, %v7353_v47  ;;  %2396 = vmatpush.bf16.msra.mxu1 %v7642_v45  ;;  %v7358_v58 = vor.u32 %v7855_v52, %v7355_v53  ;;  %2734 = vmatpush.bf16.msra.mxu3 %v7646_v50  ;;  %v7892_v42 = vld [vmem:[#allocation6 + $0x1e4] sm:$0xf0] }
  0x1f   :  { %v7923_v51 = vld [vmem:[#allocation6 + $0x2dc] sm:$0xf0]  ;;  %v7611_v55 = vld [vmem:[#allocation6 + $0x2e0] sm:$0xf0]  ;;  %v7745_v45 = vld [vmem:[#allocation6 + $0x3c8] sm:$0xf]  ;;  %v7490_v48 = vor.u32 %v7892_v42, %v7489_v41 }
  0x20   :  { %v7610_v57 = vor.u32 %v7923_v51, %v7609_v49  ;;  %v7321_v59 = vld [vmem:[#allocation6 + $0x80] sm:$0xf]  ;;  %v7614_v62 = vor.u32 %v7919_v54, %v7611_v55  ;;  %v7847_v0 = vld [vmem:[#allocation6 + $0x84] sm:$0xf]  ;;  %2228 = vmatpush.bf16.msra.mxu0 %v7354_v56  ;;  %2566 = vmatpush.bf16.msra.mxu2 %v7358_v58  ;;  %v7956_v46 = vld [vmem:[#allocation6 + $0x3e4] sm:$0xf0] }
  0x21   :  { %v7851_v60 = vld [vmem:[#allocation6 + $0x9c] sm:$0xf0]  ;;  %v7323_v1 = vld [vmem:[#allocation6 + $0xa0] sm:$0xf0]  ;;  %v7746_v49 = vor.u32 %v7956_v46, %v7745_v45  ;;  %v7009_v50 = vld [vmem:[#allocation3 + $0x10] sm:$0xf] }
  0x22   :  { %v7577_v61 = vld [vmem:[#allocation6 + $0x280] sm:$0xf]  ;;  %v7911_v2 = vld [vmem:[#allocation6 + $0x284] sm:$0xf]  ;;  %v7322_v4 = vor.u32 %v7851_v60, %v7321_v59  ;;  %2397 = vmatpush.bf16.msra.mxu1 %v7610_v57  ;;  %v7326_v6 = vor.u32 %v7847_v0, %v7323_v1  ;;  %2735 = vmatpush.bf16.msra.mxu3 %v7614_v62  ;;  %v7770_v51 = vld [vmem:[#allocation3 + $0x14] sm:$0xf0] }
  0x23   :  { %v7915_v63 = vld [vmem:[#allocation6 + $0x29c] sm:$0xf0]  ;;  %v7579_v3 = vld [vmem:[#allocation6 + $0x2a0] sm:$0xf0]  ;;  %v7769_v52 = vld [vmem:[#allocation3 + $0x14] sm:$0xf]  ;;  %v8083_v54 = vor.u32 %v7770_v51, %v7009_v50 }
  0x24   :  { %v7578_v5 = vor.u32 %v7915_v63, %v7577_v61  ;;  %v7289_v7 = vld [vmem:[#allocation6 + $0x40] sm:$0xf]  ;;  %v7582_v10 = vor.u32 %v7911_v2, %v7579_v3  ;;  %v7839_v12 = vld [vmem:[#allocation6 + $0x44] sm:$0xf]  ;;  %2229 = vmatpush.bf16.msra.mxu0 %v7322_v4  ;;  %2567 = vmatpush.bf16.msra.mxu2 %v7326_v6  ;;  %v7011_v53 = vld [vmem:[#allocation3 + $0x18] sm:$0xf0] }
  0x25   :  { %v7843_v8 = vld [vmem:[#allocation6 + $0x5c] sm:$0xf0]  ;;  %v7291_v13 = vld [vmem:[#allocation6 + $0x60] sm:$0xf0]  ;;  %v8085_v55 = vor.u32 %v7769_v52, %v7011_v53  ;;  %v7772_v57 = vld [vmem:[#allocation3 + $0x24] sm:$0xf0] }
  0x26   :  { %v7545_v9 = vld [vmem:[#allocation6 + $0x240] sm:$0xf]  ;;  %v7903_v14 = vld [vmem:[#allocation6 + $0x244] sm:$0xf]  ;;  %v7290_v16 = vor.u32 %v7843_v8, %v7289_v7  ;;  %2398 = vmatpush.bf16.msra.mxu1 %v7578_v5  ;;  %v7294_v20 = vor.u32 %v7839_v12, %v7291_v13  ;;  %2736 = vmatpush.bf16.msra.mxu3 %v7582_v10  ;;  %v7019_v59 = vld [vmem:[#allocation3 + $0x28] sm:$0xf0] }
  0x27   :  { %v7907_v11 = vld [vmem:[#allocation6 + $0x25c] sm:$0xf0]  ;;  %v7547_v15 = vld [vmem:[#allocation6 + $0x260] sm:$0xf0]  ;;  %v7880_v62 = vld [vmem:[#allocation6 + $0x18c] sm:$0xf] }
  0x28   :  { %v7257_v17 = vld [vmem:[#allocation6] sm:$0xf]  ;;  %v7546_v19 = vor.u32 %v7907_v11, %v7545_v9  ;;  %v7831_v23 = vld [vmem:[#allocation6 + $0x4] sm:$0xf]  ;;  %v7550_v24 = vor.u32 %v7903_v14, %v7547_v15  ;;  %2230 = vmatpush.bf16.msra.mxu0 %v7290_v16  ;;  %2568 = vmatpush.bf16.msra.mxu2 %v7294_v20  ;;  %v7459_v63 = vld [vmem:[#allocation6 + $0x1a8] sm:$0xf0] }
  0x29   :  { %v7835_v18 = vld [vmem:[#allocation6 + $0x1c] sm:$0xf0]  ;;  %v7259_v25 = vld [vmem:[#allocation6 + $0x20] sm:$0xf0]  ;;  %v7944_v0 = vld [vmem:[#allocation6 + $0x38c] sm:$0xf]  ;;  %v7462_v1 = vor.u32 %v7880_v62, %v7459_v63 }
  0x2a   :  { %v7513_v21 = vld [vmem:[#allocation6 + $0x200] sm:$0xf]  ;;  %v7895_v26 = vld [vmem:[#allocation6 + $0x204] sm:$0xf]  ;;  %v7258_v31 = vor.u32 %v7835_v18, %v7257_v17  ;;  %2399 = vmatpush.bf16.msra.mxu1 %v7546_v19  ;;  %v7262_v36 = vor.u32 %v7831_v23, %v7259_v25  ;;  %2737 = vmatpush.bf16.msra.mxu3 %v7550_v24  ;;  %v7715_v2 = vld [vmem:[#allocation6 + $0x3a8] sm:$0xf0] }
  0x2b   :  { %v7899_v22 = vld [vmem:[#allocation6 + $0x21c] sm:$0xf0]  ;;  %v7515_v27 = vld [vmem:[#allocation6 + $0x220] sm:$0xf0]  ;;  %v7457_v3 = vld [vmem:[#allocation6 + $0x188] sm:$0xf]  ;;  %v7718_v5 = vor.u32 %v7944_v0, %v7715_v2 }
  0x2c   :  { %v7001_v28 = vld [vmem:[#allocation3] sm:$0xf]  ;;  %v7514_v35 = vor.u32 %v7899_v22, %v7513_v21  ;;  %v7767_v37 = vld [vmem:[#allocation3 + $0x4] sm:$0xf]  ;;  %v7518_v39 = vor.u32 %v7895_v26, %v7515_v27  ;;  %2231 = vmatpush.bf16.msra.mxu0 %v7258_v31  ;;  %2569 = vmatpush.bf16.msra.mxu2 %v7262_v36  ;;  %v7884_v4 = vld [vmem:[#allocation6 + $0x1a4] sm:$0xf0] }
  0x2d   :  { %v8075_v43 = vor.u32 %v7768_v32, %v7001_v28  ;;  %v8077_v47 = vor.u32 %v7767_v37, %v7003_v38  ;;  %v7017_v56 = vld [vmem:[#allocation3 + $0x20] sm:$0xf]  ;;  %v7771_v58 = vld [vmem:[#allocation3 + $0x24] sm:$0xf]  ;;  %v7458_v6 = vor.u32 %v7884_v4, %v7457_v3  ;;  %v7713_v7 = vld [vmem:[#allocation6 + $0x388] sm:$0xf] }
  0x2e   :  { %2400 = vmatpush.bf16.msra.mxu1 %v7514_v35  ;;  %2738 = vmatpush.bf16.msra.mxu3 %v7518_v39  ;;  %v8091_v60 = vor.u32 %v7772_v57, %v7017_v56  ;;  %v8093_v61 = vor.u32 %v7771_v58, %v7019_v59  ;;  %v7948_v8 = vld [vmem:[#allocation6 + $0x3a4] sm:$0xf0]  ;;  %v7025_v10 = vld [vmem:[#allocation3 + $0x30] sm:$0xf]  ;;  %v7774_v11 = vld [vmem:[#allocation3 + $0x34] sm:$0xf0] }
  0x2f   :  { %2232 = vmatmul.bf16.vlgmr.msra.gmra.mxu0 %v8075_v43  ;;  %2570 = vmatmul.bf16.vlgmr.msra.gmra.mxu2 %v8075_v43  ;;  %v7714_v9 = vor.u32 %v7948_v8, %v7713_v7  ;;  %v7773_v12 = vld [vmem:[#allocation3 + $0x34] sm:$0xf]  ;;  %v7027_v13 = vld [vmem:[#allocation3 + $0x38] sm:$0xf0]  ;;  %v8099_v14 = vor.u32 %v7774_v11, %v7025_v10  ;;  %v7033_v16 = vld [vmem:[#allocation3 + $0x40] sm:$0xf] }
  0x30   :  { %3238 = vmatpush.bf16.msrb.mxu2 %v7494_v40  ;;  %2900 = vmatpush.bf16.msrb.mxu0 %v7490_v48  ;;  %8805 = vst [vmem:[#allocation12_spill] sm:$0xff] %v8091_v60  ;;  %v8101_v15 = vor.u32 %v7773_v12, %v7027_v13  ;;  %v7776_v17 = vld [vmem:[#allocation3 + $0x44] sm:$0xf0]  ;;  %v7775_v18 = vld [vmem:[#allocation3 + $0x44] sm:$0xf] }
  0x31   :  { %2401 = vmatmul.bf16.vlgmr.msra.gmra.mxu1 %v8077_v47  ;;  %2739 = vmatmul.bf16.vlgmr.msra.gmra.mxu3 %v8077_v47  ;;  %8806 = vst [vmem:[#allocation13_spill] sm:$0xff] %v8093_v61  ;;  %v7035_v19 = vld [vmem:[#allocation3 + $0x48] sm:$0xf0]  ;;  %v8107_v20 = vor.u32 %v7776_v17, %v7033_v16  ;;  %v7041_v22 = vld [vmem:[#allocation3 + $0x50] sm:$0xf] }
  0x32   :  { %3407 = vmatpush.bf16.msrb.mxu3 %v7750_v44  ;;  %3069 = vmatpush.bf16.msrb.mxu1 %v7746_v49  ;;  %v8109_v21 = vor.u32 %v7775_v18, %v7035_v19  ;;  %v7778_v23 = vld [vmem:[#allocation3 + $0x54] sm:$0xf0]  ;;  %v7777_v24 = vld [vmem:[#allocation3 + $0x54] sm:$0xf]  ;;  %v7043_v25 = vld [vmem:[#allocation3 + $0x58] sm:$0xf0] }
  0x33   :  { %v8115_v26 = vor.u32 %v7778_v23, %v7041_v22  ;;  %v8117_v27 = vor.u32 %v7777_v24, %v7043_v25  ;;  %v7049_v28 = vld [vmem:[#allocation3 + $0x60] sm:$0xf]  ;;  %v7780_v29 = vld [vmem:[#allocation3 + $0x64] sm:$0xf0]  ;;  %v7779_v30 = vld [vmem:[#allocation3 + $0x64] sm:$0xf] }
  0x34   :  { %3239 = vmatpush.bf16.msrb.mxu2 %v7462_v1  ;;  %2901 = vmatpush.bf16.msrb.mxu0 %v7458_v6  ;;  %v7051_v31 = vld [vmem:[#allocation3 + $0x68] sm:$0xf0]  ;;  %v8123_v32 = vor.u32 %v7780_v29, %v7049_v28  ;;  %v7057_v40 = vld [vmem:[#allocation3 + $0x70] sm:$0xf]  ;;  %v7782_v41 = vld [vmem:[#allocation3 + $0x74] sm:$0xf0] }
  0x35   :  { %v8125_v33 = vor.u32 %v7779_v30, %v7051_v31  ;;  %v7872_v34 = vld [vmem:[#allocation6 + $0x14c] sm:$0xf]  ;;  %v7781_v42 = vld [vmem:[#allocation3 + $0x74] sm:$0xf]  ;;  %v7059_v44 = vld [vmem:[#allocation3 + $0x78] sm:$0xf0]  ;;  %v8131_v51 = vor.u32 %v7782_v41, %v7057_v40 }
  0x36   :  { %3408 = vmatpush.bf16.msrb.mxu3 %v7718_v5  ;;  %3070 = vmatpush.bf16.msrb.mxu1 %v7714_v9  ;;  %v7427_v35 = vld [vmem:[#allocation6 + $0x168] sm:$0xf0]  ;;  %v7425_v45 = vld [vmem:[#allocation6 + $0x148] sm:$0xf]  ;;  %v8133_v53 = vor.u32 %v7781_v42, %v7059_v44  ;;  %v7065_v56 = vld [vmem:[#allocation3 + $0x80] sm:$0xf] }
  0x37   :  { %v7936_v36 = vld [vmem:[#allocation6 + $0x34c] sm:$0xf]  ;;  %v7430_v37 = vor.u32 %v7872_v34, %v7427_v35  ;;  %v7876_v46 = vld [vmem:[#allocation6 + $0x164] sm:$0xf0]  ;;  %v7783_v58 = vld [vmem:[#allocation3 + $0x84] sm:$0xf] }
  0x38   :  { %v7683_v38 = vld [vmem:[#allocation6 + $0x368] sm:$0xf0]  ;;  %v7681_v48 = vld [vmem:[#allocation6 + $0x348] sm:$0xf]  ;;  %v7426_v49 = vor.u32 %v7876_v46, %v7425_v45  ;;  %v7073_v9 = vld [vmem:[#allocation3 + $0x90] sm:$0xf] }
  0x39   :  { %v7686_v39 = vor.u32 %v7936_v36, %v7683_v38  ;;  %3240 = vmatpush.bf16.msrb.mxu2 %v7430_v37  ;;  %v7940_v50 = vld [vmem:[#allocation6 + $0x364] sm:$0xf0]  ;;  %v7067_v59 = vld [vmem:[#allocation3 + $0x88] sm:$0xf0]  ;;  %v7786_v10 = vld [vmem:[#allocation3 + $0x94] sm:$0xf0] }
  0x3a   :  { %v7682_v52 = vor.u32 %v7940_v50, %v7681_v48  ;;  %2902 = vmatpush.bf16.msrb.mxu0 %v7426_v49  ;;  %v7784_v57 = vld [vmem:[#allocation3 + $0x84] sm:$0xf0]  ;;  %v8141_v0 = vor.u32 %v7783_v58, %v7067_v59  ;;  %v7785_v11 = vld [vmem:[#allocation3 + $0x94] sm:$0xf]  ;;  %v7075_v12 = vld [vmem:[#allocation3 + $0x98] sm:$0xf0]  ;;  %v8147_v16 = vor.u32 %v7786_v10, %v7073_v9 }
  0x3b   :  { %3409 = vmatpush.bf16.msrb.mxu3 %v7686_v39  ;;  %v8139_v62 = vor.u32 %v7784_v57, %v7065_v56  ;;  %v8149_v19 = vor.u32 %v7785_v11, %v7075_v12  ;;  %v7081_v37 = vld [vmem:[#allocation3 + $0xa0] sm:$0xf]  ;;  %v7788_v38 = vld [vmem:[#allocation3 + $0xa4] sm:$0xf0]  ;;  %v7787_v39 = vld [vmem:[#allocation3 + $0xa4] sm:$0xf] }
  0x3c   :  { %3071 = vmatpush.bf16.msrb.mxu1 %v7682_v52  ;;  %v7083_v40 = vld [vmem:[#allocation3 + $0xa8] sm:$0xf0]  ;;  %v8155_v42 = vor.u32 %v7788_v38, %v7081_v37  ;;  %v7089_v9 = vld [vmem:[#allocation3 + $0xb0] sm:$0xf]  ;;  %v7790_v10 = vld [vmem:[#allocation3 + $0xb4] sm:$0xf0] }
  0x3d   :  { %v8157_v46 = vor.u32 %v7787_v39, %v7083_v40  ;;  %v7864_v56 = vld [vmem:[#allocation6 + $0x10c] sm:$0xf]  ;;  %v7789_v11 = vld [vmem:[#allocation3 + $0xb4] sm:$0xf]  ;;  %v7091_v12 = vld [vmem:[#allocation3 + $0xb8] sm:$0xf0] }
  0x3e   :  { %v7395_v57 = vld [vmem:[#allocation6 + $0x128] sm:$0xf0] }
  0x3f   :  { %2237 = vmatmul.bf16.gmra.mxu0 %v8083_v54  ;;  %2575 = vmatmul.bf16.gmra.mxu2 %v8083_v54  ;;  %v7398_v58 = vor.u32 %v7864_v56, %v7395_v57  ;;  %v7928_v59 = vld [vmem:[#allocation6 + $0x30c] sm:$0xf] }
  0x40   :  { %v7099_v56 = vld [vmem:[#allocation3 + $0xc8] sm:$0xf0] }
  0x41   :  { %2406 = vmatmul.bf16.gmra.mxu1 %v8085_v55  ;;  %2744 = vmatmul.bf16.gmra.mxu3 %v8085_v55 }
  0x42   :  { %3241 = vmatpush.bf16.msrb.mxu2 %v7398_v58 }
  0x4f   :  { %2242 = vmatmul.bf16.gmra.mxu0 %v8091_v60  ;;  %2580 = vmatmul.bf16.gmra.mxu2 %v8091_v60 }
  0x51   :  { %2411 = vmatmul.bf16.gmra.mxu1 %v8093_v61  ;;  %2749 = vmatmul.bf16.gmra.mxu3 %v8093_v61 }
  0x5f   :  { %2247 = vmatmul.bf16.gmra.mxu0 %v8099_v14  ;;  %2585 = vmatmul.bf16.gmra.mxu2 %v8099_v14 }
  0x61   :  { %2416 = vmatmul.bf16.gmra.mxu1 %v8101_v15  ;;  %2754 = vmatmul.bf16.gmra.mxu3 %v8101_v15 }
  0x6f   :  { %2252 = vmatmul.bf16.gmra.mxu0 %v8107_v20  ;;  %2590 = vmatmul.bf16.gmra.mxu2 %v8107_v20 }
  0x71   :  { %2421 = vmatmul.bf16.gmra.mxu1 %v8109_v21  ;;  %2759 = vmatmul.bf16.gmra.mxu3 %v8109_v21 }
  0x7f   :  { %2257 = vmatmul.bf16.gmra.mxu0 %v8115_v26  ;;  %2595 = vmatmul.bf16.gmra.mxu2 %v8115_v26 }
  0x81   :  { %2426 = vmatmul.bf16.gmra.mxu1 %v8117_v27  ;;  %2764 = vmatmul.bf16.gmra.mxu3 %v8117_v27 }
  0x8f   :  { %2262 = vmatmul.bf16.gmra.mxu0 %v8123_v32  ;;  %2600 = vmatmul.bf16.gmra.mxu2 %v8123_v32 }
  0x91   :  { %2431 = vmatmul.bf16.gmra.mxu1 %v8125_v33  ;;  %2769 = vmatmul.bf16.gmra.mxu3 %v8125_v33 }
  0x9f   :  { %2267 = vmatmul.bf16.gmra.mxu0 %v8131_v51  ;;  %2605 = vmatmul.bf16.gmra.mxu2 %v8131_v51 }
  0xa1   :  { %2436 = vmatmul.bf16.gmra.mxu1 %v8133_v53  ;;  %2774 = vmatmul.bf16.gmra.mxu3 %v8133_v53 }
  0xac   :  { %v2233_v63 = vpop.f32.mrf.mxu0 }
  0xae   :  { %v2402_v1 = vpop.f32.mrf.mxu1 }
  0xaf   :  { %2272 = vmatmul.bf16.gmra.mxu0 %v8139_v62  ;;  %2610 = vmatmul.bf16.gmra.mxu2 %v8139_v62  ;;  %v2403_v2 = vadd.f32 %v2402_v1, %v2233_v63  ;;  %v7651_v63 = vld [vmem:[#allocation6 + $0x328] sm:$0xf0] }
  0xb1   :  { %2441 = vmatmul.bf16.gmra.mxu1 %v8141_v0  ;;  %2779 = vmatmul.bf16.gmra.mxu3 %v8141_v0 }
  0xb2   :  { %v2571_v3 = vpop.f32.mrf.mxu2 }
  0xb4   :  { %v2740_v4 = vpop.f32.mrf.mxu3  ;;  %v2235_v5 = vpop.f32.mrf.mxu0 }
  0xb5   :  { %v2741_v6 = vadd.f32 %v2740_v4, %v2571_v3  ;;  %v7654_v3 = vor.u32 %v7928_v59, %v7651_v63 }
  0xb6   :  { %v2404_v7 = vpop.f32.mrf.mxu1 }
  0xb7   :  { %v6467_v8 = vpack.c.bf16 %v2741_v6, %v2403_v2  ;;  %v2405_v22 = vadd.f32 %v2404_v7, %v2235_v5  ;;  %3410 = vmatpush.bf16.msrb.mxu3 %v7654_v3 }
  0xb9   :  { %6723 = vst [vmem:[#allocation8] sm:$0xff] %v6467_v8 }
  0xba   :  { %v2573_v13 = vpop.f32.mrf.mxu2 }
  0xbc   :  { %v2742_v17 = vpop.f32.mrf.mxu3  ;;  %v2238_v18 = vpop.f32.mrf.mxu0 }
  0xbd   :  { %v2743_v23 = vadd.f32 %v2742_v17, %v2573_v13  ;;  %v7393_v13 = vld [vmem:[#allocation6 + $0x108] sm:$0xf] }
  0xbe   :  { %v2407_v24 = vpop.f32.mrf.mxu1  ;;  %v7868_v17 = vld [vmem:[#allocation6 + $0x124] sm:$0xf0] }
  0xbf   :  { %v6471_v25 = vpack.c.bf16 %v2743_v23, %v2405_v22  ;;  %2277 = vmatmul.bf16.gmra.mxu0 %v8147_v16  ;;  %2615 = vmatmul.bf16.gmra.mxu2 %v8147_v16  ;;  %v2408_v28 = vadd.f32 %v2407_v24, %v2238_v18  ;;  %v7394_v18 = vor.u32 %v7868_v17, %v7393_v13  ;;  %v7649_v22 = vld [vmem:[#allocation6 + $0x308] sm:$0xf]  ;;  %v7105_v13 = vld [vmem:[#allocation3 + $0xd0] sm:$0xf]  ;;  %v7794_v17 = vld [vmem:[#allocation3 + $0xd4] sm:$0xf0] }
  0xc0   :  { %v7932_v23 = vld [vmem:[#allocation6 + $0x324] sm:$0xf0] }
  0xc1   :  { %2446 = vmatmul.bf16.gmra.mxu1 %v8149_v19  ;;  %6727 = vst [vmem:[#allocation8 + $0x20] sm:$0xff] %v6471_v25  ;;  %2784 = vmatmul.bf16.gmra.mxu3 %v8149_v19  ;;  %v8163_v25 = vor.u32 %v7790_v10, %v7089_v9 }
  0xc2   :  { %v2576_v29 = vpop.f32.mrf.mxu2  ;;  %2903 = vmatpush.bf16.msrb.mxu0 %v7394_v18  ;;  %v7793_v18 = vld [vmem:[#allocation3 + $0xd4] sm:$0xf] }
  0xc4   :  { %v2745_v30 = vpop.f32.mrf.mxu3  ;;  %v2240_v31 = vpop.f32.mrf.mxu0 }
  0xc5   :  { %v2746_v34 = vadd.f32 %v2745_v30, %v2576_v29 }
  0xc6   :  { %v2409_v35 = vpop.f32.mrf.mxu1 }
  0xc7   :  { %v6475_v36 = vpack.c.bf16 %v2746_v34, %v2408_v28  ;;  %v2410_v48 = vadd.f32 %v2409_v35, %v2240_v31  ;;  %v7650_v28 = vor.u32 %v7932_v23, %v7649_v22  ;;  %v8165_v31 = vor.u32 %v7789_v11, %v7091_v12  ;;  %v7107_v22 = vld [vmem:[#allocation3 + $0xd8] sm:$0xf0] }
  0xc9   :  { %6731 = vst [vmem:[#allocation8 + $0x40] sm:$0xff] %v6475_v36  ;;  %3072 = vmatpush.bf16.msrb.mxu1 %v7650_v28 }
  0xca   :  { %v2578_v41 = vpop.f32.mrf.mxu2 }
  0xcc   :  { %v2747_v44 = vpop.f32.mrf.mxu3  ;;  %v2243_v45 = vpop.f32.mrf.mxu0 }
  0xcd   :  { %v2748_v49 = vadd.f32 %v2747_v44, %v2578_v41 }
  0xce   :  { %v2412_v50 = vpop.f32.mrf.mxu1 }
  0xcf   :  { %v6479_v52 = vpack.c.bf16 %v2748_v49, %v2410_v48  ;;  %2282 = vmatmul.bf16.gmra.mxu0 %v8155_v42  ;;  %2620 = vmatmul.bf16.gmra.mxu2 %v8155_v42  ;;  %v2413_v1 = vadd.f32 %v2412_v50, %v2243_v45  ;;  %v7097_v49 = vld [vmem:[#allocation3 + $0xc0] sm:$0xf]  ;;  %v7792_v50 = vld [vmem:[#allocation3 + $0xc4] sm:$0xf0] }
  0xd0   :  { %v8171_v58 = vor.u32 %v7792_v50, %v7097_v49  ;;  %v7113_v49 = vld [vmem:[#allocation3 + $0xe0] sm:$0xf]  ;;  %v7796_v50 = vld [vmem:[#allocation3 + $0xe4] sm:$0xf0] }
  0xd1   :  { %2451 = vmatmul.bf16.gmra.mxu1 %v8157_v46  ;;  %6735 = vst [vmem:[#allocation8 + $0x60] sm:$0xff] %v6479_v52  ;;  %2789 = vmatmul.bf16.gmra.mxu3 %v8157_v46  ;;  %v7791_v52 = vld [vmem:[#allocation3 + $0xc4] sm:$0xf] }
  0xd2   :  { %v2581_v2 = vpop.f32.mrf.mxu2 }
  0xd4   :  { %v2750_v4 = vpop.f32.mrf.mxu3  ;;  %v2245_v5 = vpop.f32.mrf.mxu0 }
  0xd5   :  { %v2751_v6 = vadd.f32 %v2750_v4, %v2581_v2 }
  0xd6   :  { %v2414_v7 = vpop.f32.mrf.mxu1 }
  0xd7   :  { %v6483_v8 = vpack.c.bf16 %v2751_v6, %v2413_v1  ;;  %v2415_v34 = vadd.f32 %v2414_v7, %v2245_v5  ;;  %v8173_v1 = vor.u32 %v7791_v52, %v7099_v56  ;;  %v7795_v52 = vld [vmem:[#allocation3 + $0xe4] sm:$0xf]  ;;  %v7115_v56 = vld [vmem:[#allocation3 + $0xe8] sm:$0xf0] }
  0xd9   :  { %6739 = vst [vmem:[#allocation8 + $0x80] sm:$0xff] %v6483_v8 }
  0xda   :  { %v2583_v24 = vpop.f32.mrf.mxu2 }
  0xdc   :  { %v2752_v29 = vpop.f32.mrf.mxu3  ;;  %v2248_v30 = vpop.f32.mrf.mxu0 }
  0xdd   :  { %v2753_v35 = vadd.f32 %v2752_v29, %v2583_v24  ;;  %v8179_v24 = vor.u32 %v7794_v17, %v7105_v13 }
  0xde   :  { %v2417_v36 = vpop.f32.mrf.mxu1 }
  0xdf   :  { %v6487_v37 = vpack.c.bf16 %v2753_v35, %v2415_v34  ;;  %2287 = vmatmul.bf16.gmra.mxu0 %v8163_v25  ;;  %2625 = vmatmul.bf16.gmra.mxu2 %v8163_v25  ;;  %v2418_v38 = vadd.f32 %v2417_v36, %v2248_v30  ;;  %v8181_v30 = vor.u32 %v7793_v18, %v7107_v22 }
  0xe1   :  { %2456 = vmatmul.bf16.gmra.mxu1 %v8165_v31  ;;  %6743 = vst [vmem:[#allocation8 + $0xa0] sm:$0xff] %v6487_v37  ;;  %2794 = vmatmul.bf16.gmra.mxu3 %v8165_v31 }
  0xe2   :  { %v2586_v39 = vpop.f32.mrf.mxu2 }
  0xe4   :  { %v2755_v40 = vpop.f32.mrf.mxu3  ;;  %v2250_v41 = vpop.f32.mrf.mxu0 }
  0xe5   :  { %v2756_v44 = vadd.f32 %v2755_v40, %v2586_v39 }
  0xe6   :  { %v2419_v45 = vpop.f32.mrf.mxu1 }
  0xe7   :  { %v6491_v48 = vpack.c.bf16 %v2756_v44, %v2418_v38  ;;  %v2420_v2 = vadd.f32 %v2419_v45, %v2250_v41 }
  0xe9   :  { %6747 = vst [vmem:[#allocation8 + $0xc0] sm:$0xff] %v6491_v48 }
  0xea   :  { %v2588_v57 = vpop.f32.mrf.mxu2 }
  0xec   :  { %v2757_v59 = vpop.f32.mrf.mxu3  ;;  %v2253_v63 = vpop.f32.mrf.mxu0 }
  0xed   :  { %v2758_v3 = vadd.f32 %v2757_v59, %v2588_v57  ;;  %v8187_v59 = vor.u32 %v7796_v50, %v7113_v49 }
  0xee   :  { %v2422_v4 = vpop.f32.mrf.mxu1 }
  0xef   :  { %v6495_v5 = vpack.c.bf16 %v2758_v3, %v2420_v2  ;;  %2292 = vmatmul.bf16.gmra.mxu0 %v8171_v58  ;;  %2630 = vmatmul.bf16.gmra.mxu2 %v8171_v58  ;;  %v2423_v6 = vadd.f32 %v2422_v4, %v2253_v63  ;;  %v8189_v3 = vor.u32 %v7795_v52, %v7115_v56 }
  0xf1   :  { %2461 = vmatmul.bf16.gmra.mxu1 %v8173_v1  ;;  %6751 = vst [vmem:[#allocation8 + $0xe0] sm:$0xff] %v6495_v5  ;;  %2799 = vmatmul.bf16.gmra.mxu3 %v8173_v1 }
  0xf2   :  { %v2591_v7 = vpop.f32.mrf.mxu2 }
  0xf4   :  { %v2760_v8 = vpop.f32.mrf.mxu3  ;;  %v2255_v9 = vpop.f32.mrf.mxu0 }
  0xf5   :  { %v2761_v10 = vadd.f32 %v2760_v8, %v2591_v7  ;;  %v7856_v8 = vld [vmem:[#allocation6 + $0xcc] sm:$0xf] }
  0xf6   :  { %v2424_v11 = vpop.f32.mrf.mxu1 }
  0xf7   :  { %v6499_v12 = vpack.c.bf16 %v2761_v10, %v2423_v6  ;;  %v2425_v34 = vadd.f32 %v2424_v11, %v2255_v9  ;;  %v7363_v9 = vld [vmem:[#allocation6 + $0xe8] sm:$0xf0] }
  0xf8   :  { %v7366_v10 = vor.u32 %v7856_v8, %v7363_v9  ;;  %v7920_v11 = vld [vmem:[#allocation6 + $0x2cc] sm:$0xf] }
  0xf9   :  { %6755 = vst [vmem:[#allocation8 + $0x100] sm:$0xff] %v6499_v12  ;;  %v7619_v12 = vld [vmem:[#allocation6 + $0x2e8] sm:$0xf0] }
  0xfa   :  { %v2593_v23 = vpop.f32.mrf.mxu2  ;;  %v7622_v18 = vor.u32 %v7920_v11, %v7619_v12  ;;  %3242 = vmatpush.bf16.msrb.mxu2 %v7366_v10 }
  0xfc   :  { %v2762_v28 = vpop.f32.mrf.mxu3  ;;  %v2258_v29 = vpop.f32.mrf.mxu0  ;;  %3411 = vmatpush.bf16.msrb.mxu3 %v7622_v18  ;;  %v7799_v18 = vld [vmem:[#allocation3 + $0x104] sm:$0xf] }
  0xfd   :  { %v2763_v35 = vadd.f32 %v2762_v28, %v2593_v23 }
  0xfe   :  { %v2427_v36 = vpop.f32.mrf.mxu1 }
  0xff   :  { %v6503_v37 = vpack.c.bf16 %v2763_v35, %v2425_v34  ;;  %2297 = vmatmul.bf16.gmra.mxu0 %v8179_v24  ;;  %2635 = vmatmul.bf16.gmra.mxu2 %v8179_v24  ;;  %v2428_v38 = vadd.f32 %v2427_v36, %v2258_v29  ;;  %v7121_v35 = vld [vmem:[#allocation3 + $0xf0] sm:$0xf]  ;;  %v7798_v36 = vld [vmem:[#allocation3 + $0xf4] sm:$0xf0] }
 0x100   :  { %v8195_v49 = vor.u32 %v7798_v36, %v7121_v35 }
 0x101   :  { %2466 = vmatmul.bf16.gmra.mxu1 %v8181_v30  ;;  %6759 = vst [vmem:[#allocation8 + $0x120] sm:$0xff] %v6503_v37  ;;  %2804 = vmatmul.bf16.gmra.mxu3 %v8181_v30  ;;  %v7797_v37 = vld [vmem:[#allocation3 + $0xf4] sm:$0xf] }
 0x102   :  { %v2596_v39 = vpop.f32.mrf.mxu2 }
 0x104   :  { %v2765_v40 = vpop.f32.mrf.mxu3  ;;  %v2260_v41 = vpop.f32.mrf.mxu0 }
 0x105   :  { %v2766_v44 = vadd.f32 %v2765_v40, %v2596_v39  ;;  %v7361_v39 = vld [vmem:[#allocation6 + $0xc8] sm:$0xf] }
 0x106   :  { %v2429_v45 = vpop.f32.mrf.mxu1  ;;  %v7860_v40 = vld [vmem:[#allocation6 + $0xe4] sm:$0xf0] }
 0x107   :  { %v6507_v48 = vpack.c.bf16 %v2766_v44, %v2428_v38  ;;  %v2430_v4 = vadd.f32 %v2429_v45, %v2260_v41  ;;  %v7123_v38 = vld [vmem:[#allocation3 + $0xf8] sm:$0xf0]  ;;  %v7362_v41 = vor.u32 %v7860_v40, %v7361_v39  ;;  %v7617_v44 = vld [vmem:[#allocation6 + $0x2c8] sm:$0xf] }
 0x108   :  { %v7924_v45 = vld [vmem:[#allocation6 + $0x2e4] sm:$0xf0] }
 0x109   :  { %6763 = vst [vmem:[#allocation8 + $0x140] sm:$0xff] %v6507_v48  ;;  %v7618_v50 = vor.u32 %v7924_v45, %v7617_v44  ;;  %2904 = vmatpush.bf16.msrb.mxu0 %v7362_v41 }
 0x10a   :  { %v2598_v57 = vpop.f32.mrf.mxu2 }
 0x10b   :  { %3073 = vmatpush.bf16.msrb.mxu1 %v7618_v50 }
 0x10c   :  { %v2767_v63 = vpop.f32.mrf.mxu3  ;;  %v2263_v2 = vpop.f32.mrf.mxu0 }
 0x10d   :  { %v2768_v5 = vadd.f32 %v2767_v63, %v2598_v57  ;;  %v8197_v57 = vor.u32 %v7797_v37, %v7123_v38 }
 0x10e   :  { %v2432_v6 = vpop.f32.mrf.mxu1 }
 0x10f   :  { %v6511_v7 = vpack.c.bf16 %v2768_v5, %v2430_v4  ;;  %2302 = vmatmul.bf16.gmra.mxu0 %v8187_v59  ;;  %2640 = vmatmul.bf16.gmra.mxu2 %v8187_v59  ;;  %v2433_v13 = vadd.f32 %v2432_v6, %v2263_v2 }
 0x111   :  { %2471 = vmatmul.bf16.gmra.mxu1 %v8189_v3  ;;  %6767 = vst [vmem:[#allocation8 + $0x160] sm:$0xff] %v6511_v7  ;;  %2809 = vmatmul.bf16.gmra.mxu3 %v8189_v3 }
 0x112   :  { %v2601_v17 = vpop.f32.mrf.mxu2 }
 0x114   :  { %v2770_v22 = vpop.f32.mrf.mxu3  ;;  %v2265_v23 = vpop.f32.mrf.mxu0 }
 0x115   :  { %v2771_v28 = vadd.f32 %v2770_v22, %v2601_v17  ;;  %v7800_v17 = vld [vmem:[#allocation3 + $0x104] sm:$0xf0]  ;;  %v7131_v22 = vld [vmem:[#allocation3 + $0x108] sm:$0xf0] }
 0x116   :  { %v2434_v29 = vpop.f32.mrf.mxu1  ;;  %v8205_v35 = vor.u32 %v7799_v18, %v7131_v22 }
 0x117   :  { %v6515_v34 = vpack.c.bf16 %v2771_v28, %v2433_v13  ;;  %v2435_v63 = vadd.f32 %v2434_v29, %v2265_v23  ;;  %v7129_v13 = vld [vmem:[#allocation3 + $0x100] sm:$0xf] }
 0x118   :  { %v8203_v28 = vor.u32 %v7800_v17, %v7129_v13 }
 0x119   :  { %6771 = vst [vmem:[#allocation8 + $0x180] sm:$0xff] %v6515_v34 }
 0x11a   :  { %v2603_v48 = vpop.f32.mrf.mxu2 }
 0x11c   :  { %v2772_v52 = vpop.f32.mrf.mxu3  ;;  %v2268_v56 = vpop.f32.mrf.mxu0 }
 0x11d   :  { %v2773_v2 = vadd.f32 %v2772_v52, %v2603_v48 }
 0x11e   :  { %v2437_v4 = vpop.f32.mrf.mxu1 }
 0x11f   :  { %v6519_v5 = vpack.c.bf16 %v2773_v2, %v2435_v63  ;;  %2307 = vmatmul.bf16.gmra.mxu0 %v8195_v49  ;;  %2645 = vmatmul.bf16.gmra.mxu2 %v8195_v49  ;;  %v2438_v6 = vadd.f32 %v2437_v4, %v2268_v56  ;;  %v7137_v56 = vld [vmem:[#allocation3 + $0x110] sm:$0xf]  ;;  %v7802_v63 = vld [vmem:[#allocation3 + $0x114] sm:$0xf0]  ;;  %v7801_v2 = vld [vmem:[#allocation3 + $0x114] sm:$0xf] }
 0x120   :  { %v7139_v4 = vld [vmem:[#allocation3 + $0x118] sm:$0xf0] }
 0x121   :  { %2476 = vmatmul.bf16.gmra.mxu1 %v8197_v57  ;;  %6775 = vst [vmem:[#allocation8 + $0x1a0] sm:$0xff] %v6519_v5  ;;  %2814 = vmatmul.bf16.gmra.mxu3 %v8197_v57 }
 0x122   :  { %v2606_v7 = vpop.f32.mrf.mxu2 }
 0x124   :  { %v2775_v8 = vpop.f32.mrf.mxu3  ;;  %v2270_v9 = vpop.f32.mrf.mxu0 }
 0x125   :  { %v2776_v10 = vadd.f32 %v2775_v8, %v2606_v7 }
 0x126   :  { %v2439_v11 = vpop.f32.mrf.mxu1 }
 0x127   :  { %v6523_v12 = vpack.c.bf16 %v2776_v10, %v2438_v6  ;;  %v2440_v36 = vadd.f32 %v2439_v11, %v2270_v9  ;;  %v8211_v6 = vor.u32 %v7802_v63, %v7137_v56  ;;  %v8213_v9 = vor.u32 %v7801_v2, %v7139_v4  ;;  %v7848_v4 = vld [vmem:[#allocation6 + $0x8c] sm:$0xf] }
 0x129   :  { %6779 = vst [vmem:[#allocation8 + $0x1c0] sm:$0xff] %v6523_v12 }
 0x12a   :  { %v2608_v23 = vpop.f32.mrf.mxu2 }
 0x12c   :  { %v2777_v29 = vpop.f32.mrf.mxu3  ;;  %v2273_v34 = vpop.f32.mrf.mxu0 }
 0x12d   :  { %v2778_v37 = vadd.f32 %v2777_v29, %v2608_v23 }
 0x12e   :  { %v2442_v38 = vpop.f32.mrf.mxu1 }
 0x12f   :  { %v6527_v39 = vpack.c.bf16 %v2778_v37, %v2440_v36  ;;  %2312 = vmatmul.bf16.gmra.mxu0 %v8203_v28  ;;  %2650 = vmatmul.bf16.gmra.mxu2 %v8203_v28  ;;  %v2443_v40 = vadd.f32 %v2442_v38, %v2273_v34  ;;  %v7145_v37 = vld [vmem:[#allocation3 + $0x120] sm:$0xf]  ;;  %v7804_v38 = vld [vmem:[#allocation3 + $0x124] sm:$0xf0] }
 0x131   :  { %2481 = vmatmul.bf16.gmra.mxu1 %v8205_v35  ;;  %6783 = vst [vmem:[#allocation8 + $0x1e0] sm:$0xff] %v6527_v39  ;;  %2819 = vmatmul.bf16.gmra.mxu3 %v8205_v35  ;;  %v7803_v39 = vld [vmem:[#allocation3 + $0x124] sm:$0xf] }
 0x132   :  { %v2611_v41 = vpop.f32.mrf.mxu2 }
 0x134   :  { %v2780_v44 = vpop.f32.mrf.mxu3  ;;  %v2275_v45 = vpop.f32.mrf.mxu0 }
 0x135   :  { %v2781_v48 = vadd.f32 %v2780_v44, %v2611_v41  ;;  %v8219_v44 = vor.u32 %v7804_v38, %v7145_v37  ;;  %v7805_v37 = vld [vmem:[#allocation3 + $0x134] sm:$0xf]  ;;  %v7155_v38 = vld [vmem:[#allocation3 + $0x138] sm:$0xf0] }
 0x136   :  { %v2444_v50 = vpop.f32.mrf.mxu1 }
 0x137   :  { %v6531_v52 = vpack.c.bf16 %v2781_v48, %v2443_v40  ;;  %v2445_v10 = vadd.f32 %v2444_v50, %v2275_v45  ;;  %v7147_v40 = vld [vmem:[#allocation3 + $0x128] sm:$0xf0] }
 0x138   :  { %v8221_v50 = vor.u32 %v7803_v39, %v7147_v40  ;;  %v7329_v39 = vld [vmem:[#allocation6 + $0x88] sm:$0xf] }
 0x139   :  { %6787 = vst [vmem:[#allocation8 + $0x200] sm:$0xff] %v6531_v52  ;;  %v7852_v40 = vld [vmem:[#allocation6 + $0xa4] sm:$0xf0] }
 0x13a   :  { %v2613_v5 = vpop.f32.mrf.mxu2 }
 0x13c   :  { %v2782_v7 = vpop.f32.mrf.mxu3  ;;  %v2278_v8 = vpop.f32.mrf.mxu0 }
 0x13d   :  { %v2783_v11 = vadd.f32 %v2782_v7, %v2613_v5  ;;  %v7331_v5 = vld [vmem:[#allocation6 + $0xa8] sm:$0xf0] }
 0x13e   :  { %v2447_v12 = vpop.f32.mrf.mxu1  ;;  %v7334_v7 = vor.u32 %v7848_v4, %v7331_v5  ;;  %v8229_v5 = vor.u32 %v7805_v37, %v7155_v38  ;;  %v7807_v37 = vld [vmem:[#allocation3 + $0x144] sm:$0xf]  ;;  %v7163_v38 = vld [vmem:[#allocation3 + $0x148] sm:$0xf0] }
 0x13f   :  { %v6535_v13 = vpack.c.bf16 %v2783_v11, %v2445_v10  ;;  %2317 = vmatmul.bf16.gmra.mxu0 %v8211_v6  ;;  %2655 = vmatmul.bf16.gmra.mxu2 %v8211_v6  ;;  %v2448_v17 = vadd.f32 %v2447_v12, %v2278_v8  ;;  %v7912_v8 = vld [vmem:[#allocation6 + $0x28c] sm:$0xf] }
 0x140   :  { %v7587_v10 = vld [vmem:[#allocation6 + $0x2a8] sm:$0xf0]  ;;  %3243 = vmatpush.bf16.msrb.mxu2 %v7334_v7 }
 0x141   :  { %2486 = vmatmul.bf16.gmra.mxu1 %v8213_v9  ;;  %6791 = vst [vmem:[#allocation8 + $0x220] sm:$0xff] %v6535_v13  ;;  %2824 = vmatmul.bf16.gmra.mxu3 %v8213_v9  ;;  %v7590_v13 = vor.u32 %v7912_v8, %v7587_v10 }
 0x142   :  { %v2616_v18 = vpop.f32.mrf.mxu2 }
 0x143   :  { %3412 = vmatpush.bf16.msrb.mxu3 %v7590_v13 }
 0x144   :  { %v2785_v22 = vpop.f32.mrf.mxu3  ;;  %v2280_v23 = vpop.f32.mrf.mxu0 }
 0x145   :  { %v2786_v29 = vadd.f32 %v2785_v22, %v2616_v18 }
 0x146   :  { %v2449_v34 = vpop.f32.mrf.mxu1 }
 0x147   :  { %v6539_v36 = vpack.c.bf16 %v2786_v29, %v2448_v17  ;;  %v2450_v52 = vadd.f32 %v2449_v34, %v2280_v23  ;;  %v7153_v34 = vld [vmem:[#allocation3 + $0x130] sm:$0xf] }
 0x149   :  { %6795 = vst [vmem:[#allocation8 + $0x240] sm:$0xff] %v6539_v36  ;;  %v7806_v36 = vld [vmem:[#allocation3 + $0x134] sm:$0xf0] }
 0x14a   :  { %v2618_v41 = vpop.f32.mrf.mxu2 }
 0x14c   :  { %v2787_v45 = vpop.f32.mrf.mxu3  ;;  %v2283_v48 = vpop.f32.mrf.mxu0 }
 0x14d   :  { %v2788_v56 = vadd.f32 %v2787_v45, %v2618_v41  ;;  %v7330_v41 = vor.u32 %v7852_v40, %v7329_v39  ;;  %v7585_v45 = vld [vmem:[#allocation6 + $0x288] sm:$0xf] }
 0x14e   :  { %v2452_v63 = vpop.f32.mrf.mxu1 }
 0x14f   :  { %v6543_v2 = vpack.c.bf16 %v2788_v56, %v2450_v52  ;;  %2322 = vmatmul.bf16.gmra.mxu0 %v8219_v44  ;;  %2660 = vmatmul.bf16.gmra.mxu2 %v8219_v44  ;;  %v2453_v11 = vadd.f32 %v2452_v63, %v2283_v48  ;;  %v7916_v52 = vld [vmem:[#allocation6 + $0x2a4] sm:$0xf0]  ;;  %v8227_v56 = vor.u32 %v7806_v36, %v7153_v34 }
 0x150   :  { %v7586_v63 = vor.u32 %v7916_v52, %v7585_v45  ;;  %2905 = vmatpush.bf16.msrb.mxu0 %v7330_v41  ;;  %v7808_v36 = vld [vmem:[#allocation3 + $0x144] sm:$0xf0]  ;;  %v8237_v52 = vor.u32 %v7807_v37, %v7163_v38 }
 0x151   :  { %2491 = vmatmul.bf16.gmra.mxu1 %v8221_v50  ;;  %6799 = vst [vmem:[#allocation8 + $0x260] sm:$0xff] %v6543_v2  ;;  %2829 = vmatmul.bf16.gmra.mxu3 %v8221_v50 }
 0x152   :  { %v2621_v12 = vpop.f32.mrf.mxu2  ;;  %3074 = vmatpush.bf16.msrb.mxu1 %v7586_v63 }
 0x154   :  { %v2790_v17 = vpop.f32.mrf.mxu3  ;;  %v2285_v18 = vpop.f32.mrf.mxu0 }
 0x155   :  { %v2791_v22 = vadd.f32 %v2790_v17, %v2621_v12 }
 0x156   :  { %v2454_v23 = vpop.f32.mrf.mxu1 }
 0x157   :  { %v6547_v29 = vpack.c.bf16 %v2791_v22, %v2453_v11  ;;  %v2455_v7 = vadd.f32 %v2454_v23, %v2285_v18  ;;  %v7161_v23 = vld [vmem:[#allocation3 + $0x140] sm:$0xf] }
 0x158   :  { %v8235_v40 = vor.u32 %v7808_v36, %v7161_v23 }
 0x159   :  { %6803 = vst [vmem:[#allocation8 + $0x280] sm:$0xff] %v6547_v29 }
 0x15a   :  { %v2623_v48 = vpop.f32.mrf.mxu2 }
 0x15c   :  { %v2792_v2 = vpop.f32.mrf.mxu3  ;;  %v2288_v4 = vpop.f32.mrf.mxu0 }
 0x15d   :  { %v2793_v8 = vadd.f32 %v2792_v2, %v2623_v48 }
 0x15e   :  { %v2457_v10 = vpop.f32.mrf.mxu1 }
 0x15f   :  { %v6551_v11 = vpack.c.bf16 %v2793_v8, %v2455_v7  ;;  %2327 = vmatmul.bf16.gmra.mxu0 %v8227_v56  ;;  %2665 = vmatmul.bf16.gmra.mxu2 %v8227_v56  ;;  %v2458_v12 = vadd.f32 %v2457_v10, %v2288_v4 }
 0x161   :  { %2496 = vmatmul.bf16.gmra.mxu1 %v8229_v5  ;;  %6807 = vst [vmem:[#allocation8 + $0x2a0] sm:$0xff] %v6551_v11  ;;  %2834 = vmatmul.bf16.gmra.mxu3 %v8229_v5 }
 0x162   :  { %v2626_v13 = vpop.f32.mrf.mxu2 }
 0x164   :  { %v2795_v17 = vpop.f32.mrf.mxu3  ;;  %v2290_v22 = vpop.f32.mrf.mxu0 }
 0x165   :  { %v2796_v29 = vadd.f32 %v2795_v17, %v2626_v13 }
 0x166   :  { %v2459_v34 = vpop.f32.mrf.mxu1 }
 0x167   :  { %v6555_v18 = vpack.c.bf16 %v2796_v29, %v2458_v12  ;;  %v2460_v48 = vadd.f32 %v2459_v34, %v2290_v22  ;;  %v7169_v22 = vld [vmem:[#allocation3 + $0x150] sm:$0xf]  ;;  %v7810_v29 = vld [vmem:[#allocation3 + $0x154] sm:$0xf0]  ;;  %v7809_v34 = vld [vmem:[#allocation3 + $0x154] sm:$0xf] }
 0x168   :  { %v8243_v36 = vor.u32 %v7810_v29, %v7169_v22  ;;  %v7811_v22 = vld [vmem:[#allocation3 + $0x164] sm:$0xf]  ;;  %v7179_v29 = vld [vmem:[#allocation3 + $0x168] sm:$0xf0] }
 0x169   :  { %6811 = vst [vmem:[#allocation8 + $0x2c0] sm:$0xff] %v6555_v18  ;;  %v7171_v18 = vld [vmem:[#allocation3 + $0x158] sm:$0xf0] }
 0x16a   :  { %v2628_v39 = vpop.f32.mrf.mxu2  ;;  %8807 = vst [vmem:[#allocation14_spill] sm:$0xff] %v8243_v36 }
 0x16c   :  { %v2797_v41 = vpop.f32.mrf.mxu3  ;;  %v2293_v45 = vpop.f32.mrf.mxu0 }
 0x16d   :  { %v2798_v63 = vadd.f32 %v2797_v41, %v2628_v39  ;;  %v8245_v39 = vor.u32 %v7809_v34, %v7171_v18 }
 0x16e   :  { %v2462_v2 = vpop.f32.mrf.mxu1 }
 0x16f   :  { %v6559_v4 = vpack.c.bf16 %v2798_v63, %v2460_v48  ;;  %2332 = vmatmul.bf16.gmra.mxu0 %v8235_v40  ;;  %2670 = vmatmul.bf16.gmra.mxu2 %v8235_v40  ;;  %v2463_v7 = vadd.f32 %v2462_v2, %v2293_v45  ;;  %8808 = vst [vmem:[#allocation15_spill] sm:$0xff] %v8245_v39 }
 0x171   :  { %2501 = vmatmul.bf16.gmra.mxu1 %v8237_v52  ;;  %6815 = vst [vmem:[#allocation8 + $0x2e0] sm:$0xff] %v6559_v4  ;;  %2839 = vmatmul.bf16.gmra.mxu3 %v8237_v52 }
 0x172   :  { %v2631_v8 = vpop.f32.mrf.mxu2 }
 0x174   :  { %v2800_v10 = vpop.f32.mrf.mxu3  ;;  %v2295_v11 = vpop.f32.mrf.mxu0 }
 0x175   :  { %v2801_v12 = vadd.f32 %v2800_v10, %v2631_v8 }
 0x176   :  { %v2464_v13 = vpop.f32.mrf.mxu1 }
 0x177   :  { %v6563_v17 = vpack.c.bf16 %v2801_v12, %v2463_v7  ;;  %v2465_v41 = vadd.f32 %v2464_v13, %v2295_v11  ;;  %v7177_v11 = vld [vmem:[#allocation3 + $0x160] sm:$0xf]  ;;  %v7812_v13 = vld [vmem:[#allocation3 + $0x164] sm:$0xf0] }
 0x178   :  { %v8251_v18 = vor.u32 %v7812_v13, %v7177_v11 }
 0x179   :  { %6819 = vst [vmem:[#allocation8 + $0x300] sm:$0xff] %v6563_v17 }
 0x17a   :  { %v2633_v23 = vpop.f32.mrf.mxu2  ;;  %8809 = vst [vmem:[#allocation16_spill] sm:$0xff] %v8251_v18 }
 0x17c   :  { %v2802_v37 = vpop.f32.mrf.mxu3  ;;  %v2298_v38 = vpop.f32.mrf.mxu0 }
 0x17d   :  { %v2803_v45 = vadd.f32 %v2802_v37, %v2633_v23 }
 0x17e   :  { %v2467_v48 = vpop.f32.mrf.mxu1 }
 0x17f   :  { %v6567_v63 = vpack.c.bf16 %v2803_v45, %v2465_v41  ;;  %2337 = vmatmul.bf16.gmra.mxu0 %v8243_v36  ;;  %2675 = vmatmul.bf16.gmra.mxu2 %v8243_v36  ;;  %v2468_v2 = vadd.f32 %v2467_v48, %v2298_v38  ;;  %v8253_v41 = vor.u32 %v7811_v22, %v7179_v29  ;;  %v7908_v36 = vld [vmem:[#allocation6 + $0x264] sm:$0xf0] }
 0x181   :  { %2506 = vmatmul.bf16.gmra.mxu1 %v8245_v39  ;;  %6823 = vst [vmem:[#allocation8 + $0x320] sm:$0xff] %v6567_v63  ;;  %2844 = vmatmul.bf16.gmra.mxu3 %v8245_v39  ;;  %v7844_v39 = vld [vmem:[#allocation6 + $0x64] sm:$0xf0] }
 0x182   :  { %v2636_v4 = vpop.f32.mrf.mxu2  ;;  %8810 = vst [vmem:[#allocation17_spill] sm:$0xff] %v8253_v41 }
 0x184   :  { %v2805_v7 = vpop.f32.mrf.mxu3  ;;  %v2300_v8 = vpop.f32.mrf.mxu0 }
 0x185   :  { %v2806_v10 = vadd.f32 %v2805_v7, %v2636_v4  ;;  %v7299_v4 = vld [vmem:[#allocation6 + $0x68] sm:$0xf0] }
 0x186   :  { %v2469_v12 = vpop.f32.mrf.mxu1 }
 0x187   :  { %v6571_v17 = vpack.c.bf16 %v2806_v10, %v2468_v2  ;;  %v2470_v45 = vadd.f32 %v2469_v12, %v2300_v8  ;;  %v7840_v2 = vld [vmem:[#allocation6 + $0x4c] sm:$0xf] }
 0x188   :  { %v7302_v7 = vor.u32 %v7840_v2, %v7299_v4  ;;  %v7904_v10 = vld [vmem:[#allocation6 + $0x24c] sm:$0xf]  ;;  %v7553_v4 = vld [vmem:[#allocation6 + $0x248] sm:$0xf] }
 0x189   :  { %6827 = vst [vmem:[#allocation8 + $0x340] sm:$0xff] %v6571_v17  ;;  %v7555_v17 = vld [vmem:[#allocation6 + $0x268] sm:$0xf0] }
 0x18a   :  { %v2638_v34 = vpop.f32.mrf.mxu2  ;;  %v7558_v8 = vor.u32 %v7904_v10, %v7555_v17  ;;  %3244 = vmatpush.bf16.msrb.mxu2 %v7302_v7  ;;  %v7554_v10 = vor.u32 %v7908_v36, %v7553_v4 }
 0x18c   :  { %v2807_v23 = vpop.f32.mrf.mxu3  ;;  %v2303_v37 = vpop.f32.mrf.mxu0  ;;  %3413 = vmatpush.bf16.msrb.mxu3 %v7558_v8  ;;  %3075 = vmatpush.bf16.msrb.mxu1 %v7554_v10 }
 0x18d   :  { %v2808_v38 = vadd.f32 %v2807_v23, %v2638_v34 }
 0x18e   :  { %v2472_v48 = vpop.f32.mrf.mxu1 }
 0x18f   :  { %v6575_v63 = vpack.c.bf16 %v2808_v38, %v2470_v45  ;;  %2342 = vmatmul.bf16.gmra.mxu0 %v8251_v18  ;;  %2680 = vmatmul.bf16.gmra.mxu2 %v8251_v18  ;;  %v2473_v11 = vadd.f32 %v2472_v48, %v2303_v37  ;;  %v7185_v45 = vld [vmem:[#allocation3 + $0x170] sm:$0xf]  ;;  %v7814_v38 = vld [vmem:[#allocation3 + $0x174] sm:$0xf0]  ;;  %v7187_v18 = vld [vmem:[#allocation3 + $0x178] sm:$0xf0] }
 0x190   :  { %v8259_v48 = vor.u32 %v7814_v38, %v7185_v45  ;;  %v7816_v38 = vld [vmem:[#allocation3 + $0x184] sm:$0xf0] }
 0x191   :  { %2511 = vmatmul.bf16.gmra.mxu1 %v8253_v41  ;;  %6831 = vst [vmem:[#allocation8 + $0x360] sm:$0xff] %v6575_v63  ;;  %2849 = vmatmul.bf16.gmra.mxu3 %v8253_v41  ;;  %v7813_v63 = vld [vmem:[#allocation3 + $0x174] sm:$0xf]  ;;  %v7297_v41 = vld [vmem:[#allocation6 + $0x48] sm:$0xf] }
 0x192   :  { %v2641_v13 = vpop.f32.mrf.mxu2  ;;  %v7298_v2 = vor.u32 %v7844_v39, %v7297_v41  ;;  %8811 = vst [vmem:[#allocation18_spill] sm:$0xff] %v8259_v48 }
 0x194   :  { %v2810_v12 = vpop.f32.mrf.mxu3  ;;  %v2305_v22 = vpop.f32.mrf.mxu0  ;;  %2906 = vmatpush.bf16.msrb.mxu0 %v7298_v2  ;;  %v7195_v2 = vld [vmem:[#allocation3 + $0x188] sm:$0xf0] }
 0x195   :  { %v2811_v29 = vadd.f32 %v2810_v12, %v2641_v13  ;;  %v8261_v13 = vor.u32 %v7813_v63, %v7187_v18  ;;  %v7815_v63 = vld [vmem:[#allocation3 + $0x184] sm:$0xf] }
 0x196   :  { %v2474_v34 = vpop.f32.mrf.mxu1 }
 0x197   :  { %v6579_v23 = vpack.c.bf16 %v2811_v29, %v2473_v11  ;;  %8812 = vst [vmem:[#allocation19_spill] sm:$0xff] %v8261_v13  ;;  %v2475_v11 = vadd.f32 %v2474_v34, %v2305_v22  ;;  %v7193_v34 = vld [vmem:[#allocation3 + $0x180] sm:$0xf] }
 0x199   :  { %6835 = vst [vmem:[#allocation8 + $0x380] sm:$0xff] %v6579_v23 }
 0x19a   :  { %v2643_v37 = vpop.f32.mrf.mxu2 }
 0x19c   :  { %v2812_v17 = vpop.f32.mrf.mxu3  ;;  %v2308_v7 = vpop.f32.mrf.mxu0 }
 0x19d   :  { %v2813_v8 = vadd.f32 %v2812_v17, %v2643_v37  ;;  %v8267_v37 = vor.u32 %v7816_v38, %v7193_v34 }
 0x19e   :  { %v2477_v12 = vpop.f32.mrf.mxu1 }
 0x19f   :  { %v6583_v29 = vpack.c.bf16 %v2813_v8, %v2475_v11  ;;  %2347 = vmatmul.bf16.gmra.mxu0 %v8259_v48  ;;  %2685 = vmatmul.bf16.gmra.mxu2 %v8259_v48  ;;  %v2478_v36 = vadd.f32 %v2477_v12, %v2308_v7  ;;  %8813 = vst [vmem:[#allocation20_spill] sm:$0xff] %v8267_v37  ;;  %v7900_v48 = vld [vmem:[#allocation6 + $0x224] sm:$0xf0] }
 0x1a0   :  { %v8269_v11 = vor.u32 %v7815_v63, %v7195_v2  ;;  %v7817_v63 = vld [vmem:[#allocation3 + $0x194] sm:$0xf]  ;;  %v7203_v2 = vld [vmem:[#allocation3 + $0x198] sm:$0xf0] }
 0x1a1   :  { %2516 = vmatmul.bf16.gmra.mxu1 %v8261_v13  ;;  %6839 = vst [vmem:[#allocation8 + $0x3a0] sm:$0xff] %v6583_v29  ;;  %2854 = vmatmul.bf16.gmra.mxu3 %v8261_v13  ;;  %v7836_v13 = vld [vmem:[#allocation6 + $0x24] sm:$0xf0] }
 0x1a2   :  { %v2646_v39 = vpop.f32.mrf.mxu2  ;;  %8814 = vst [vmem:[#allocation21_spill] sm:$0xff] %v8269_v11 }
 0x1a4   :  { %v2815_v41 = vpop.f32.mrf.mxu3  ;;  %v2310_v18 = vpop.f32.mrf.mxu0 }
 0x1a5   :  { %v2816_v23 = vadd.f32 %v2815_v41, %v2646_v39 }
 0x1a6   :  { %v2479_v45 = vpop.f32.mrf.mxu1 }
 0x1a7   :  { %v6587_v22 = vpack.c.bf16 %v2816_v23, %v2478_v36  ;;  %v2480_v8 = vadd.f32 %v2479_v45, %v2310_v18  ;;  %v7201_v18 = vld [vmem:[#allocation3 + $0x190] sm:$0xf]  ;;  %v7818_v45 = vld [vmem:[#allocation3 + $0x194] sm:$0xf0] }
 0x1a9   :  { %6843 = vst [vmem:[#allocation8 + $0x3c0] sm:$0xff] %v6587_v22 }
 0x1aa   :  { %v2648_v4 = vpop.f32.mrf.mxu2 }
 0x1ac   :  { %v2817_v10 = vpop.f32.mrf.mxu3  ;;  %v2313_v17 = vpop.f32.mrf.mxu0 }
 0x1ad   :  { %v2818_v7 = vadd.f32 %v2817_v10, %v2648_v4  ;;  %v8275_v10 = vor.u32 %v7818_v45, %v7201_v18 }
 0x1ae   :  { %v2482_v12 = vpop.f32.mrf.mxu1 }
 0x1af   :  { %v6591_v29 = vpack.c.bf16 %v2818_v7, %v2480_v8  ;;  %2352 = vmatmul.bf16.gmra.mxu0 %v8267_v37  ;;  %2690 = vmatmul.bf16.gmra.mxu2 %v8267_v37  ;;  %v2483_v36 = vadd.f32 %v2482_v12, %v2313_v17  ;;  %8815 = vst [vmem:[#allocation22_spill] sm:$0xff] %v8275_v10 }
 0x1b1   :  { %2521 = vmatmul.bf16.gmra.mxu1 %v8269_v11  ;;  %6847 = vst [vmem:[#allocation8 + $0x3e0] sm:$0xff] %v6591_v29  ;;  %2859 = vmatmul.bf16.gmra.mxu3 %v8269_v11  ;;  %v8277_v29 = vor.u32 %v7817_v63, %v7203_v2  ;;  %v7211_v63 = vld [vmem:[#allocation3 + $0x1a8] sm:$0xf0] }
 0x1b2   :  { %v2651_v39 = vpop.f32.mrf.mxu2 }
 0x1b3   :  { %8816 = vst [vmem:[#allocation23_spill] sm:$0xff] %v8277_v29 }
 0x1b4   :  { %v2820_v41 = vpop.f32.mrf.mxu3  ;;  %v2315_v23 = vpop.f32.mrf.mxu0 }
 0x1b5   :  { %v2821_v22 = vadd.f32 %v2820_v41, %v2651_v39 }
 0x1b6   :  { %v2484_v34 = vpop.f32.mrf.mxu1 }
 0x1b7   :  { %v6595_v38 = vpack.c.bf16 %v2821_v22, %v2483_v36  ;;  %v2485_v11 = vadd.f32 %v2484_v34, %v2315_v23  ;;  %v7209_v23 = vld [vmem:[#allocation3 + $0x1a0] sm:$0xf]  ;;  %v7820_v34 = vld [vmem:[#allocation3 + $0x1a4] sm:$0xf0] }
 0x1b9   :  { %6851 = vst [vmem:[#allocation8 + $0x400] sm:$0xff] %v6595_v38 }
 0x1ba   :  { %v2653_v4 = vpop.f32.mrf.mxu2 }
 0x1bc   :  { %v2822_v8 = vpop.f32.mrf.mxu3  ;;  %v2318_v7 = vpop.f32.mrf.mxu0 }
 0x1bd   :  { %v2823_v17 = vadd.f32 %v2822_v8, %v2653_v4  ;;  %v8283_v4 = vor.u32 %v7820_v34, %v7209_v23 }
 0x1be   :  { %v2487_v12 = vpop.f32.mrf.mxu1 }
 0x1bf   :  { %v6599_v37 = vpack.c.bf16 %v2823_v17, %v2485_v11  ;;  %2357 = vmatmul.bf16.gmra.mxu0 %v8275_v10  ;;  %2695 = vmatmul.bf16.gmra.mxu2 %v8275_v10  ;;  %v2488_v36 = vadd.f32 %v2487_v12, %v2318_v7  ;;  %v7819_v11 = vld [vmem:[#allocation3 + $0x1a4] sm:$0xf]  ;;  %8817 = vst [vmem:[#allocation24_spill] sm:$0xff] %v8283_v4 }
 0x1c1   :  { %2526 = vmatmul.bf16.gmra.mxu1 %v8277_v29  ;;  %6855 = vst [vmem:[#allocation8 + $0x420] sm:$0xff] %v6599_v37  ;;  %2864 = vmatmul.bf16.gmra.mxu3 %v8277_v29  ;;  %v8285_v37 = vor.u32 %v7819_v11, %v7211_v63 }
 0x1c2   :  { %v2656_v39 = vpop.f32.mrf.mxu2 }
 0x1c3   :  { %8818 = vst [vmem:[#allocation25_spill] sm:$0xff] %v8285_v37 }
 0x1c4   :  { %v2825_v41 = vpop.f32.mrf.mxu3  ;;  %v2320_v22 = vpop.f32.mrf.mxu0 }
 0x1c5   :  { %v2826_v38 = vadd.f32 %v2825_v41, %v2656_v39  ;;  %v7267_v39 = vld [vmem:[#allocation6 + $0x28] sm:$0xf0] }
 0x1c6   :  { %v2489_v18 = vpop.f32.mrf.mxu1 }
 0x1c7   :  { %v6603_v45 = vpack.c.bf16 %v2826_v38, %v2488_v36  ;;  %v2490_v29 = vadd.f32 %v2489_v18, %v2320_v22  ;;  %v7832_v36 = vld [vmem:[#allocation6 + $0xc] sm:$0xf] }
 0x1c8   :  { %v7270_v41 = vor.u32 %v7832_v36, %v7267_v39  ;;  %v7896_v38 = vld [vmem:[#allocation6 + $0x20c] sm:$0xf]  ;;  %v7521_v39 = vld [vmem:[#allocation6 + $0x208] sm:$0xf] }
 0x1c9   :  { %6859 = vst [vmem:[#allocation8 + $0x440] sm:$0xff] %v6603_v45  ;;  %v7523_v45 = vld [vmem:[#allocation6 + $0x228] sm:$0xf0] }
 0x1ca   :  { %v2658_v2 = vpop.f32.mrf.mxu2  ;;  %v7526_v22 = vor.u32 %v7896_v38, %v7523_v45  ;;  %3245 = vmatpush.bf16.msrb.mxu2 %v7270_v41  ;;  %v7522_v38 = vor.u32 %v7900_v48, %v7521_v39 }
 0x1cc   :  { %v2827_v8 = vpop.f32.mrf.mxu3  ;;  %v2323_v17 = vpop.f32.mrf.mxu0  ;;  %3414 = vmatpush.bf16.msrb.mxu3 %v7526_v22  ;;  %3076 = vmatpush.bf16.msrb.mxu1 %v7522_v38 }
 0x1cd   :  { %v2828_v7 = vadd.f32 %v2827_v8, %v2658_v2  ;;  %v7217_v8 = vld [vmem:[#allocation3 + $0x1b0] sm:$0xf] }
 0x1ce   :  { %v2492_v12 = vpop.f32.mrf.mxu1 }
 0x1cf   :  { %v6607_v10 = vpack.c.bf16 %v2828_v7, %v2490_v29  ;;  %2362 = vmatmul.bf16.gmra.mxu0 %v8283_v4  ;;  %2700 = vmatmul.bf16.gmra.mxu2 %v8283_v4  ;;  %v2493_v23 = vadd.f32 %v2492_v12, %v2323_v17  ;;  %v7822_v7 = vld [vmem:[#allocation3 + $0x1b4] sm:$0xf0]  ;;  %v7219_v4 = vld [vmem:[#allocation3 + $0x1b8] sm:$0xf0] }
 0x1d0   :  { %v8291_v12 = vor.u32 %v7822_v7, %v7217_v8  ;;  %v7824_v7 = vld [vmem:[#allocation3 + $0x1c4] sm:$0xf0] }
 0x1d1   :  { %2531 = vmatmul.bf16.gmra.mxu1 %v8285_v37  ;;  %6863 = vst [vmem:[#allocation8 + $0x460] sm:$0xff] %v6607_v10  ;;  %2869 = vmatmul.bf16.gmra.mxu3 %v8285_v37  ;;  %v7821_v10 = vld [vmem:[#allocation3 + $0x1b4] sm:$0xf]  ;;  %v7265_v37 = vld [vmem:[#allocation6 + $0x8] sm:$0xf] }
 0x1d2   :  { %v2661_v34 = vpop.f32.mrf.mxu2  ;;  %v7266_v36 = vor.u32 %v7836_v13, %v7265_v37  ;;  %8819 = vst [vmem:[#allocation26_spill] sm:$0xff] %v8291_v12 }
 0x1d4   :  { %v2830_v18 = vpop.f32.mrf.mxu3  ;;  %v2325_v11 = vpop.f32.mrf.mxu0  ;;  %2907 = vmatpush.bf16.msrb.mxu0 %v7266_v36  ;;  %v7227_v36 = vld [vmem:[#allocation3 + $0x1c8] sm:$0xf0] }
 0x1d5   :  { %v2831_v29 = vadd.f32 %v2830_v18, %v2661_v34  ;;  %v8293_v34 = vor.u32 %v7821_v10, %v7219_v4  ;;  %v7823_v10 = vld [vmem:[#allocation3 + $0x1c4] sm:$0xf] }
 0x1d6   :  { %v2494_v63 = vpop.f32.mrf.mxu1 }
 0x1d7   :  { %v6611_v2 = vpack.c.bf16 %v2831_v29, %v2493_v23  ;;  %8820 = vst [vmem:[#allocation27_spill] sm:$0xff] %v8293_v34  ;;  %v2495_v23 = vadd.f32 %v2494_v63, %v2325_v11  ;;  %v7225_v63 = vld [vmem:[#allocation3 + $0x1c0] sm:$0xf] }
 0x1d9   :  { %6867 = vst [vmem:[#allocation8 + $0x480] sm:$0xff] %v6611_v2 }
 0x1da   :  { %v2663_v17 = vpop.f32.mrf.mxu2 }
 0x1dc   :  { %v2832_v45 = vpop.f32.mrf.mxu3  ;;  %v2328_v41 = vpop.f32.mrf.mxu0 }
 0x1dd   :  { %v2833_v22 = vadd.f32 %v2832_v45, %v2663_v17  ;;  %v8299_v17 = vor.u32 %v7824_v7, %v7225_v63 }
 0x1de   :  { %v2497_v18 = vpop.f32.mrf.mxu1 }
 0x1df   :  { %v6615_v29 = vpack.c.bf16 %v2833_v22, %v2495_v23  ;;  %2367 = vmatmul.bf16.gmra.mxu0 %v8291_v12  ;;  %2705 = vmatmul.bf16.gmra.mxu2 %v8291_v12  ;;  %v2498_v48 = vadd.f32 %v2497_v18, %v2328_v41  ;;  %8821 = vst [vmem:[#allocation28_spill] sm:$0xff] %v8299_v17  ;;  %v7957_v12 = vld [vmem:[#allocation6 + $0x3ec] sm:$0xf0] }
 0x1e0   :  { %v8301_v23 = vor.u32 %v7823_v10, %v7227_v36  ;;  %v7825_v10 = vld [vmem:[#allocation3 + $0x1d4] sm:$0xf]  ;;  %v7235_v36 = vld [vmem:[#allocation3 + $0x1d8] sm:$0xf0] }
 0x1e1   :  { %2536 = vmatmul.bf16.gmra.mxu1 %v8293_v34  ;;  %6871 = vst [vmem:[#allocation8 + $0x4a0] sm:$0xff] %v6615_v29  ;;  %2874 = vmatmul.bf16.gmra.mxu3 %v8293_v34  ;;  %v7893_v34 = vld [vmem:[#allocation6 + $0x1ec] sm:$0xf0] }
 0x1e2   :  { %v2666_v13 = vpop.f32.mrf.mxu2  ;;  %8822 = vst [vmem:[#allocation29_spill] sm:$0xff] %v8301_v23 }
 0x1e4   :  { %v2835_v37 = vpop.f32.mrf.mxu3  ;;  %v2330_v4 = vpop.f32.mrf.mxu0 }
 0x1e5   :  { %v2836_v2 = vadd.f32 %v2835_v37, %v2666_v13 }
 0x1e6   :  { %v2499_v8 = vpop.f32.mrf.mxu1 }
 0x1e7   :  { %v6619_v11 = vpack.c.bf16 %v2836_v2, %v2498_v48  ;;  %v2500_v22 = vadd.f32 %v2499_v8, %v2330_v4  ;;  %v7233_v4 = vld [vmem:[#allocation3 + $0x1d0] sm:$0xf]  ;;  %v7826_v8 = vld [vmem:[#allocation3 + $0x1d4] sm:$0xf0] }
 0x1e9   :  { %6875 = vst [vmem:[#allocation8 + $0x4c0] sm:$0xff] %v6619_v11 }
 0x1ea   :  { %v2668_v39 = vpop.f32.mrf.mxu2 }
 0x1ec   :  { %v2837_v38 = vpop.f32.mrf.mxu3  ;;  %v2333_v45 = vpop.f32.mrf.mxu0 }
 0x1ed   :  { %v2838_v41 = vadd.f32 %v2837_v38, %v2668_v39  ;;  %v8307_v38 = vor.u32 %v7826_v8, %v7233_v4 }
 0x1ee   :  { %v2502_v18 = vpop.f32.mrf.mxu1 }
 0x1ef   :  { %v6623_v29 = vpack.c.bf16 %v2838_v41, %v2500_v22  ;;  %2372 = vmatmul.bf16.gmra.mxu0 %v8299_v17  ;;  %2710 = vmatmul.bf16.gmra.mxu2 %v8299_v17  ;;  %v2503_v48 = vadd.f32 %v2502_v18, %v2333_v45  ;;  %8823 = vst [vmem:[#allocation30_spill] sm:$0xff] %v8307_v38 }
 0x1f1   :  { %2541 = vmatmul.bf16.gmra.mxu1 %v8301_v23  ;;  %6879 = vst [vmem:[#allocation8 + $0x4e0] sm:$0xff] %v6623_v29  ;;  %2879 = vmatmul.bf16.gmra.mxu3 %v8301_v23  ;;  %v8309_v29 = vor.u32 %v7825_v10, %v7235_v36  ;;  %v7243_v10 = vld [vmem:[#allocation3 + $0x1e8] sm:$0xf0] }
 0x1f2   :  { %v2671_v13 = vpop.f32.mrf.mxu2 }
 0x1f3   :  { %8824 = vst [vmem:[#allocation31_spill] sm:$0xff] %v8309_v29 }
 0x1f4   :  { %v2840_v37 = vpop.f32.mrf.mxu3  ;;  %v2335_v2 = vpop.f32.mrf.mxu0 }
 0x1f5   :  { %v2841_v11 = vadd.f32 %v2840_v37, %v2671_v13 }
 0x1f6   :  { %v2504_v63 = vpop.f32.mrf.mxu1 }
 0x1f7   :  { %v6627_v7 = vpack.c.bf16 %v2841_v11, %v2503_v48  ;;  %v2505_v23 = vadd.f32 %v2504_v63, %v2335_v2  ;;  %v7241_v2 = vld [vmem:[#allocation3 + $0x1e0] sm:$0xf]  ;;  %v7828_v63 = vld [vmem:[#allocation3 + $0x1e4] sm:$0xf0] }
 0x1f9   :  { %6883 = vst [vmem:[#allocation8 + $0x500] sm:$0xff] %v6627_v7 }
 0x1fa   :  { %v2673_v39 = vpop.f32.mrf.mxu2 }
 0x1fc   :  { %v2842_v22 = vpop.f32.mrf.mxu3  ;;  %v2338_v41 = vpop.f32.mrf.mxu0 }
 0x1fd   :  { %v2843_v45 = vadd.f32 %v2842_v22, %v2673_v39  ;;  %v8315_v39 = vor.u32 %v7828_v63, %v7241_v2 }
 0x1fe   :  { %v2507_v18 = vpop.f32.mrf.mxu1 }
 0x1ff   :  { %v6631_v17 = vpack.c.bf16 %v2843_v45, %v2505_v23  ;;  %2377 = vmatmul.bf16.gmra.mxu0 %v8307_v38  ;;  %2715 = vmatmul.bf16.gmra.mxu2 %v8307_v38  ;;  %v2508_v48 = vadd.f32 %v2507_v18, %v2338_v41  ;;  %v7827_v23 = vld [vmem:[#allocation3 + $0x1e4] sm:$0xf]  ;;  %8825 = vst [vmem:[#allocation32_spill] sm:$0xff] %v8315_v39 }
 0x201   :  { %2546 = vmatmul.bf16.gmra.mxu1 %v8309_v29  ;;  %6887 = vst [vmem:[#allocation8 + $0x520] sm:$0xff] %v6631_v17  ;;  %2884 = vmatmul.bf16.gmra.mxu3 %v8309_v29  ;;  %v8317_v17 = vor.u32 %v7827_v23, %v7243_v10 }
 0x202   :  { %v2676_v13 = vpop.f32.mrf.mxu2 }
 0x203   :  { %8826 = vst [vmem:[#allocation33_spill] sm:$0xff] %v8317_v17 }
 0x204   :  { %v2845_v37 = vpop.f32.mrf.mxu3  ;;  %v2340_v11 = vpop.f32.mrf.mxu0 }
 0x205   :  { %v2846_v7 = vadd.f32 %v2845_v37, %v2676_v13  ;;  %v7499_v13 = vld [vmem:[#allocation6 + $0x1f0] sm:$0xf0] }
 0x206   :  { %v2509_v4 = vpop.f32.mrf.mxu1 }
 0x207   :  { %v6635_v8 = vpack.c.bf16 %v2846_v7, %v2508_v48  ;;  %v2510_v29 = vadd.f32 %v2509_v4, %v2340_v11  ;;  %v7889_v48 = vld [vmem:[#allocation6 + $0x1d4] sm:$0xf] }
 0x208   :  { %v7502_v37 = vor.u32 %v7889_v48, %v7499_v13  ;;  %v7953_v7 = vld [vmem:[#allocation6 + $0x3d4] sm:$0xf]  ;;  %v7753_v13 = vld [vmem:[#allocation6 + $0x3d0] sm:$0xf] }
 0x209   :  { %6891 = vst [vmem:[#allocation8 + $0x540] sm:$0xff] %v6635_v8  ;;  %v7755_v8 = vld [vmem:[#allocation6 + $0x3f0] sm:$0xf0] }
 0x20a   :  { %v2678_v36 = vpop.f32.mrf.mxu2  ;;  %v7758_v11 = vor.u32 %v7953_v7, %v7755_v8  ;;  %3914 = vmatpush.bf16.msra.mxu2 %v7502_v37  ;;  %v7754_v7 = vor.u32 %v7957_v12, %v7753_v13 }
 0x20c   :  { %v2847_v22 = vpop.f32.mrf.mxu3  ;;  %v2343_v45 = vpop.f32.mrf.mxu0  ;;  %4083 = vmatpush.bf16.msra.mxu3 %v7758_v11  ;;  %3745 = vmatpush.bf16.msra.mxu1 %v7754_v7 }
 0x20d   :  { %v2848_v41 = vadd.f32 %v2847_v22, %v2678_v36  ;;  %v7249_v22 = vld [vmem:[#allocation3 + $0x1f0] sm:$0xf] }
 0x20e   :  { %v2512_v18 = vpop.f32.mrf.mxu1 }
 0x20f   :  { %v6639_v38 = vpack.c.bf16 %v2848_v41, %v2510_v29  ;;  %2382 = vmatmul.bf16.gmra.mxu0 %v8315_v39  ;;  %2720 = vmatmul.bf16.gmra.mxu2 %v8315_v39  ;;  %v2513_v2 = vadd.f32 %v2512_v18, %v2343_v45  ;;  %v7830_v41 = vld [vmem:[#allocation3 + $0x1f4] sm:$0xf0]  ;;  %v7251_v39 = vld [vmem:[#allocation3 + $0x1f8] sm:$0xf0] }
 0x210   :  { %v8323_v18 = vor.u32 %v7830_v41, %v7249_v22 }
 0x211   :  { %2551 = vmatmul.bf16.gmra.mxu1 %v8317_v17  ;;  %6895 = vst [vmem:[#allocation8 + $0x560] sm:$0xff] %v6639_v38  ;;  %2889 = vmatmul.bf16.gmra.mxu3 %v8317_v17  ;;  %v7829_v38 = vld [vmem:[#allocation3 + $0x1f4] sm:$0xf]  ;;  %v7497_v17 = vld [vmem:[#allocation6 + $0x1d0] sm:$0xf] }
 0x212   :  { %v2681_v63 = vpop.f32.mrf.mxu2  ;;  %v7498_v48 = vor.u32 %v7893_v34, %v7497_v17 }
 0x214   :  { %v2850_v4 = vpop.f32.mrf.mxu3  ;;  %v2345_v23 = vpop.f32.mrf.mxu0  ;;  %3576 = vmatpush.bf16.msra.mxu0 %v7498_v48 }
 0x215   :  { %v2851_v29 = vadd.f32 %v2850_v4, %v2681_v63  ;;  %v8325_v63 = vor.u32 %v7829_v38, %v7251_v39 }
 0x216   :  { %v2514_v10 = vpop.f32.mrf.mxu1 }
 0x217   :  { %v6643_v36 = vpack.c.bf16 %v2851_v29, %v2513_v2  ;;  %v2515_v2 = vadd.f32 %v2514_v10, %v2345_v23 }
 0x219   :  { %6899 = vst [vmem:[#allocation8 + $0x580] sm:$0xff] %v6643_v36 }
 0x21a   :  { %v2683_v45 = vpop.f32.mrf.mxu2 }
 0x21c   :  { %v2852_v8 = vpop.f32.mrf.mxu3  ;;  %v2348_v37 = vpop.f32.mrf.mxu0 }
 0x21d   :  { %v2853_v11 = vadd.f32 %v2852_v8, %v2683_v45 }
 0x21e   :  { %v2517_v4 = vpop.f32.mrf.mxu1 }
 0x21f   :  { %v6647_v29 = vpack.c.bf16 %v2853_v11, %v2515_v2  ;;  %2387 = vmatmul.bf16.gmra.mxu0 %v8323_v18  ;;  %2725 = vmatmul.bf16.gmra.mxu2 %v8323_v18  ;;  %v2518_v12 = vadd.f32 %v2517_v4, %v2348_v37 }
 0x221   :  { %2556 = vmatmul.bf16.gmra.mxu1 %v8325_v63  ;;  %6903 = vst [vmem:[#allocation8 + $0x5a0] sm:$0xff] %v6647_v29  ;;  %2894 = vmatmul.bf16.gmra.mxu3 %v8325_v63 }
 0x222   :  { %v2686_v34 = vpop.f32.mrf.mxu2 }
 0x224   :  { %v2855_v17 = vpop.f32.mrf.mxu3  ;;  %v2350_v39 = vpop.f32.mrf.mxu0 }
 0x225   :  { %v2856_v36 = vadd.f32 %v2855_v17, %v2686_v34 }
 0x226   :  { %v2519_v22 = vpop.f32.mrf.mxu1 }
 0x227   :  { %v6651_v23 = vpack.c.bf16 %v2856_v36, %v2518_v12  ;;  %v2520_v48 = vadd.f32 %v2519_v22, %v2350_v39 }
 0x229   :  { %6907 = vst [vmem:[#allocation8 + $0x5c0] sm:$0xff] %v6651_v23 }
 0x22a   :  { %v2688_v10 = vpop.f32.mrf.mxu2 }
 0x22c   :  { %v2857_v41 = vpop.f32.mrf.mxu3  ;;  %v2353_v38 = vpop.f32.mrf.mxu0 }
 0x22d   :  { %v2858_v13 = vadd.f32 %v2857_v41, %v2688_v10 }
 0x22e   :  { %v2522_v45 = vpop.f32.mrf.mxu1 }
 0x22f   :  { %v6655_v7 = vpack.c.bf16 %v2858_v13, %v2520_v48  ;;  %2908 = vmatmul.bf16.vlgmr.msrb.gmra.mxu0 %v8075_v43  ;;  %3246 = vmatmul.bf16.vlgmr.msrb.gmra.mxu2 %v8075_v43  ;;  %v2523_v8 = vadd.f32 %v2522_v45, %v2353_v38 }
 0x231   :  { %3077 = vmatmul.bf16.vlgmr.msrb.gmra.mxu1 %v8077_v47  ;;  %6911 = vst [vmem:[#allocation8 + $0x5e0] sm:$0xff] %v6655_v7  ;;  %3415 = vmatmul.bf16.vlgmr.msrb.gmra.mxu3 %v8077_v47 }
 0x232   :  { %v2691_v37 = vpop.f32.mrf.mxu2 }
 0x234   :  { %v2860_v2 = vpop.f32.mrf.mxu3  ;;  %v2355_v11 = vpop.f32.mrf.mxu0 }
 0x235   :  { %v2861_v4 = vadd.f32 %v2860_v2, %v2691_v37 }
 0x236   :  { %v2524_v29 = vpop.f32.mrf.mxu1 }
 0x237   :  { %v6659_v12 = vpack.c.bf16 %v2861_v4, %v2523_v8  ;;  %v2525_v36 = vadd.f32 %v2524_v29, %v2355_v11 }
 0x239   :  { %6915 = vst [vmem:[#allocation8 + $0x600] sm:$0xff] %v6659_v12 }
 0x23a   :  { %v2693_v34 = vpop.f32.mrf.mxu2 }
 0x23c   :  { %v2862_v17 = vpop.f32.mrf.mxu3  ;;  %v2358_v39 = vpop.f32.mrf.mxu0 }
 0x23d   :  { %v2863_v22 = vadd.f32 %v2862_v17, %v2693_v34  ;;  %v7881_v17 = vld [vmem:[#allocation6 + $0x194] sm:$0xf] }
 0x23e   :  { %v2527_v23 = vpop.f32.mrf.mxu1 }
 0x23f   :  { %v6663_v10 = vpack.c.bf16 %v2863_v22, %v2525_v36  ;;  %2913 = vmatmul.bf16.gmra.mxu0 %v8083_v54  ;;  %3251 = vmatmul.bf16.gmra.mxu2 %v8083_v54  ;;  %v2528_v41 = vadd.f32 %v2527_v23, %v2358_v39  ;;  %v7467_v39 = vld [vmem:[#allocation6 + $0x1b0] sm:$0xf0] }
 0x240   :  { %v7470_v36 = vor.u32 %v7881_v17, %v7467_v39  ;;  %v7945_v22 = vld [vmem:[#allocation6 + $0x394] sm:$0xf] }
 0x241   :  { %3082 = vmatmul.bf16.gmra.mxu1 %v8085_v55  ;;  %6919 = vst [vmem:[#allocation8 + $0x620] sm:$0xff] %v6663_v10  ;;  %3420 = vmatmul.bf16.gmra.mxu3 %v8085_v55  ;;  %v7723_v23 = vld [vmem:[#allocation6 + $0x3b0] sm:$0xf0] }
 0x242   :  { %v2696_v38 = vpop.f32.mrf.mxu2  ;;  %3915 = vmatpush.bf16.msra.mxu2 %v7470_v36 }
 0x244   :  { %v2865_v48 = vpop.f32.mrf.mxu3  ;;  %v2360_v13 = vpop.f32.mrf.mxu0 }
 0x245   :  { %v2866_v45 = vadd.f32 %v2865_v48, %v2696_v38  ;;  %v7726_v38 = vor.u32 %v7945_v22, %v7723_v23 }
 0x246   :  { %v2529_v7 = vpop.f32.mrf.mxu1 }
 0x247   :  { %v6667_v8 = vpack.c.bf16 %v2866_v45, %v2528_v41  ;;  %v2530_v4 = vadd.f32 %v2529_v7, %v2360_v13  ;;  %4084 = vmatpush.bf16.msra.mxu3 %v7726_v38 }
 0x249   :  { %6923 = vst [vmem:[#allocation8 + $0x640] sm:$0xff] %v6667_v8 }
 0x24a   :  { %v2698_v37 = vpop.f32.mrf.mxu2 }
 0x24c   :  { %v2867_v2 = vpop.f32.mrf.mxu3  ;;  %v2363_v11 = vpop.f32.mrf.mxu0 }
 0x24d   :  { %v2868_v29 = vadd.f32 %v2867_v2, %v2698_v37  ;;  %v7465_v37 = vld [vmem:[#allocation6 + $0x190] sm:$0xf] }
 0x24e   :  { %v2532_v12 = vpop.f32.mrf.mxu1  ;;  %v7885_v2 = vld [vmem:[#allocation6 + $0x1ac] sm:$0xf0] }
 0x24f   :  { %v6671_v34 = vpack.c.bf16 %v2868_v29, %v2530_v4  ;;  %2918 = vmatmul.bf16.gmra.mxu0 %v8091_v60  ;;  %3256 = vmatmul.bf16.gmra.mxu2 %v8091_v60  ;;  %v2533_v10 = vadd.f32 %v2532_v12, %v2363_v11  ;;  %v7466_v4 = vor.u32 %v7885_v2, %v7465_v37  ;;  %v7721_v29 = vld [vmem:[#allocation6 + $0x390] sm:$0xf] }
 0x251   :  { %3087 = vmatmul.bf16.gmra.mxu1 %v8093_v61  ;;  %6927 = vst [vmem:[#allocation8 + $0x660] sm:$0xff] %v6671_v34  ;;  %3425 = vmatmul.bf16.gmra.mxu3 %v8093_v61  ;;  %v7949_v34 = vld [vmem:[#allocation6 + $0x3ac] sm:$0xf0] }
 0x252   :  { %v2701_v41 = vpop.f32.mrf.mxu2  ;;  %v7722_v17 = vor.u32 %v7949_v34, %v7721_v29  ;;  %3577 = vmatpush.bf16.msra.mxu0 %v7466_v4 }
 0x254   :  { %v2870_v48 = vpop.f32.mrf.mxu3  ;;  %v2365_v13 = vpop.f32.mrf.mxu0  ;;  %3746 = vmatpush.bf16.msra.mxu1 %v7722_v17 }
 0x255   :  { %v2871_v45 = vadd.f32 %v2870_v48, %v2701_v41 }
 0x256   :  { %v2534_v7 = vpop.f32.mrf.mxu1 }
 0x257   :  { %v6675_v8 = vpack.c.bf16 %v2871_v45, %v2533_v10  ;;  %v2535_v11 = vadd.f32 %v2534_v7, %v2365_v13 }
 0x259   :  { %6931 = vst [vmem:[#allocation8 + $0x680] sm:$0xff] %v6675_v8 }
 0x25a   :  { %v2703_v61 = vpop.f32.mrf.mxu2 }
 0x25c   :  { %v2872_v39 = vpop.f32.mrf.mxu3  ;;  %v2368_v60 = vpop.f32.mrf.mxu0 }
 0x25d   :  { %v2873_v12 = vadd.f32 %v2872_v39, %v2703_v61 }
 0x25e   :  { %v2537_v22 = vpop.f32.mrf.mxu1 }
 0x25f   :  { %v6679_v36 = vpack.c.bf16 %v2873_v12, %v2535_v11  ;;  %2923 = vmatmul.bf16.gmra.mxu0 %v8099_v14  ;;  %3261 = vmatmul.bf16.gmra.mxu2 %v8099_v14  ;;  %v2538_v23 = vadd.f32 %v2537_v22, %v2368_v60 }
 0x261   :  { %3092 = vmatmul.bf16.gmra.mxu1 %v8101_v15  ;;  %6935 = vst [vmem:[#allocation8 + $0x6a0] sm:$0xff] %v6679_v36  ;;  %3430 = vmatmul.bf16.gmra.mxu3 %v8101_v15 }
 0x262   :  { %v2706_v10 = vpop.f32.mrf.mxu2 }
 0x264   :  { %v2875_v41 = vpop.f32.mrf.mxu3  ;;  %v2370_v38 = vpop.f32.mrf.mxu0 }
 0x265   :  { %v2876_v48 = vadd.f32 %v2875_v41, %v2706_v10 }
 0x266   :  { %v2539_v45 = vpop.f32.mrf.mxu1 }
 0x267   :  { %v6683_v13 = vpack.c.bf16 %v2876_v48, %v2538_v23  ;;  %v2540_v37 = vadd.f32 %v2539_v45, %v2370_v38 }
 0x269   :  { %6939 = vst [vmem:[#allocation8 + $0x6c0] sm:$0xff] %v6683_v13 }
 0x26a   :  { %v2708_v61 = vpop.f32.mrf.mxu2 }
 0x26c   :  { %v2877_v7 = vpop.f32.mrf.mxu3  ;;  %v2373_v8 = vpop.f32.mrf.mxu0 }
 0x26d   :  { %v2878_v2 = vadd.f32 %v2877_v7, %v2708_v61 }
 0x26e   :  { %v2542_v4 = vpop.f32.mrf.mxu1 }
 0x26f   :  { %v6687_v29 = vpack.c.bf16 %v2878_v2, %v2540_v37  ;;  %2928 = vmatmul.bf16.gmra.mxu0 %v8107_v20  ;;  %3266 = vmatmul.bf16.gmra.mxu2 %v8107_v20  ;;  %v2543_v60 = vadd.f32 %v2542_v4, %v2373_v8 }
 0x271   :  { %3097 = vmatmul.bf16.gmra.mxu1 %v8109_v21  ;;  %6943 = vst [vmem:[#allocation8 + $0x6e0] sm:$0xff] %v6687_v29  ;;  %3435 = vmatmul.bf16.gmra.mxu3 %v8109_v21 }
 0x272   :  { %v2711_v34 = vpop.f32.mrf.mxu2 }
 0x274   :  { %v2880_v17 = vpop.f32.mrf.mxu3  ;;  %v2375_v39 = vpop.f32.mrf.mxu0 }
 0x275   :  { %v2881_v11 = vadd.f32 %v2880_v17, %v2711_v34 }
 0x276   :  { %v2544_v12 = vpop.f32.mrf.mxu1 }
 0x277   :  { %v6691_v22 = vpack.c.bf16 %v2881_v11, %v2543_v60  ;;  %v2545_v41 = vadd.f32 %v2544_v12, %v2375_v39 }
 0x279   :  { %6947 = vst [vmem:[#allocation8 + $0x700] sm:$0xff] %v6691_v22  ;;  %v7873_v22 = vld [vmem:[#allocation6 + $0x154] sm:$0xf] }
 0x27a   :  { %v2713_v36 = vpop.f32.mrf.mxu2 }
 0x27c   :  { %v2882_v23 = vpop.f32.mrf.mxu3  ;;  %v2378_v10 = vpop.f32.mrf.mxu0 }
 0x27d   :  { %v2883_v38 = vadd.f32 %v2882_v23, %v2713_v36  ;;  %v7435_v36 = vld [vmem:[#allocation6 + $0x170] sm:$0xf0] }
 0x27e   :  { %v2547_v48 = vpop.f32.mrf.mxu1  ;;  %v7438_v23 = vor.u32 %v7873_v22, %v7435_v36 }
 0x27f   :  { %v6695_v45 = vpack.c.bf16 %v2883_v38, %v2545_v41  ;;  %2933 = vmatmul.bf16.gmra.mxu0 %v8115_v26  ;;  %3271 = vmatmul.bf16.gmra.mxu2 %v8115_v26  ;;  %v2548_v13 = vadd.f32 %v2547_v48, %v2378_v10  ;;  %v7937_v10 = vld [vmem:[#allocation6 + $0x354] sm:$0xf] }
 0x280   :  { %v7691_v41 = vld [vmem:[#allocation6 + $0x370] sm:$0xf0]  ;;  %3916 = vmatpush.bf16.msra.mxu2 %v7438_v23 }
 0x281   :  { %3102 = vmatmul.bf16.gmra.mxu1 %v8117_v27  ;;  %6951 = vst [vmem:[#allocation8 + $0x720] sm:$0xff] %v6695_v45  ;;  %3440 = vmatmul.bf16.gmra.mxu3 %v8117_v27  ;;  %v7694_v45 = vor.u32 %v7937_v10, %v7691_v41 }
 0x282   :  { %v2716_v61 = vpop.f32.mrf.mxu2 }
 0x283   :  { %4085 = vmatpush.bf16.msra.mxu3 %v7694_v45 }
 0x284   :  { %v2885_v7 = vpop.f32.mrf.mxu3  ;;  %v2380_v8 = vpop.f32.mrf.mxu0 }
 0x285   :  { %v2886_v37 = vadd.f32 %v2885_v7, %v2716_v61 }
 0x286   :  { %v2549_v2 = vpop.f32.mrf.mxu1 }
 0x287   :  { %v6699_v4 = vpack.c.bf16 %v2886_v37, %v2548_v13  ;;  %v2550_v17 = vadd.f32 %v2549_v2, %v2380_v8  ;;  %v7433_v2 = vld [vmem:[#allocation6 + $0x150] sm:$0xf] }
 0x289   :  { %6955 = vst [vmem:[#allocation8 + $0x740] sm:$0xff] %v6699_v4  ;;  %v7877_v4 = vld [vmem:[#allocation6 + $0x16c] sm:$0xf0] }
 0x28a   :  { %v2718_v29 = vpop.f32.mrf.mxu2 }
 0x28c   :  { %v2887_v60 = vpop.f32.mrf.mxu3  ;;  %v2383_v34 = vpop.f32.mrf.mxu0 }
 0x28d   :  { %v2888_v39 = vadd.f32 %v2887_v60, %v2718_v29  ;;  %v7434_v29 = vor.u32 %v7877_v4, %v7433_v2  ;;  %v7689_v60 = vld [vmem:[#allocation6 + $0x350] sm:$0xf] }
 0x28e   :  { %v2552_v11 = vpop.f32.mrf.mxu1 }
 0x28f   :  { %v6703_v12 = vpack.c.bf16 %v2888_v39, %v2550_v17  ;;  %2938 = vmatmul.bf16.gmra.mxu0 %v8123_v32  ;;  %3276 = vmatmul.bf16.gmra.mxu2 %v8123_v32  ;;  %v2553_v38 = vadd.f32 %v2552_v11, %v2383_v34  ;;  %v7941_v17 = vld [vmem:[#allocation6 + $0x36c] sm:$0xf0] }
 0x290   :  { %3578 = vmatpush.bf16.msra.mxu0 %v7434_v29 }
 0x291   :  { %3107 = vmatmul.bf16.gmra.mxu1 %v8125_v33  ;;  %6959 = vst [vmem:[#allocation8 + $0x760] sm:$0xff] %v6703_v12  ;;  %3445 = vmatmul.bf16.gmra.mxu3 %v8125_v33  ;;  %v7690_v12 = vor.u32 %v7941_v17, %v7689_v60 }
 0x292   :  { %v2721_v48 = vpop.f32.mrf.mxu2 }
 0x293   :  { %3747 = vmatpush.bf16.msra.mxu1 %v7690_v12 }
 0x294   :  { %v2890_v13 = vpop.f32.mrf.mxu3  ;;  %v2385_v61 = vpop.f32.mrf.mxu0 }
 0x295   :  { %v2891_v7 = vadd.f32 %v2890_v13, %v2721_v48 }
 0x296   :  { %v2554_v8 = vpop.f32.mrf.mxu1 }
 0x297   :  { %v6707_v37 = vpack.c.bf16 %v2891_v7, %v2553_v38  ;;  %v2555_v34 = vadd.f32 %v2554_v8, %v2385_v61 }
 0x299   :  { %6963 = vst [vmem:[#allocation8 + $0x780] sm:$0xff] %v6707_v37 }
 0x29a   :  { %v2723_v39 = vpop.f32.mrf.mxu2 }
 0x29c   :  { %v2892_v22 = vpop.f32.mrf.mxu3  ;;  %v2388_v36 = vpop.f32.mrf.mxu0 }
 0x29d   :  { %v2893_v11 = vadd.f32 %v2892_v22, %v2723_v39 }
 0x29e   :  { %v2557_v10 = vpop.f32.mrf.mxu1 }
 0x29f   :  { %v6711_v23 = vpack.c.bf16 %v2893_v11, %v2555_v34  ;;  %2943 = vmatmul.bf16.gmra.mxu0 %v8131_v51  ;;  %3281 = vmatmul.bf16.gmra.mxu2 %v8131_v51  ;;  %v2558_v41 = vadd.f32 %v2557_v10, %v2388_v36 }
 0x2a1   :  { %3112 = vmatmul.bf16.gmra.mxu1 %v8133_v53  ;;  %6967 = vst [vmem:[#allocation8 + $0x7a0] sm:$0xff] %v6711_v23  ;;  %3450 = vmatmul.bf16.gmra.mxu3 %v8133_v53 }
 0x2a2   :  { %v2726_v38 = vpop.f32.mrf.mxu2 }
 0x2a4   :  { %v2895_v48 = vpop.f32.mrf.mxu3  ;;  %v2390_v45 = vpop.f32.mrf.mxu0 }
 0x2a5   :  { %v2896_v13 = vadd.f32 %v2895_v48, %v2726_v38 }
 0x2a6   :  { %v2559_v7 = vpop.f32.mrf.mxu1 }
 0x2a7   :  { %v6715_v61 = vpack.c.bf16 %v2896_v13, %v2558_v41  ;;  %v2560_v4 = vadd.f32 %v2559_v7, %v2390_v45 }
 0x2a9   :  { %6971 = vst [vmem:[#allocation8 + $0x7c0] sm:$0xff] %v6715_v61 }
 0x2aa   :  { %v2728_v8 = vpop.f32.mrf.mxu2 }
 0x2ac   :  { %v2897_v37 = vpop.f32.mrf.mxu3  ;;  %v2909_v2 = vpop.f32.mrf.mxu0 }
 0x2ad   :  { %v2898_v29 = vadd.f32 %v2897_v37, %v2728_v8 }
 0x2ae   :  { %v3078_v60 = vpop.f32.mrf.mxu1 }
 0x2af   :  { %v6719_v17 = vpack.c.bf16 %v2898_v29, %v2560_v4  ;;  %2948 = vmatmul.bf16.gmra.mxu0 %v8139_v62  ;;  %3286 = vmatmul.bf16.gmra.mxu2 %v8139_v62  ;;  %v3079_v39 = vadd.f32 %v3078_v60, %v2909_v2 }
 0x2b1   :  { %3117 = vmatmul.bf16.gmra.mxu1 %v8141_v0  ;;  %6975 = vst [vmem:[#allocation8 + $0x7e0] sm:$0xff] %v6719_v17  ;;  %3455 = vmatmul.bf16.gmra.mxu3 %v8141_v0 }
 0x2b2   :  { %v3247_v12 = vpop.f32.mrf.mxu2 }
 0x2b4   :  { %v3416_v22 = vpop.f32.mrf.mxu3  ;;  %v2911_v36 = vpop.f32.mrf.mxu0 }
 0x2b5   :  { %v3417_v34 = vadd.f32 %v3416_v22, %v3247_v12 }
 0x2b6   :  { %v3080_v11 = vpop.f32.mrf.mxu1 }
 0x2b7   :  { %v6468_v10 = vpack.c.bf16 %v3417_v34, %v3079_v39  ;;  %v3081_v48 = vadd.f32 %v3080_v11, %v2911_v36 }
 0x2b9   :  { %6724 = vst [vmem:[#allocation8 + $0x8] sm:$0xff] %v6468_v10  ;;  %v7865_v10 = vld [vmem:[#allocation6 + $0x114] sm:$0xf] }
 0x2ba   :  { %v3249_v23 = vpop.f32.mrf.mxu2 }
 0x2bc   :  { %v3418_v41 = vpop.f32.mrf.mxu3  ;;  %v2914_v38 = vpop.f32.mrf.mxu0 }
 0x2bd   :  { %v3419_v45 = vadd.f32 %v3418_v41, %v3249_v23  ;;  %v7403_v23 = vld [vmem:[#allocation6 + $0x130] sm:$0xf0] }
 0x2be   :  { %v3083_v13 = vpop.f32.mrf.mxu1  ;;  %v7406_v41 = vor.u32 %v7865_v10, %v7403_v23 }
 0x2bf   :  { %v6472_v7 = vpack.c.bf16 %v3419_v45, %v3081_v48  ;;  %2953 = vmatmul.bf16.gmra.mxu0 %v8147_v16  ;;  %3291 = vmatmul.bf16.gmra.mxu2 %v8147_v16  ;;  %v3084_v61 = vadd.f32 %v3083_v13, %v2914_v38  ;;  %v7929_v38 = vld [vmem:[#allocation6 + $0x314] sm:$0xf] }
 0x2c0   :  { %v7659_v48 = vld [vmem:[#allocation6 + $0x330] sm:$0xf0]  ;;  %3917 = vmatpush.bf16.msra.mxu2 %v7406_v41 }
 0x2c1   :  { %3122 = vmatmul.bf16.gmra.mxu1 %v8149_v19  ;;  %6728 = vst [vmem:[#allocation8 + $0x28] sm:$0xff] %v6472_v7  ;;  %3460 = vmatmul.bf16.gmra.mxu3 %v8149_v19  ;;  %v7662_v7 = vor.u32 %v7929_v38, %v7659_v48 }
 0x2c2   :  { %v3252_v8 = vpop.f32.mrf.mxu2 }
 0x2c3   :  { %4086 = vmatpush.bf16.msra.mxu3 %v7662_v7 }
 0x2c4   :  { %v3421_v37 = vpop.f32.mrf.mxu3  ;;  %v2916_v2 = vpop.f32.mrf.mxu0 }
 0x2c5   :  { %v3422_v4 = vadd.f32 %v3421_v37, %v3252_v8 }
 0x2c6   :  { %v3085_v29 = vpop.f32.mrf.mxu1 }
 0x2c7   :  { %v6476_v60 = vpack.c.bf16 %v3422_v4, %v3084_v61  ;;  %v3086_v22 = vadd.f32 %v3085_v29, %v2916_v2  ;;  %v7401_v29 = vld [vmem:[#allocation6 + $0x110] sm:$0xf] }
 0x2c9   :  { %6732 = vst [vmem:[#allocation8 + $0x48] sm:$0xff] %v6476_v60  ;;  %v7869_v60 = vld [vmem:[#allocation6 + $0x12c] sm:$0xf0] }
 0x2ca   :  { %v3254_v17 = vpop.f32.mrf.mxu2 }
 0x2cc   :  { %v3423_v39 = vpop.f32.mrf.mxu3  ;;  %v2919_v12 = vpop.f32.mrf.mxu0 }
 0x2cd   :  { %v3424_v36 = vadd.f32 %v3423_v39, %v3254_v17  ;;  %v7402_v17 = vor.u32 %v7869_v60, %v7401_v29  ;;  %v7657_v39 = vld [vmem:[#allocation6 + $0x310] sm:$0xf] }
 0x2ce   :  { %v3088_v34 = vpop.f32.mrf.mxu1 }
 0x2cf   :  { %v6480_v11 = vpack.c.bf16 %v3424_v36, %v3086_v22  ;;  %2958 = vmatmul.bf16.gmra.mxu0 %v8155_v42  ;;  %3296 = vmatmul.bf16.gmra.mxu2 %v8155_v42  ;;  %v3089_v45 = vadd.f32 %v3088_v34, %v2919_v12  ;;  %v7933_v22 = vld [vmem:[#allocation6 + $0x32c] sm:$0xf0] }
 0x2d0   :  { %3579 = vmatpush.bf16.msra.mxu0 %v7402_v17 }
 0x2d1   :  { %3127 = vmatmul.bf16.gmra.mxu1 %v8157_v46  ;;  %6736 = vst [vmem:[#allocation8 + $0x68] sm:$0xff] %v6480_v11  ;;  %3465 = vmatmul.bf16.gmra.mxu3 %v8157_v46  ;;  %v7658_v11 = vor.u32 %v7933_v22, %v7657_v39 }
 0x2d2   :  { %v3257_v13 = vpop.f32.mrf.mxu2 }
 0x2d3   :  { %3748 = vmatpush.bf16.msra.mxu1 %v7658_v11 }
 0x2d4   :  { %v3426_v61 = vpop.f32.mrf.mxu3  ;;  %v2921_v8 = vpop.f32.mrf.mxu0 }
 0x2d5   :  { %v3427_v37 = vadd.f32 %v3426_v61, %v3257_v13 }
 0x2d6   :  { %v3090_v2 = vpop.f32.mrf.mxu1 }
 0x2d7   :  { %v6484_v4 = vpack.c.bf16 %v3427_v37, %v3089_v45  ;;  %v3091_v12 = vadd.f32 %v3090_v2, %v2921_v8 }
 0x2d9   :  { %6740 = vst [vmem:[#allocation8 + $0x88] sm:$0xff] %v6484_v4 }
 0x2da   :  { %v3259_v36 = vpop.f32.mrf.mxu2 }
 0x2dc   :  { %v3428_v10 = vpop.f32.mrf.mxu3  ;;  %v2924_v23 = vpop.f32.mrf.mxu0 }
 0x2dd   :  { %v3429_v34 = vadd.f32 %v3428_v10, %v3259_v36 }
 0x2de   :  { %v3093_v38 = vpop.f32.mrf.mxu1 }
 0x2df   :  { %v6488_v41 = vpack.c.bf16 %v3429_v34, %v3091_v12  ;;  %2963 = vmatmul.bf16.gmra.mxu0 %v8163_v25  ;;  %3301 = vmatmul.bf16.gmra.mxu2 %v8163_v25  ;;  %v3094_v48 = vadd.f32 %v3093_v38, %v2924_v23 }
 0x2e1   :  { %3132 = vmatmul.bf16.gmra.mxu1 %v8165_v31  ;;  %6744 = vst [vmem:[#allocation8 + $0xa8] sm:$0xff] %v6488_v41  ;;  %3470 = vmatmul.bf16.gmra.mxu3 %v8165_v31 }
 0x2e2   :  { %v3262_v45 = vpop.f32.mrf.mxu2 }
 0x2e4   :  { %v3431_v13 = vpop.f32.mrf.mxu3  ;;  %v2926_v7 = vpop.f32.mrf.mxu0 }
 0x2e5   :  { %v3432_v61 = vadd.f32 %v3431_v13, %v3262_v45 }
 0x2e6   :  { %v3095_v37 = vpop.f32.mrf.mxu1 }
 0x2e7   :  { %v6492_v8 = vpack.c.bf16 %v3432_v61, %v3094_v48  ;;  %v3096_v60 = vadd.f32 %v3095_v37, %v2926_v7 }
 0x2e9   :  { %6748 = vst [vmem:[#allocation8 + $0xc8] sm:$0xff] %v6492_v8 }
 0x2ea   :  { %v3264_v2 = vpop.f32.mrf.mxu2 }
 0x2ec   :  { %v3433_v4 = vpop.f32.mrf.mxu3  ;;  %v2929_v29 = vpop.f32.mrf.mxu0 }
 0x2ed   :  { %v3434_v17 = vadd.f32 %v3433_v4, %v3264_v2 }
 0x2ee   :  { %v3098_v39 = vpop.f32.mrf.mxu1 }
 0x2ef   :  { %v6496_v22 = vpack.c.bf16 %v3434_v17, %v3096_v60  ;;  %2968 = vmatmul.bf16.gmra.mxu0 %v8171_v58  ;;  %3306 = vmatmul.bf16.gmra.mxu2 %v8171_v58  ;;  %v3099_v36 = vadd.f32 %v3098_v39, %v2929_v29 }
 0x2f1   :  { %3137 = vmatmul.bf16.gmra.mxu1 %v8173_v1  ;;  %6752 = vst [vmem:[#allocation8 + $0xe8] sm:$0xff] %v6496_v22  ;;  %3475 = vmatmul.bf16.gmra.mxu3 %v8173_v1 }
 0x2f2   :  { %v3267_v11 = vpop.f32.mrf.mxu2 }
 0x2f4   :  { %v3436_v10 = vpop.f32.mrf.mxu3  ;;  %v2931_v23 = vpop.f32.mrf.mxu0 }
 0x2f5   :  { %v3437_v12 = vadd.f32 %v3436_v10, %v3267_v11 }
 0x2f6   :  { %v3100_v34 = vpop.f32.mrf.mxu1 }
 0x2f7   :  { %v6500_v38 = vpack.c.bf16 %v3437_v12, %v3099_v36  ;;  %v3101_v13 = vadd.f32 %v3100_v34, %v2931_v23 }
 0x2f9   :  { %6756 = vst [vmem:[#allocation8 + $0x108] sm:$0xff] %v6500_v38  ;;  %v7857_v38 = vld [vmem:[#allocation6 + $0xd4] sm:$0xf] }
 0x2fa   :  { %v3269_v41 = vpop.f32.mrf.mxu2 }
 0x2fc   :  { %v3438_v48 = vpop.f32.mrf.mxu3  ;;  %v2934_v45 = vpop.f32.mrf.mxu0 }
 0x2fd   :  { %v3439_v7 = vadd.f32 %v3438_v48, %v3269_v41  ;;  %v7371_v41 = vld [vmem:[#allocation6 + $0xf0] sm:$0xf0] }
 0x2fe   :  { %v3103_v61 = vpop.f32.mrf.mxu1  ;;  %v7374_v48 = vor.u32 %v7857_v38, %v7371_v41 }
 0x2ff   :  { %v6504_v37 = vpack.c.bf16 %v3439_v7, %v3101_v13  ;;  %2973 = vmatmul.bf16.gmra.mxu0 %v8179_v24  ;;  %3311 = vmatmul.bf16.gmra.mxu2 %v8179_v24  ;;  %v3104_v8 = vadd.f32 %v3103_v61, %v2934_v45  ;;  %v7921_v45 = vld [vmem:[#allocation6 + $0x2d4] sm:$0xf] }
 0x300   :  { %v7627_v13 = vld [vmem:[#allocation6 + $0x2f0] sm:$0xf0]  ;;  %3918 = vmatpush.bf16.msra.mxu2 %v7374_v48 }
 0x301   :  { %3142 = vmatmul.bf16.gmra.mxu1 %v8181_v30  ;;  %6760 = vst [vmem:[#allocation8 + $0x128] sm:$0xff] %v6504_v37  ;;  %3480 = vmatmul.bf16.gmra.mxu3 %v8181_v30  ;;  %v7630_v37 = vor.u32 %v7921_v45, %v7627_v13 }
 0x302   :  { %v3272_v2 = vpop.f32.mrf.mxu2 }
 0x303   :  { %4087 = vmatpush.bf16.msra.mxu3 %v7630_v37 }
 0x304   :  { %v3441_v4 = vpop.f32.mrf.mxu3  ;;  %v2936_v29 = vpop.f32.mrf.mxu0 }
 0x305   :  { %v3442_v60 = vadd.f32 %v3441_v4, %v3272_v2 }
 0x306   :  { %v3105_v17 = vpop.f32.mrf.mxu1 }
 0x307   :  { %v6508_v39 = vpack.c.bf16 %v3442_v60, %v3104_v8  ;;  %v3106_v10 = vadd.f32 %v3105_v17, %v2936_v29  ;;  %v7369_v17 = vld [vmem:[#allocation6 + $0xd0] sm:$0xf] }
 0x309   :  { %6764 = vst [vmem:[#allocation8 + $0x148] sm:$0xff] %v6508_v39  ;;  %v7861_v39 = vld [vmem:[#allocation6 + $0xec] sm:$0xf0] }
 0x30a   :  { %v3274_v22 = vpop.f32.mrf.mxu2 }
 0x30c   :  { %v3443_v36 = vpop.f32.mrf.mxu3  ;;  %v2939_v11 = vpop.f32.mrf.mxu0 }
 0x30d   :  { %v3444_v23 = vadd.f32 %v3443_v36, %v3274_v22  ;;  %v7370_v22 = vor.u32 %v7861_v39, %v7369_v17  ;;  %v7625_v36 = vld [vmem:[#allocation6 + $0x2d0] sm:$0xf] }
 0x30e   :  { %v3108_v12 = vpop.f32.mrf.mxu1 }
 0x30f   :  { %v6512_v34 = vpack.c.bf16 %v3444_v23, %v3106_v10  ;;  %2978 = vmatmul.bf16.gmra.mxu0 %v8187_v59  ;;  %3316 = vmatmul.bf16.gmra.mxu2 %v8187_v59  ;;  %v3109_v7 = vadd.f32 %v3108_v12, %v2939_v11  ;;  %v7925_v10 = vld [vmem:[#allocation6 + $0x2ec] sm:$0xf0] }
 0x310   :  { %3580 = vmatpush.bf16.msra.mxu0 %v7370_v22 }
 0x311   :  { %3147 = vmatmul.bf16.gmra.mxu1 %v8189_v3  ;;  %6768 = vst [vmem:[#allocation8 + $0x168] sm:$0xff] %v6512_v34  ;;  %3485 = vmatmul.bf16.gmra.mxu3 %v8189_v3  ;;  %v7626_v34 = vor.u32 %v7925_v10, %v7625_v36 }
 0x312   :  { %v3277_v61 = vpop.f32.mrf.mxu2 }
 0x313   :  { %3749 = vmatpush.bf16.msra.mxu1 %v7626_v34 }
 0x314   :  { %v3446_v8 = vpop.f32.mrf.mxu3  ;;  %v2941_v2 = vpop.f32.mrf.mxu0 }
 0x315   :  { %v3447_v4 = vadd.f32 %v3446_v8, %v3277_v61 }
 0x316   :  { %v3110_v29 = vpop.f32.mrf.mxu1 }
 0x317   :  { %v6516_v60 = vpack.c.bf16 %v3447_v4, %v3109_v7  ;;  %v3111_v11 = vadd.f32 %v3110_v29, %v2941_v2 }
 0x319   :  { %6772 = vst [vmem:[#allocation8 + $0x188] sm:$0xff] %v6516_v60 }
 0x31a   :  { %v3279_v23 = vpop.f32.mrf.mxu2 }
 0x31c   :  { %v3448_v38 = vpop.f32.mrf.mxu3  ;;  %v2944_v41 = vpop.f32.mrf.mxu0 }
 0x31d   :  { %v3449_v12 = vadd.f32 %v3448_v38, %v3279_v23 }
 0x31e   :  { %v3113_v45 = vpop.f32.mrf.mxu1 }
 0x31f   :  { %v6520_v48 = vpack.c.bf16 %v3449_v12, %v3111_v11  ;;  %2983 = vmatmul.bf16.gmra.mxu0 %v8195_v49  ;;  %3321 = vmatmul.bf16.gmra.mxu2 %v8195_v49  ;;  %v3114_v13 = vadd.f32 %v3113_v45, %v2944_v41 }
 0x321   :  { %3152 = vmatmul.bf16.gmra.mxu1 %v8197_v57  ;;  %6776 = vst [vmem:[#allocation8 + $0x1a8] sm:$0xff] %v6520_v48  ;;  %3490 = vmatmul.bf16.gmra.mxu3 %v8197_v57 }
 0x322   :  { %v3282_v7 = vpop.f32.mrf.mxu2 }
 0x324   :  { %v3451_v61 = vpop.f32.mrf.mxu3  ;;  %v2946_v37 = vpop.f32.mrf.mxu0 }
 0x325   :  { %v3452_v8 = vadd.f32 %v3451_v61, %v3282_v7 }
 0x326   :  { %v3115_v4 = vpop.f32.mrf.mxu1 }
 0x327   :  { %v6524_v2 = vpack.c.bf16 %v3452_v8, %v3114_v13  ;;  %v3116_v39 = vadd.f32 %v3115_v4, %v2946_v37 }
 0x329   :  { %6780 = vst [vmem:[#allocation8 + $0x1c8] sm:$0xff] %v6524_v2 }
 0x32a   :  { %v3284_v29 = vpop.f32.mrf.mxu2 }
 0x32c   :  { %v3453_v60 = vpop.f32.mrf.mxu3  ;;  %v2949_v17 = vpop.f32.mrf.mxu0 }
 0x32d   :  { %v3454_v22 = vadd.f32 %v3453_v60, %v3284_v29 }
 0x32e   :  { %v3118_v36 = vpop.f32.mrf.mxu1 }
 0x32f   :  { %v6528_v10 = vpack.c.bf16 %v3454_v22, %v3116_v39  ;;  %2988 = vmatmul.bf16.gmra.mxu0 %v8203_v28  ;;  %3326 = vmatmul.bf16.gmra.mxu2 %v8203_v28  ;;  %v3119_v23 = vadd.f32 %v3118_v36, %v2949_v17 }
 0x331   :  { %3157 = vmatmul.bf16.gmra.mxu1 %v8205_v35  ;;  %6784 = vst [vmem:[#allocation8 + $0x1e8] sm:$0xff] %v6528_v10  ;;  %3495 = vmatmul.bf16.gmra.mxu3 %v8205_v35 }
 0x332   :  { %v3287_v34 = vpop.f32.mrf.mxu2 }
 0x334   :  { %v3456_v38 = vpop.f32.mrf.mxu3  ;;  %v2951_v41 = vpop.f32.mrf.mxu0 }
 0x335   :  { %v3457_v11 = vadd.f32 %v3456_v38, %v3287_v34 }
 0x336   :  { %v3120_v12 = vpop.f32.mrf.mxu1 }
 0x337   :  { %v6532_v45 = vpack.c.bf16 %v3457_v11, %v3119_v23  ;;  %v3121_v61 = vadd.f32 %v3120_v12, %v2951_v41 }
 0x339   :  { %6788 = vst [vmem:[#allocation8 + $0x208] sm:$0xff] %v6532_v45  ;;  %v7849_v45 = vld [vmem:[#allocation6 + $0x94] sm:$0xf] }
 0x33a   :  { %v3289_v48 = vpop.f32.mrf.mxu2 }
 0x33c   :  { %v3458_v13 = vpop.f32.mrf.mxu3  ;;  %v2954_v7 = vpop.f32.mrf.mxu0 }
 0x33d   :  { %v3459_v37 = vadd.f32 %v3458_v13, %v3289_v48  ;;  %v7339_v48 = vld [vmem:[#allocation6 + $0xb0] sm:$0xf0] }
 0x33e   :  { %v3123_v8 = vpop.f32.mrf.mxu1  ;;  %v7342_v13 = vor.u32 %v7849_v45, %v7339_v48 }
 0x33f   :  { %v6536_v4 = vpack.c.bf16 %v3459_v37, %v3121_v61  ;;  %2993 = vmatmul.bf16.gmra.mxu0 %v8211_v6  ;;  %3331 = vmatmul.bf16.gmra.mxu2 %v8211_v6  ;;  %v3124_v2 = vadd.f32 %v3123_v8, %v2954_v7  ;;  %v7913_v7 = vld [vmem:[#allocation6 + $0x294] sm:$0xf] }
 0x340   :  { %v7595_v61 = vld [vmem:[#allocation6 + $0x2b0] sm:$0xf0]  ;;  %3919 = vmatpush.bf16.msra.mxu2 %v7342_v13 }
 0x341   :  { %3162 = vmatmul.bf16.gmra.mxu1 %v8213_v9  ;;  %6792 = vst [vmem:[#allocation8 + $0x228] sm:$0xff] %v6536_v4  ;;  %3500 = vmatmul.bf16.gmra.mxu3 %v8213_v9  ;;  %v7598_v4 = vor.u32 %v7913_v7, %v7595_v61 }
 0x342   :  { %v3292_v29 = vpop.f32.mrf.mxu2 }
 0x343   :  { %4088 = vmatpush.bf16.msra.mxu3 %v7598_v4 }
 0x344   :  { %v3461_v60 = vpop.f32.mrf.mxu3  ;;  %v2956_v17 = vpop.f32.mrf.mxu0 }
 0x345   :  { %v3462_v39 = vadd.f32 %v3461_v60, %v3292_v29 }
 0x346   :  { %v3125_v22 = vpop.f32.mrf.mxu1 }
 0x347   :  { %v6540_v36 = vpack.c.bf16 %v3462_v39, %v3124_v2  ;;  %v3126_v38 = vadd.f32 %v3125_v22, %v2956_v17  ;;  %v7337_v22 = vld [vmem:[#allocation6 + $0x90] sm:$0xf] }
 0x349   :  { %6796 = vst [vmem:[#allocation8 + $0x248] sm:$0xff] %v6540_v36  ;;  %v7853_v36 = vld [vmem:[#allocation6 + $0xac] sm:$0xf0] }
 0x34a   :  { %v3294_v10 = vpop.f32.mrf.mxu2 }
 0x34c   :  { %v3463_v23 = vpop.f32.mrf.mxu3  ;;  %v2959_v34 = vpop.f32.mrf.mxu0 }
 0x34d   :  { %v3464_v41 = vadd.f32 %v3463_v23, %v3294_v10  ;;  %v7338_v10 = vor.u32 %v7853_v36, %v7337_v22  ;;  %v7593_v23 = vld [vmem:[#allocation6 + $0x290] sm:$0xf] }
 0x34e   :  { %v3128_v11 = vpop.f32.mrf.mxu1 }
 0x34f   :  { %v6544_v12 = vpack.c.bf16 %v3464_v41, %v3126_v38  ;;  %2998 = vmatmul.bf16.gmra.mxu0 %v8219_v44  ;;  %3336 = vmatmul.bf16.gmra.mxu2 %v8219_v44  ;;  %v3129_v37 = vadd.f32 %v3128_v11, %v2959_v34  ;;  %v7917_v38 = vld [vmem:[#allocation6 + $0x2ac] sm:$0xf0] }
 0x350   :  { %3581 = vmatpush.bf16.msra.mxu0 %v7338_v10 }
 0x351   :  { %3167 = vmatmul.bf16.gmra.mxu1 %v8221_v50  ;;  %6800 = vst [vmem:[#allocation8 + $0x268] sm:$0xff] %v6544_v12  ;;  %3505 = vmatmul.bf16.gmra.mxu3 %v8221_v50  ;;  %v7594_v12 = vor.u32 %v7917_v38, %v7593_v23 }
 0x352   :  { %v3297_v8 = vpop.f32.mrf.mxu2 }
 0x353   :  { %3750 = vmatpush.bf16.msra.mxu1 %v7594_v12 }
 0x354   :  { %v3466_v2 = vpop.f32.mrf.mxu3  ;;  %v2961_v29 = vpop.f32.mrf.mxu0 }
 0x355   :  { %v3467_v60 = vadd.f32 %v3466_v2, %v3297_v8 }
 0x356   :  { %v3130_v17 = vpop.f32.mrf.mxu1 }
 0x357   :  { %v6548_v39 = vpack.c.bf16 %v3467_v60, %v3129_v37  ;;  %v3131_v34 = vadd.f32 %v3130_v17, %v2961_v29 }
 0x359   :  { %6804 = vst [vmem:[#allocation8 + $0x288] sm:$0xff] %v6548_v39 }
 0x35a   :  { %v3299_v41 = vpop.f32.mrf.mxu2 }
 0x35c   :  { %v3468_v45 = vpop.f32.mrf.mxu3  ;;  %v2964_v48 = vpop.f32.mrf.mxu0 }
 0x35d   :  { %v3469_v11 = vadd.f32 %v3468_v45, %v3299_v41 }
 0x35e   :  { %v3133_v7 = vpop.f32.mrf.mxu1 }
 0x35f   :  { %v6552_v13 = vpack.c.bf16 %v3469_v11, %v3131_v34  ;;  %3003 = vmatmul.bf16.gmra.mxu0 %v8227_v56  ;;  %3341 = vmatmul.bf16.gmra.mxu2 %v8227_v56  ;;  %v3134_v61 = vadd.f32 %v3133_v7, %v2964_v48 }
 0x361   :  { %3172 = vmatmul.bf16.gmra.mxu1 %v8229_v5  ;;  %6808 = vst [vmem:[#allocation8 + $0x2a8] sm:$0xff] %v6552_v13  ;;  %3510 = vmatmul.bf16.gmra.mxu3 %v8229_v5 }
 0x362   :  { %v3302_v37 = vpop.f32.mrf.mxu2 }
 0x364   :  { %v3471_v8 = vpop.f32.mrf.mxu3  ;;  %v2966_v4 = vpop.f32.mrf.mxu0 }
 0x365   :  { %v3472_v2 = vadd.f32 %v3471_v8, %v3302_v37 }
 0x366   :  { %v3135_v60 = vpop.f32.mrf.mxu1 }
 0x367   :  { %v6556_v29 = vpack.c.bf16 %v3472_v2, %v3134_v61  ;;  %v3136_v36 = vadd.f32 %v3135_v60, %v2966_v4 }
 0x369   :  { %6812 = vst [vmem:[#allocation8 + $0x2c8] sm:$0xff] %v6556_v29  ;;  %v8827_v29 = vld [vmem:[#allocation14_spill] sm:$0xff] }
 0x36a   :  { %v3304_v17 = vpop.f32.mrf.mxu2 }
 0x36c   :  { %v3473_v39 = vpop.f32.mrf.mxu3  ;;  %v2969_v22 = vpop.f32.mrf.mxu0 }
 0x36d   :  { %v3474_v10 = vadd.f32 %v3473_v39, %v3304_v17  ;;  %v8828_v17 = vld [vmem:[#allocation15_spill] sm:$0xff] }
 0x36e   :  { %v3138_v23 = vpop.f32.mrf.mxu1 }
 0x36f   :  { %v6560_v38 = vpack.c.bf16 %v3474_v10, %v3136_v36  ;;  %3008 = vmatmul.bf16.gmra.mxu0 %v8235_v40  ;;  %3346 = vmatmul.bf16.gmra.mxu2 %v8235_v40  ;;  %v3139_v41 = vadd.f32 %v3138_v23, %v2969_v22 }
 0x371   :  { %3177 = vmatmul.bf16.gmra.mxu1 %v8237_v52  ;;  %6816 = vst [vmem:[#allocation8 + $0x2e8] sm:$0xff] %v6560_v38  ;;  %3515 = vmatmul.bf16.gmra.mxu3 %v8237_v52 }
 0x372   :  { %v3307_v12 = vpop.f32.mrf.mxu2 }
 0x374   :  { %v3476_v45 = vpop.f32.mrf.mxu3  ;;  %v2971_v48 = vpop.f32.mrf.mxu0 }
 0x375   :  { %v3477_v34 = vadd.f32 %v3476_v45, %v3307_v12 }
 0x376   :  { %v3140_v11 = vpop.f32.mrf.mxu1 }
 0x377   :  { %v6564_v7 = vpack.c.bf16 %v3477_v34, %v3139_v41  ;;  %v3141_v8 = vadd.f32 %v3140_v11, %v2971_v48 }
 0x379   :  { %6820 = vst [vmem:[#allocation8 + $0x308] sm:$0xff] %v6564_v7 }
 0x37a   :  { %v3309_v13 = vpop.f32.mrf.mxu2 }
 0x37c   :  { %v3478_v61 = vpop.f32.mrf.mxu3  ;;  %v2974_v37 = vpop.f32.mrf.mxu0 }
 0x37d   :  { %v3479_v4 = vadd.f32 %v3478_v61, %v3309_v13  ;;  %v8829_v61 = vld [vmem:[#allocation16_spill] sm:$0xff] }
 0x37e   :  { %v3143_v2 = vpop.f32.mrf.mxu1 }
 0x37f   :  { %v6568_v60 = vpack.c.bf16 %v3479_v4, %v3141_v8  ;;  %3013 = vmatmul.bf16.gmra.mxu0 %v8827_v29  ;;  %3351 = vmatmul.bf16.gmra.mxu2 %v8827_v29  ;;  %v3144_v39 = vadd.f32 %v3143_v2, %v2974_v37  ;;  %v8830_v8 = vld [vmem:[#allocation17_spill] sm:$0xff]  ;;  %v7841_v37 = vld [vmem:[#allocation6 + $0x54] sm:$0xf] }
 0x380   :  { %v7307_v4 = vld [vmem:[#allocation6 + $0x70] sm:$0xf0] }
 0x381   :  { %3182 = vmatmul.bf16.gmra.mxu1 %v8828_v17  ;;  %6824 = vst [vmem:[#allocation8 + $0x328] sm:$0xff] %v6568_v60  ;;  %3520 = vmatmul.bf16.gmra.mxu3 %v8828_v17  ;;  %v7310_v2 = vor.u32 %v7841_v37, %v7307_v4  ;;  %v7905_v60 = vld [vmem:[#allocation6 + $0x254] sm:$0xf] }
 0x382   :  { %v3312_v22 = vpop.f32.mrf.mxu2 }
 0x383   :  { %3920 = vmatpush.bf16.msra.mxu2 %v7310_v2 }
 0x384   :  { %v3481_v36 = vpop.f32.mrf.mxu3  ;;  %v2976_v10 = vpop.f32.mrf.mxu0 }
 0x385   :  { %v3482_v23 = vadd.f32 %v3481_v36, %v3312_v22 }
 0x386   :  { %v3145_v38 = vpop.f32.mrf.mxu1 }
 0x387   :  { %v6572_v41 = vpack.c.bf16 %v3482_v23, %v3144_v39  ;;  %v3146_v34 = vadd.f32 %v3145_v38, %v2976_v10  ;;  %v7563_v39 = vld [vmem:[#allocation6 + $0x270] sm:$0xf0] }
 0x388   :  { %v7566_v10 = vor.u32 %v7905_v60, %v7563_v39  ;;  %v8831_v39 = vld [vmem:[#allocation18_spill] sm:$0xff] }
 0x389   :  { %6828 = vst [vmem:[#allocation8 + $0x348] sm:$0xff] %v6572_v41 }
 0x38a   :  { %v3314_v12 = vpop.f32.mrf.mxu2  ;;  %4089 = vmatpush.bf16.msra.mxu3 %v7566_v10 }
 0x38c   :  { %v3483_v45 = vpop.f32.mrf.mxu3  ;;  %v2979_v48 = vpop.f32.mrf.mxu0 }
 0x38d   :  { %v3484_v11 = vadd.f32 %v3483_v45, %v3314_v12 }
 0x38e   :  { %v3148_v7 = vpop.f32.mrf.mxu1 }
 0x38f   :  { %v6576_v13 = vpack.c.bf16 %v3484_v11, %v3146_v34  ;;  %3018 = vmatmul.bf16.gmra.mxu0 %v8829_v61  ;;  %3356 = vmatmul.bf16.gmra.mxu2 %v8829_v61  ;;  %v3149_v22 = vadd.f32 %v3148_v7, %v2979_v48  ;;  %v7305_v34 = vld [vmem:[#allocation6 + $0x50] sm:$0xf] }
 0x390   :  { %v7845_v11 = vld [vmem:[#allocation6 + $0x6c] sm:$0xf0] }
 0x391   :  { %3187 = vmatmul.bf16.gmra.mxu1 %v8830_v8  ;;  %6832 = vst [vmem:[#allocation8 + $0x368] sm:$0xff] %v6576_v13  ;;  %3525 = vmatmul.bf16.gmra.mxu3 %v8830_v8  ;;  %v7306_v13 = vor.u32 %v7845_v11, %v7305_v34  ;;  %v7561_v8 = vld [vmem:[#allocation6 + $0x250] sm:$0xf] }
 0x392   :  { %v3317_v36 = vpop.f32.mrf.mxu2  ;;  %v7909_v61 = vld [vmem:[#allocation6 + $0x26c] sm:$0xf0] }
 0x393   :  { %v7562_v37 = vor.u32 %v7909_v61, %v7561_v8  ;;  %3582 = vmatpush.bf16.msra.mxu0 %v7306_v13 }
 0x394   :  { %v3486_v23 = vpop.f32.mrf.mxu3  ;;  %v2981_v38 = vpop.f32.mrf.mxu0 }
 0x395   :  { %v3487_v41 = vadd.f32 %v3486_v23, %v3317_v36  ;;  %3751 = vmatpush.bf16.msra.mxu1 %v7562_v37  ;;  %v8832_v36 = vld [vmem:[#allocation19_spill] sm:$0xff] }
 0x396   :  { %v3150_v12 = vpop.f32.mrf.mxu1 }
 0x397   :  { %v6580_v45 = vpack.c.bf16 %v3487_v41, %v3149_v22  ;;  %v3151_v48 = vadd.f32 %v3150_v12, %v2981_v38 }
 0x399   :  { %6836 = vst [vmem:[#allocation8 + $0x388] sm:$0xff] %v6580_v45 }
 0x39a   :  { %v3319_v17 = vpop.f32.mrf.mxu2 }
 0x39c   :  { %v3488_v4 = vpop.f32.mrf.mxu3  ;;  %v2984_v29 = vpop.f32.mrf.mxu0 }
 0x39d   :  { %v3489_v7 = vadd.f32 %v3488_v4, %v3319_v17  ;;  %v8833_v4 = vld [vmem:[#allocation20_spill] sm:$0xff] }
 0x39e   :  { %v3153_v60 = vpop.f32.mrf.mxu1 }
 0x39f   :  { %v6584_v2 = vpack.c.bf16 %v3489_v7, %v3151_v48  ;;  %3023 = vmatmul.bf16.gmra.mxu0 %v8831_v39  ;;  %3361 = vmatmul.bf16.gmra.mxu2 %v8831_v39  ;;  %v3154_v22 = vadd.f32 %v3153_v60, %v2984_v29  ;;  %v8834_v48 = vld [vmem:[#allocation21_spill] sm:$0xff] }
 0x3a1   :  { %3192 = vmatmul.bf16.gmra.mxu1 %v8832_v36  ;;  %6840 = vst [vmem:[#allocation8 + $0x3a8] sm:$0xff] %v6584_v2  ;;  %3530 = vmatmul.bf16.gmra.mxu3 %v8832_v36 }
 0x3a2   :  { %v3322_v10 = vpop.f32.mrf.mxu2 }
 0x3a4   :  { %v3491_v61 = vpop.f32.mrf.mxu3  ;;  %v2986_v8 = vpop.f32.mrf.mxu0 }
 0x3a5   :  { %v3492_v23 = vadd.f32 %v3491_v61, %v3322_v10 }
 0x3a6   :  { %v3155_v41 = vpop.f32.mrf.mxu1 }
 0x3a7   :  { %v6588_v38 = vpack.c.bf16 %v3492_v23, %v3154_v22  ;;  %v3156_v34 = vadd.f32 %v3155_v41, %v2986_v8 }
 0x3a9   :  { %6844 = vst [vmem:[#allocation8 + $0x3c8] sm:$0xff] %v6588_v38 }
 0x3aa   :  { %v3324_v17 = vpop.f32.mrf.mxu2 }
 0x3ac   :  { %v3493_v12 = vpop.f32.mrf.mxu3  ;;  %v2989_v45 = vpop.f32.mrf.mxu0 }
 0x3ad   :  { %v3494_v11 = vadd.f32 %v3493_v12, %v3324_v17 }
 0x3ae   :  { %v3158_v13 = vpop.f32.mrf.mxu1 }
 0x3af   :  { %v6592_v37 = vpack.c.bf16 %v3494_v11, %v3156_v34  ;;  %3028 = vmatmul.bf16.gmra.mxu0 %v8833_v4  ;;  %3366 = vmatmul.bf16.gmra.mxu2 %v8833_v4  ;;  %v3159_v29 = vadd.f32 %v3158_v13, %v2989_v45  ;;  %v8835_v11 = vld [vmem:[#allocation22_spill] sm:$0xff]  ;;  %v8837_v4 = vld [vmem:[#allocation24_spill] sm:$0xff] }
 0x3b1   :  { %3197 = vmatmul.bf16.gmra.mxu1 %v8834_v48  ;;  %6848 = vst [vmem:[#allocation8 + $0x3e8] sm:$0xff] %v6592_v37  ;;  %3535 = vmatmul.bf16.gmra.mxu3 %v8834_v48  ;;  %v8836_v37 = vld [vmem:[#allocation23_spill] sm:$0xff] }
 0x3b2   :  { %v3327_v7 = vpop.f32.mrf.mxu2 }
 0x3b4   :  { %v3496_v60 = vpop.f32.mrf.mxu3  ;;  %v2991_v2 = vpop.f32.mrf.mxu0 }
 0x3b5   :  { %v3497_v22 = vadd.f32 %v3496_v60, %v3327_v7 }
 0x3b6   :  { %v3160_v10 = vpop.f32.mrf.mxu1 }
 0x3b7   :  { %v6596_v61 = vpack.c.bf16 %v3497_v22, %v3159_v29  ;;  %v3161_v38 = vadd.f32 %v3160_v10, %v2991_v2 }
 0x3b9   :  { %6852 = vst [vmem:[#allocation8 + $0x408] sm:$0xff] %v6596_v61 }
 0x3ba   :  { %v3329_v8 = vpop.f32.mrf.mxu2 }
 0x3bc   :  { %v3498_v23 = vpop.f32.mrf.mxu3  ;;  %v2994_v41 = vpop.f32.mrf.mxu0 }
 0x3bd   :  { %v3499_v17 = vadd.f32 %v3498_v23, %v3329_v8 }
 0x3be   :  { %v3163_v12 = vpop.f32.mrf.mxu1 }
 0x3bf   :  { %v6600_v34 = vpack.c.bf16 %v3499_v17, %v3161_v38  ;;  %3033 = vmatmul.bf16.gmra.mxu0 %v8835_v11  ;;  %3371 = vmatmul.bf16.gmra.mxu2 %v8835_v11  ;;  %v3164_v45 = vadd.f32 %v3163_v12, %v2994_v41  ;;  %v7833_v41 = vld [vmem:[#allocation6 + $0x14] sm:$0xf]  ;;  %v7901_v11 = vld [vmem:[#allocation6 + $0x22c] sm:$0xf0] }
 0x3c0   :  { %v7275_v12 = vld [vmem:[#allocation6 + $0x30] sm:$0xf0] }
 0x3c1   :  { %3202 = vmatmul.bf16.gmra.mxu1 %v8836_v37  ;;  %6856 = vst [vmem:[#allocation8 + $0x428] sm:$0xff] %v6600_v34  ;;  %3540 = vmatmul.bf16.gmra.mxu3 %v8836_v37  ;;  %v8838_v34 = vld [vmem:[#allocation25_spill] sm:$0xff] }
 0x3c2   :  { %v3332_v13 = vpop.f32.mrf.mxu2 }
 0x3c4   :  { %v3501_v29 = vpop.f32.mrf.mxu3  ;;  %v2996_v7 = vpop.f32.mrf.mxu0 }
 0x3c5   :  { %v3502_v60 = vadd.f32 %v3501_v29, %v3332_v13  ;;  %v7897_v13 = vld [vmem:[#allocation6 + $0x214] sm:$0xf] }
 0x3c6   :  { %v3165_v22 = vpop.f32.mrf.mxu1  ;;  %v7531_v29 = vld [vmem:[#allocation6 + $0x230] sm:$0xf0] }
 0x3c7   :  { %v6604_v61 = vpack.c.bf16 %v3502_v60, %v3164_v45  ;;  %v3166_v23 = vadd.f32 %v3165_v22, %v2996_v7  ;;  %v7278_v45 = vor.u32 %v7833_v41, %v7275_v12  ;;  %v7534_v7 = vor.u32 %v7897_v13, %v7531_v29  ;;  %v8839_v29 = vld [vmem:[#allocation26_spill] sm:$0xff] }
 0x3c9   :  { %6860 = vst [vmem:[#allocation8 + $0x448] sm:$0xff] %v6604_v61  ;;  %3921 = vmatpush.bf16.msra.mxu2 %v7278_v45  ;;  %4090 = vmatpush.bf16.msra.mxu3 %v7534_v7 }
 0x3ca   :  { %v3334_v2 = vpop.f32.mrf.mxu2 }
 0x3cc   :  { %v3503_v10 = vpop.f32.mrf.mxu3  ;;  %v2999_v8 = vpop.f32.mrf.mxu0 }
 0x3cd   :  { %v3504_v38 = vadd.f32 %v3503_v10, %v3334_v2 }
 0x3ce   :  { %v3168_v17 = vpop.f32.mrf.mxu1 }
 0x3cf   :  { %v6608_v48 = vpack.c.bf16 %v3504_v38, %v3166_v23  ;;  %3038 = vmatmul.bf16.gmra.mxu0 %v8837_v4  ;;  %3376 = vmatmul.bf16.gmra.mxu2 %v8837_v4  ;;  %v3169_v60 = vadd.f32 %v3168_v17, %v2999_v8  ;;  %v7273_v4 = vld [vmem:[#allocation6 + $0x10] sm:$0xf] }
 0x3d1   :  { %3207 = vmatmul.bf16.gmra.mxu1 %v8838_v34  ;;  %6864 = vst [vmem:[#allocation8 + $0x468] sm:$0xff] %v6608_v48  ;;  %3545 = vmatmul.bf16.gmra.mxu3 %v8838_v34  ;;  %v7837_v48 = vld [vmem:[#allocation6 + $0x2c] sm:$0xf0] }
 0x3d2   :  { %v3337_v61 = vpop.f32.mrf.mxu2  ;;  %v7274_v37 = vor.u32 %v7837_v48, %v7273_v4  ;;  %v7529_v34 = vld [vmem:[#allocation6 + $0x210] sm:$0xf] }
 0x3d3   :  { %v7530_v41 = vor.u32 %v7901_v11, %v7529_v34 }
 0x3d4   :  { %v3506_v22 = vpop.f32.mrf.mxu3  ;;  %v3001_v2 = vpop.f32.mrf.mxu0  ;;  %3583 = vmatpush.bf16.msra.mxu0 %v7274_v37 }
 0x3d5   :  { %v3507_v10 = vadd.f32 %v3506_v22, %v3337_v61  ;;  %3752 = vmatpush.bf16.msra.mxu1 %v7530_v41  ;;  %v8840_v61 = vld [vmem:[#allocation27_spill] sm:$0xff] }
 0x3d6   :  { %v3170_v23 = vpop.f32.mrf.mxu1 }
 0x3d7   :  { %v6612_v38 = vpack.c.bf16 %v3507_v10, %v3169_v60  ;;  %v3171_v8 = vadd.f32 %v3170_v23, %v3001_v2 }
 0x3d9   :  { %6868 = vst [vmem:[#allocation8 + $0x488] sm:$0xff] %v6612_v38 }
 0x3da   :  { %v3339_v36 = vpop.f32.mrf.mxu2 }
 0x3dc   :  { %v3508_v12 = vpop.f32.mrf.mxu3  ;;  %v3004_v39 = vpop.f32.mrf.mxu0 }
 0x3dd   :  { %v3509_v17 = vadd.f32 %v3508_v12, %v3339_v36  ;;  %v8841_v12 = vld [vmem:[#allocation28_spill] sm:$0xff] }
 0x3de   :  { %v3173_v13 = vpop.f32.mrf.mxu1 }
 0x3df   :  { %v6616_v45 = vpack.c.bf16 %v3509_v17, %v3171_v8  ;;  %3043 = vmatmul.bf16.gmra.mxu0 %v8839_v29  ;;  %3381 = vmatmul.bf16.gmra.mxu2 %v8839_v29  ;;  %v3174_v4 = vadd.f32 %v3173_v13, %v3004_v39  ;;  %v8842_v8 = vld [vmem:[#allocation29_spill] sm:$0xff] }
 0x3e1   :  { %3212 = vmatmul.bf16.gmra.mxu1 %v8840_v61  ;;  %6872 = vst [vmem:[#allocation8 + $0x4a8] sm:$0xff] %v6616_v45  ;;  %3550 = vmatmul.bf16.gmra.mxu3 %v8840_v61 }
 0x3e2   :  { %v3342_v60 = vpop.f32.mrf.mxu2 }
 0x3e4   :  { %v3511_v11 = vpop.f32.mrf.mxu3  ;;  %v3006_v34 = vpop.f32.mrf.mxu0 }
 0x3e5   :  { %v3512_v7 = vadd.f32 %v3511_v11, %v3342_v60 }
 0x3e6   :  { %v3175_v37 = vpop.f32.mrf.mxu1 }
 0x3e7   :  { %v6620_v22 = vpack.c.bf16 %v3512_v7, %v3174_v4  ;;  %v3176_v23 = vadd.f32 %v3175_v37, %v3006_v34 }
 0x3e9   :  { %6876 = vst [vmem:[#allocation8 + $0x4c8] sm:$0xff] %v6620_v22 }
 0x3ea   :  { %v3344_v36 = vpop.f32.mrf.mxu2 }
 0x3ec   :  { %v3513_v2 = vpop.f32.mrf.mxu3  ;;  %v3009_v10 = vpop.f32.mrf.mxu0 }
 0x3ed   :  { %v3514_v38 = vadd.f32 %v3513_v2, %v3344_v36 }
 0x3ee   :  { %v3178_v48 = vpop.f32.mrf.mxu1 }
 0x3ef   :  { %v6624_v41 = vpack.c.bf16 %v3514_v38, %v3176_v23  ;;  %3048 = vmatmul.bf16.gmra.mxu0 %v8841_v12  ;;  %3386 = vmatmul.bf16.gmra.mxu2 %v8841_v12  ;;  %v3179_v39 = vadd.f32 %v3178_v48, %v3009_v10  ;;  %v8843_v38 = vld [vmem:[#allocation30_spill] sm:$0xff]  ;;  %v8845_v12 = vld [vmem:[#allocation32_spill] sm:$0xff] }
 0x3f1   :  { %3217 = vmatmul.bf16.gmra.mxu1 %v8842_v8  ;;  %6880 = vst [vmem:[#allocation8 + $0x4e8] sm:$0xff] %v6624_v41  ;;  %3555 = vmatmul.bf16.gmra.mxu3 %v8842_v8  ;;  %v8844_v41 = vld [vmem:[#allocation31_spill] sm:$0xff] }
 0x3f2   :  { %v3347_v17 = vpop.f32.mrf.mxu2 }
 0x3f4   :  { %v3516_v13 = vpop.f32.mrf.mxu3  ;;  %v3011_v45 = vpop.f32.mrf.mxu0 }
 0x3f5   :  { %v3517_v4 = vadd.f32 %v3516_v13, %v3347_v17 }
 0x3f6   :  { %v3180_v60 = vpop.f32.mrf.mxu1 }
 0x3f7   :  { %v6628_v11 = vpack.c.bf16 %v3517_v4, %v3179_v39  ;;  %v3181_v22 = vadd.f32 %v3180_v60, %v3011_v45 }
 0x3f9   :  { %6884 = vst [vmem:[#allocation8 + $0x508] sm:$0xff] %v6628_v11 }
 0x3fa   :  { %v3349_v34 = vpop.f32.mrf.mxu2 }
 0x3fc   :  { %v3518_v7 = vpop.f32.mrf.mxu3  ;;  %v3014_v37 = vpop.f32.mrf.mxu0 }
 0x3fd   :  { %v3519_v36 = vadd.f32 %v3518_v7, %v3349_v34 }
 0x3fe   :  { %v3183_v2 = vpop.f32.mrf.mxu1 }
 0x3ff   :  { %v6632_v23 = vpack.c.bf16 %v3519_v36, %v3181_v22  ;;  %3053 = vmatmul.bf16.gmra.mxu0 %v8843_v38  ;;  %3391 = vmatmul.bf16.gmra.mxu2 %v8843_v38  ;;  %v3184_v10 = vadd.f32 %v3183_v2, %v3014_v37  ;;  %v7890_v37 = vld [vmem:[#allocation6 + $0x1dc] sm:$0xf]  ;;  %v7958_v38 = vld [vmem:[#allocation6 + $0x3f4] sm:$0xf0] }
 0x400   :  { %v7507_v2 = vld [vmem:[#allocation6 + $0x1f8] sm:$0xf0] }
 0x401   :  { %3222 = vmatmul.bf16.gmra.mxu1 %v8844_v41  ;;  %6888 = vst [vmem:[#allocation8 + $0x528] sm:$0xff] %v6632_v23  ;;  %3560 = vmatmul.bf16.gmra.mxu3 %v8844_v41  ;;  %v8846_v23 = vld [vmem:[#allocation33_spill] sm:$0xff] }
 0x402   :  { %v3352_v48 = vpop.f32.mrf.mxu2 }
 0x404   :  { %v3521_v39 = vpop.f32.mrf.mxu3  ;;  %v3016_v17 = vpop.f32.mrf.mxu0 }
 0x405   :  { %v3522_v13 = vadd.f32 %v3521_v39, %v3352_v48  ;;  %v7954_v48 = vld [vmem:[#allocation6 + $0x3dc] sm:$0xf] }
 0x406   :  { %v3185_v4 = vpop.f32.mrf.mxu1  ;;  %v7763_v39 = vld [vmem:[#allocation6 + $0x3f8] sm:$0xf0] }
 0x407   :  { %v6636_v11 = vpack.c.bf16 %v3522_v13, %v3184_v10  ;;  %v3186_v7 = vadd.f32 %v3185_v4, %v3016_v17  ;;  %v7510_v10 = vor.u32 %v7890_v37, %v7507_v2  ;;  %v7766_v17 = vor.u32 %v7954_v48, %v7763_v39 }
 0x409   :  { %6892 = vst [vmem:[#allocation8 + $0x548] sm:$0xff] %v6636_v11  ;;  %4590 = vmatpush.bf16.msrb.mxu2 %v7510_v10  ;;  %4759 = vmatpush.bf16.msrb.mxu3 %v7766_v17 }
 0x40a   :  { %v3354_v45 = vpop.f32.mrf.mxu2 }
 0x40c   :  { %v3523_v60 = vpop.f32.mrf.mxu3  ;;  %v3019_v34 = vpop.f32.mrf.mxu0 }
 0x40d   :  { %v3524_v22 = vadd.f32 %v3523_v60, %v3354_v45 }
 0x40e   :  { %v3188_v36 = vpop.f32.mrf.mxu1 }
 0x40f   :  { %v6640_v8 = vpack.c.bf16 %v3524_v22, %v3186_v7  ;;  %3058 = vmatmul.bf16.gmra.mxu0 %v8845_v12  ;;  %3396 = vmatmul.bf16.gmra.mxu2 %v8845_v12  ;;  %v3189_v13 = vadd.f32 %v3188_v36, %v3019_v34  ;;  %v7505_v12 = vld [vmem:[#allocation6 + $0x1d8] sm:$0xf] }
 0x411   :  { %3227 = vmatmul.bf16.gmra.mxu1 %v8846_v23  ;;  %6896 = vst [vmem:[#allocation8 + $0x568] sm:$0xff] %v6640_v8  ;;  %3565 = vmatmul.bf16.gmra.mxu3 %v8846_v23  ;;  %v7894_v8 = vld [vmem:[#allocation6 + $0x1f4] sm:$0xf0] }
 0x412   :  { %v3357_v11 = vpop.f32.mrf.mxu2  ;;  %v7506_v41 = vor.u32 %v7894_v8, %v7505_v12  ;;  %v7761_v23 = vld [vmem:[#allocation6 + $0x3d8] sm:$0xf] }
 0x413   :  { %v7762_v37 = vor.u32 %v7958_v38, %v7761_v23 }
 0x414   :  { %v3526_v4 = vpop.f32.mrf.mxu3  ;;  %v3021_v45 = vpop.f32.mrf.mxu0  ;;  %4252 = vmatpush.bf16.msrb.mxu0 %v7506_v41 }
 0x415   :  { %v3527_v60 = vadd.f32 %v3526_v4, %v3357_v11  ;;  %4421 = vmatpush.bf16.msrb.mxu1 %v7762_v37 }
 0x416   :  { %v3190_v7 = vpop.f32.mrf.mxu1 }
 0x417   :  { %v6644_v22 = vpack.c.bf16 %v3527_v60, %v3189_v13  ;;  %v3191_v34 = vadd.f32 %v3190_v7, %v3021_v45 }
 0x419   :  { %6900 = vst [vmem:[#allocation8 + $0x588] sm:$0xff] %v6644_v22 }
 0x41a   :  { %v3359_v61 = vpop.f32.mrf.mxu2 }
 0x41c   :  { %v3528_v2 = vpop.f32.mrf.mxu3  ;;  %v3024_v29 = vpop.f32.mrf.mxu0 }
 0x41d   :  { %v3529_v36 = vadd.f32 %v3528_v2, %v3359_v61 }
 0x41e   :  { %v3193_v48 = vpop.f32.mrf.mxu1 }
 0x41f   :  { %v6648_v10 = vpack.c.bf16 %v3529_v36, %v3191_v34  ;;  %3063 = vmatmul.bf16.gmra.mxu0 %v8323_v18  ;;  %3401 = vmatmul.bf16.gmra.mxu2 %v8323_v18  ;;  %v3194_v12 = vadd.f32 %v3193_v48, %v3024_v29 }
 0x421   :  { %3232 = vmatmul.bf16.gmra.mxu1 %v8325_v63  ;;  %6904 = vst [vmem:[#allocation8 + $0x5a8] sm:$0xff] %v6648_v10  ;;  %3570 = vmatmul.bf16.gmra.mxu3 %v8325_v63 }
 0x422   :  { %v3362_v39 = vpop.f32.mrf.mxu2 }
 0x424   :  { %v3531_v38 = vpop.f32.mrf.mxu3  ;;  %v3026_v23 = vpop.f32.mrf.mxu0 }
 0x425   :  { %v3532_v13 = vadd.f32 %v3531_v38, %v3362_v39 }
 0x426   :  { %v3195_v41 = vpop.f32.mrf.mxu1 }
 0x427   :  { %v6652_v11 = vpack.c.bf16 %v3532_v13, %v3194_v12  ;;  %v3196_v45 = vadd.f32 %v3195_v41, %v3026_v23 }
 0x429   :  { %6908 = vst [vmem:[#allocation8 + $0x5c8] sm:$0xff] %v6652_v11 }
 0x42a   :  { %v3364_v61 = vpop.f32.mrf.mxu2 }
 0x42c   :  { %v3533_v17 = vpop.f32.mrf.mxu3  ;;  %v3029_v4 = vpop.f32.mrf.mxu0 }
 0x42d   :  { %v3534_v60 = vadd.f32 %v3533_v17, %v3364_v61 }
 0x42e   :  { %v3198_v7 = vpop.f32.mrf.mxu1 }
 0x42f   :  { %v6656_v22 = vpack.c.bf16 %v3534_v60, %v3196_v45  ;;  %3584 = vmatmul.bf16.vlgmr.msra.gmra.mxu0 %v8075_v43  ;;  %3922 = vmatmul.bf16.vlgmr.msra.gmra.mxu2 %v8075_v43  ;;  %v3199_v29 = vadd.f32 %v3198_v7, %v3029_v4 }
 0x431   :  { %3753 = vmatmul.bf16.vlgmr.msra.gmra.mxu1 %v8077_v47  ;;  %6912 = vst [vmem:[#allocation8 + $0x5e8] sm:$0xff] %v6656_v22  ;;  %4091 = vmatmul.bf16.vlgmr.msra.gmra.mxu3 %v8077_v47 }
 0x432   :  { %v3367_v8 = vpop.f32.mrf.mxu2 }
 0x434   :  { %v3536_v37 = vpop.f32.mrf.mxu3  ;;  %v3031_v2 = vpop.f32.mrf.mxu0 }
 0x435   :  { %v3537_v34 = vadd.f32 %v3536_v37, %v3367_v8 }
 0x436   :  { %v3200_v36 = vpop.f32.mrf.mxu1 }
 0x437   :  { %v6660_v48 = vpack.c.bf16 %v3537_v34, %v3199_v29  ;;  %v3201_v38 = vadd.f32 %v3200_v36, %v3031_v2 }
 0x439   :  { %6916 = vst [vmem:[#allocation8 + $0x608] sm:$0xff] %v6660_v48  ;;  %v8847_v48 = vld [vmem:[#allocation12_spill] sm:$0xff] }
 0x43a   :  { %v3369_v10 = vpop.f32.mrf.mxu2 }
 0x43c   :  { %v3538_v12 = vpop.f32.mrf.mxu3  ;;  %v3034_v39 = vpop.f32.mrf.mxu0 }
 0x43d   :  { %v3539_v23 = vadd.f32 %v3538_v12, %v3369_v10  ;;  %v8848_v10 = vld [vmem:[#allocation13_spill] sm:$0xff]  ;;  %v7882_v12 = vld [vmem:[#allocation6 + $0x19c] sm:$0xf] }
 0x43e   :  { %v3203_v13 = vpop.f32.mrf.mxu1 }
 0x43f   :  { %v6664_v41 = vpack.c.bf16 %v3539_v23, %v3201_v38  ;;  %3589 = vmatmul.bf16.gmra.mxu0 %v8083_v54  ;;  %3927 = vmatmul.bf16.gmra.mxu2 %v8083_v54  ;;  %v3204_v11 = vadd.f32 %v3203_v13, %v3034_v39  ;;  %v7475_v39 = vld [vmem:[#allocation6 + $0x1b8] sm:$0xf0] }
 0x440   :  { %v7478_v38 = vor.u32 %v7882_v12, %v7475_v39  ;;  %v7946_v23 = vld [vmem:[#allocation6 + $0x39c] sm:$0xf] }
 0x441   :  { %3758 = vmatmul.bf16.gmra.mxu1 %v8085_v55  ;;  %6920 = vst [vmem:[#allocation8 + $0x628] sm:$0xff] %v6664_v41  ;;  %4096 = vmatmul.bf16.gmra.mxu3 %v8085_v55  ;;  %v7731_v13 = vld [vmem:[#allocation6 + $0x3b8] sm:$0xf0] }
 0x442   :  { %v3372_v61 = vpop.f32.mrf.mxu2  ;;  %4591 = vmatpush.bf16.msrb.mxu2 %v7478_v38 }
 0x444   :  { %v3541_v17 = vpop.f32.mrf.mxu3  ;;  %v3036_v4 = vpop.f32.mrf.mxu0 }
 0x445   :  { %v3542_v45 = vadd.f32 %v3541_v17, %v3372_v61  ;;  %v7734_v61 = vor.u32 %v7946_v23, %v7731_v13 }
 0x446   :  { %v3205_v60 = vpop.f32.mrf.mxu1 }
 0x447   :  { %v6668_v7 = vpack.c.bf16 %v3542_v45, %v3204_v11  ;;  %v3206_v37 = vadd.f32 %v3205_v60, %v3036_v4  ;;  %4760 = vmatpush.bf16.msrb.mxu3 %v7734_v61 }
 0x449   :  { %6924 = vst [vmem:[#allocation8 + $0x648] sm:$0xff] %v6668_v7 }
 0x44a   :  { %v3374_v22 = vpop.f32.mrf.mxu2 }
 0x44c   :  { %v3543_v29 = vpop.f32.mrf.mxu3  ;;  %v3039_v8 = vpop.f32.mrf.mxu0 }
 0x44d   :  { %v3544_v2 = vadd.f32 %v3543_v29, %v3374_v22  ;;  %v7473_v22 = vld [vmem:[#allocation6 + $0x198] sm:$0xf] }
 0x44e   :  { %v3208_v34 = vpop.f32.mrf.mxu1  ;;  %v7886_v29 = vld [vmem:[#allocation6 + $0x1b4] sm:$0xf0] }
 0x44f   :  { %v6672_v36 = vpack.c.bf16 %v3544_v2, %v3206_v37  ;;  %3594 = vmatmul.bf16.gmra.mxu0 %v8847_v48  ;;  %3932 = vmatmul.bf16.gmra.mxu2 %v8847_v48  ;;  %v3209_v41 = vadd.f32 %v3208_v34, %v3039_v8  ;;  %v7474_v37 = vor.u32 %v7886_v29, %v7473_v22  ;;  %v7729_v2 = vld [vmem:[#allocation6 + $0x398] sm:$0xf] }
 0x451   :  { %3763 = vmatmul.bf16.gmra.mxu1 %v8848_v10  ;;  %6928 = vst [vmem:[#allocation8 + $0x668] sm:$0xff] %v6672_v36  ;;  %4101 = vmatmul.bf16.gmra.mxu3 %v8848_v10  ;;  %v7950_v36 = vld [vmem:[#allocation6 + $0x3b4] sm:$0xf0] }
 0x452   :  { %v3377_v11 = vpop.f32.mrf.mxu2  ;;  %v7730_v12 = vor.u32 %v7950_v36, %v7729_v2  ;;  %4253 = vmatpush.bf16.msrb.mxu0 %v7474_v37 }
 0x454   :  { %v3546_v17 = vpop.f32.mrf.mxu3  ;;  %v3041_v4 = vpop.f32.mrf.mxu0  ;;  %4422 = vmatpush.bf16.msrb.mxu1 %v7730_v12 }
 0x455   :  { %v3547_v45 = vadd.f32 %v3546_v17, %v3377_v11 }
 0x456   :  { %v3210_v60 = vpop.f32.mrf.mxu1 }
 0x457   :  { %v6676_v7 = vpack.c.bf16 %v3547_v45, %v3209_v41  ;;  %v3211_v8 = vadd.f32 %v3210_v60, %v3041_v4 }
 0x459   :  { %6932 = vst [vmem:[#allocation8 + $0x688] sm:$0xff] %v6676_v7 }
 0x45a   :  { %v3379_v10 = vpop.f32.mrf.mxu2 }
 0x45c   :  { %v3548_v39 = vpop.f32.mrf.mxu3  ;;  %v3044_v48 = vpop.f32.mrf.mxu0 }
 0x45d   :  { %v3549_v34 = vadd.f32 %v3548_v39, %v3379_v10 }
 0x45e   :  { %v3213_v23 = vpop.f32.mrf.mxu1 }
 0x45f   :  { %v6680_v38 = vpack.c.bf16 %v3549_v34, %v3211_v8  ;;  %3599 = vmatmul.bf16.gmra.mxu0 %v8099_v14  ;;  %3937 = vmatmul.bf16.gmra.mxu2 %v8099_v14  ;;  %v3214_v13 = vadd.f32 %v3213_v23, %v3044_v48 }
 0x461   :  { %3768 = vmatmul.bf16.gmra.mxu1 %v8101_v15  ;;  %6936 = vst [vmem:[#allocation8 + $0x6a8] sm:$0xff] %v6680_v38  ;;  %4106 = vmatmul.bf16.gmra.mxu3 %v8101_v15 }
 0x462   :  { %v3382_v41 = vpop.f32.mrf.mxu2 }
 0x464   :  { %v3551_v11 = vpop.f32.mrf.mxu3  ;;  %v3046_v61 = vpop.f32.mrf.mxu0 }
 0x465   :  { %v3552_v17 = vadd.f32 %v3551_v11, %v3382_v41 }
 0x466   :  { %v3215_v45 = vpop.f32.mrf.mxu1 }
 0x467   :  { %v6684_v4 = vpack.c.bf16 %v3552_v17, %v3214_v13  ;;  %v3216_v22 = vadd.f32 %v3215_v45, %v3046_v61 }
 0x469   :  { %6940 = vst [vmem:[#allocation8 + $0x6c8] sm:$0xff] %v6684_v4 }
 0x46a   :  { %v3384_v10 = vpop.f32.mrf.mxu2 }
 0x46c   :  { %v3553_v60 = vpop.f32.mrf.mxu3  ;;  %v3049_v7 = vpop.f32.mrf.mxu0 }
 0x46d   :  { %v3554_v29 = vadd.f32 %v3553_v60, %v3384_v10 }
 0x46e   :  { %v3218_v37 = vpop.f32.mrf.mxu1 }
 0x46f   :  { %v6688_v2 = vpack.c.bf16 %v3554_v29, %v3216_v22  ;;  %3604 = vmatmul.bf16.gmra.mxu0 %v8107_v20  ;;  %3942 = vmatmul.bf16.gmra.mxu2 %v8107_v20  ;;  %v3219_v48 = vadd.f32 %v3218_v37, %v3049_v7 }
 0x471   :  { %3773 = vmatmul.bf16.gmra.mxu1 %v8109_v21  ;;  %6944 = vst [vmem:[#allocation8 + $0x6e8] sm:$0xff] %v6688_v2  ;;  %4111 = vmatmul.bf16.gmra.mxu3 %v8109_v21 }
 0x472   :  { %v3387_v36 = vpop.f32.mrf.mxu2 }
 0x474   :  { %v3556_v12 = vpop.f32.mrf.mxu3  ;;  %v3051_v39 = vpop.f32.mrf.mxu0 }
 0x475   :  { %v3557_v8 = vadd.f32 %v3556_v12, %v3387_v36 }
 0x476   :  { %v3220_v34 = vpop.f32.mrf.mxu1 }
 0x477   :  { %v6692_v23 = vpack.c.bf16 %v3557_v8, %v3219_v48  ;;  %v3221_v11 = vadd.f32 %v3220_v34, %v3051_v39 }
 0x479   :  { %6948 = vst [vmem:[#allocation8 + $0x708] sm:$0xff] %v6692_v23  ;;  %v7874_v23 = vld [vmem:[#allocation6 + $0x15c] sm:$0xf] }
 0x47a   :  { %v3389_v38 = vpop.f32.mrf.mxu2 }
 0x47c   :  { %v3558_v13 = vpop.f32.mrf.mxu3  ;;  %v3054_v41 = vpop.f32.mrf.mxu0 }
 0x47d   :  { %v3559_v61 = vadd.f32 %v3558_v13, %v3389_v38  ;;  %v7443_v38 = vld [vmem:[#allocation6 + $0x178] sm:$0xf0] }
 0x47e   :  { %v3223_v17 = vpop.f32.mrf.mxu1  ;;  %v7446_v13 = vor.u32 %v7874_v23, %v7443_v38 }
 0x47f   :  { %v6696_v45 = vpack.c.bf16 %v3559_v61, %v3221_v11  ;;  %3609 = vmatmul.bf16.gmra.mxu0 %v8115_v26  ;;  %3947 = vmatmul.bf16.gmra.mxu2 %v8115_v26  ;;  %v3224_v4 = vadd.f32 %v3223_v17, %v3054_v41  ;;  %v7938_v41 = vld [vmem:[#allocation6 + $0x35c] sm:$0xf] }
 0x480   :  { %v7699_v11 = vld [vmem:[#allocation6 + $0x378] sm:$0xf0]  ;;  %4592 = vmatpush.bf16.msrb.mxu2 %v7446_v13 }
 0x481   :  { %3778 = vmatmul.bf16.gmra.mxu1 %v8117_v27  ;;  %6952 = vst [vmem:[#allocation8 + $0x728] sm:$0xff] %v6696_v45  ;;  %4116 = vmatmul.bf16.gmra.mxu3 %v8117_v27  ;;  %v7702_v45 = vor.u32 %v7938_v41, %v7699_v11 }
 0x482   :  { %v3392_v10 = vpop.f32.mrf.mxu2 }
 0x483   :  { %4761 = vmatpush.bf16.msrb.mxu3 %v7702_v45 }
 0x484   :  { %v3561_v60 = vpop.f32.mrf.mxu3  ;;  %v3056_v7 = vpop.f32.mrf.mxu0 }
 0x485   :  { %v3562_v22 = vadd.f32 %v3561_v60, %v3392_v10 }
 0x486   :  { %v3225_v29 = vpop.f32.mrf.mxu1 }
 0x487   :  { %v6700_v37 = vpack.c.bf16 %v3562_v22, %v3224_v4  ;;  %v3226_v12 = vadd.f32 %v3225_v29, %v3056_v7  ;;  %v7441_v29 = vld [vmem:[#allocation6 + $0x158] sm:$0xf] }
 0x489   :  { %6956 = vst [vmem:[#allocation8 + $0x748] sm:$0xff] %v6700_v37  ;;  %v7878_v37 = vld [vmem:[#allocation6 + $0x174] sm:$0xf0] }
 0x48a   :  { %v3394_v2 = vpop.f32.mrf.mxu2 }
 0x48c   :  { %v3563_v48 = vpop.f32.mrf.mxu3  ;;  %v3059_v36 = vpop.f32.mrf.mxu0 }
 0x48d   :  { %v3564_v39 = vadd.f32 %v3563_v48, %v3394_v2  ;;  %v7442_v2 = vor.u32 %v7878_v37, %v7441_v29  ;;  %v7697_v48 = vld [vmem:[#allocation6 + $0x358] sm:$0xf] }
 0x48e   :  { %v3228_v8 = vpop.f32.mrf.mxu1 }
 0x48f   :  { %v6704_v34 = vpack.c.bf16 %v3564_v39, %v3226_v12  ;;  %3614 = vmatmul.bf16.gmra.mxu0 %v8123_v32  ;;  %3952 = vmatmul.bf16.gmra.mxu2 %v8123_v32  ;;  %v3229_v61 = vadd.f32 %v3228_v8, %v3059_v36  ;;  %v7942_v12 = vld [vmem:[#allocation6 + $0x374] sm:$0xf0] }
 0x490   :  { %4254 = vmatpush.bf16.msrb.mxu0 %v7442_v2 }
 0x491   :  { %3783 = vmatmul.bf16.gmra.mxu1 %v8125_v33  ;;  %6960 = vst [vmem:[#allocation8 + $0x768] sm:$0xff] %v6704_v34  ;;  %4121 = vmatmul.bf16.gmra.mxu3 %v8125_v33  ;;  %v7698_v34 = vor.u32 %v7942_v12, %v7697_v48 }
 0x492   :  { %v3397_v17 = vpop.f32.mrf.mxu2 }
 0x493   :  { %4423 = vmatpush.bf16.msrb.mxu1 %v7698_v34 }
 0x494   :  { %v3566_v4 = vpop.f32.mrf.mxu3  ;;  %v3061_v10 = vpop.f32.mrf.mxu0 }
 0x495   :  { %v3567_v60 = vadd.f32 %v3566_v4, %v3397_v17 }
 0x496   :  { %v3230_v7 = vpop.f32.mrf.mxu1 }
 0x497   :  { %v6708_v22 = vpack.c.bf16 %v3567_v60, %v3229_v61  ;;  %v3231_v36 = vadd.f32 %v3230_v7, %v3061_v10 }
 0x499   :  { %6964 = vst [vmem:[#allocation8 + $0x788] sm:$0xff] %v6708_v22 }
 0x49a   :  { %v3399_v39 = vpop.f32.mrf.mxu2 }
 0x49c   :  { %v3568_v23 = vpop.f32.mrf.mxu3  ;;  %v3064_v38 = vpop.f32.mrf.mxu0 }
 0x49d   :  { %v3569_v8 = vadd.f32 %v3568_v23, %v3399_v39 }
 0x49e   :  { %v3233_v41 = vpop.f32.mrf.mxu1 }
 0x49f   :  { %v6712_v13 = vpack.c.bf16 %v3569_v8, %v3231_v36  ;;  %3619 = vmatmul.bf16.gmra.mxu0 %v8131_v51  ;;  %3957 = vmatmul.bf16.gmra.mxu2 %v8131_v51  ;;  %v3234_v11 = vadd.f32 %v3233_v41, %v3064_v38 }
 0x4a1   :  { %3788 = vmatmul.bf16.gmra.mxu1 %v8133_v53  ;;  %6968 = vst [vmem:[#allocation8 + $0x7a8] sm:$0xff] %v6712_v13  ;;  %4126 = vmatmul.bf16.gmra.mxu3 %v8133_v53 }
 0x4a2   :  { %v3402_v61 = vpop.f32.mrf.mxu2 }
 0x4a4   :  { %v3571_v17 = vpop.f32.mrf.mxu3  ;;  %v3066_v45 = vpop.f32.mrf.mxu0 }
 0x4a5   :  { %v3572_v4 = vadd.f32 %v3571_v17, %v3402_v61 }
 0x4a6   :  { %v3235_v60 = vpop.f32.mrf.mxu1 }
 0x4a7   :  { %v6716_v10 = vpack.c.bf16 %v3572_v4, %v3234_v11  ;;  %v3236_v37 = vadd.f32 %v3235_v60, %v3066_v45 }
 0x4a9   :  { %6972 = vst [vmem:[#allocation8 + $0x7c8] sm:$0xff] %v6716_v10 }
 0x4aa   :  { %v3404_v7 = vpop.f32.mrf.mxu2 }
 0x4ac   :  { %v3573_v22 = vpop.f32.mrf.mxu3  ;;  %v3585_v29 = vpop.f32.mrf.mxu0 }
 0x4ad   :  { %v3574_v2 = vadd.f32 %v3573_v22, %v3404_v7 }
 0x4ae   :  { %v3754_v48 = vpop.f32.mrf.mxu1 }
 0x4af   :  { %v6720_v12 = vpack.c.bf16 %v3574_v2, %v3236_v37  ;;  %3624 = vmatmul.bf16.gmra.mxu0 %v8139_v62  ;;  %3962 = vmatmul.bf16.gmra.mxu2 %v8139_v62  ;;  %v3755_v39 = vadd.f32 %v3754_v48, %v3585_v29 }
 0x4b1   :  { %3793 = vmatmul.bf16.gmra.mxu1 %v8141_v0  ;;  %6976 = vst [vmem:[#allocation8 + $0x7e8] sm:$0xff] %v6720_v12  ;;  %4131 = vmatmul.bf16.gmra.mxu3 %v8141_v0 }
 0x4b2   :  { %v3923_v34 = vpop.f32.mrf.mxu2 }
 0x4b4   :  { %v4092_v23 = vpop.f32.mrf.mxu3  ;;  %v3587_v38 = vpop.f32.mrf.mxu0 }
 0x4b5   :  { %v4093_v36 = vadd.f32 %v4092_v23, %v3923_v34 }
 0x4b6   :  { %v3756_v8 = vpop.f32.mrf.mxu1 }
 0x4b7   :  { %v6469_v41 = vpack.c.bf16 %v4093_v36, %v3755_v39  ;;  %v3757_v17 = vadd.f32 %v3756_v8, %v3587_v38 }
 0x4b9   :  { %6725 = vst [vmem:[#allocation8 + $0x10] sm:$0xff] %v6469_v41  ;;  %v7866_v41 = vld [vmem:[#allocation6 + $0x11c] sm:$0xf] }
 0x4ba   :  { %v3925_v13 = vpop.f32.mrf.mxu2 }
 0x4bc   :  { %v4094_v11 = vpop.f32.mrf.mxu3  ;;  %v3590_v61 = vpop.f32.mrf.mxu0 }
 0x4bd   :  { %v4095_v45 = vadd.f32 %v4094_v11, %v3925_v13  ;;  %v7411_v13 = vld [vmem:[#allocation6 + $0x138] sm:$0xf0] }
 0x4be   :  { %v3759_v4 = vpop.f32.mrf.mxu1  ;;  %v7414_v11 = vor.u32 %v7866_v41, %v7411_v13 }
 0x4bf   :  { %v6473_v60 = vpack.c.bf16 %v4095_v45, %v3757_v17  ;;  %3629 = vmatmul.bf16.gmra.mxu0 %v8147_v16  ;;  %3967 = vmatmul.bf16.gmra.mxu2 %v8147_v16  ;;  %v3760_v10 = vadd.f32 %v3759_v4, %v3590_v61  ;;  %v7930_v61 = vld [vmem:[#allocation6 + $0x31c] sm:$0xf] }
 0x4c0   :  { %v7667_v17 = vld [vmem:[#allocation6 + $0x338] sm:$0xf0]  ;;  %4593 = vmatpush.bf16.msrb.mxu2 %v7414_v11 }
 0x4c1   :  { %3798 = vmatmul.bf16.gmra.mxu1 %v8149_v19  ;;  %6729 = vst [vmem:[#allocation8 + $0x30] sm:$0xff] %v6473_v60  ;;  %4136 = vmatmul.bf16.gmra.mxu3 %v8149_v19  ;;  %v7670_v60 = vor.u32 %v7930_v61, %v7667_v17 }
 0x4c2   :  { %v3928_v7 = vpop.f32.mrf.mxu2 }
 0x4c3   :  { %4762 = vmatpush.bf16.msrb.mxu3 %v7670_v60 }
 0x4c4   :  { %v4097_v22 = vpop.f32.mrf.mxu3  ;;  %v3592_v29 = vpop.f32.mrf.mxu0 }
 0x4c5   :  { %v4098_v37 = vadd.f32 %v4097_v22, %v3928_v7 }
 0x4c6   :  { %v3761_v2 = vpop.f32.mrf.mxu1 }
 0x4c7   :  { %v6477_v48 = vpack.c.bf16 %v4098_v37, %v3760_v10  ;;  %v3762_v23 = vadd.f32 %v3761_v2, %v3592_v29  ;;  %v7409_v2 = vld [vmem:[#allocation6 + $0x118] sm:$0xf] }
 0x4c9   :  { %6733 = vst [vmem:[#allocation8 + $0x50] sm:$0xff] %v6477_v48  ;;  %v7870_v48 = vld [vmem:[#allocation6 + $0x134] sm:$0xf0] }
 0x4ca   :  { %v3930_v12 = vpop.f32.mrf.mxu2 }
 0x4cc   :  { %v4099_v39 = vpop.f32.mrf.mxu3  ;;  %v3595_v34 = vpop.f32.mrf.mxu0 }
 0x4cd   :  { %v4100_v38 = vadd.f32 %v4099_v39, %v3930_v12  ;;  %v7410_v12 = vor.u32 %v7870_v48, %v7409_v2  ;;  %v7665_v39 = vld [vmem:[#allocation6 + $0x318] sm:$0xf] }
 0x4ce   :  { %v3764_v36 = vpop.f32.mrf.mxu1 }
 0x4cf   :  { %v6481_v8 = vpack.c.bf16 %v4100_v38, %v3762_v23  ;;  %3634 = vmatmul.bf16.gmra.mxu0 %v8155_v42  ;;  %3972 = vmatmul.bf16.gmra.mxu2 %v8155_v42  ;;  %v3765_v45 = vadd.f32 %v3764_v36, %v3595_v34  ;;  %v7934_v23 = vld [vmem:[#allocation6 + $0x334] sm:$0xf0] }
 0x4d0   :  { %4255 = vmatpush.bf16.msrb.mxu0 %v7410_v12 }
 0x4d1   :  { %3803 = vmatmul.bf16.gmra.mxu1 %v8157_v46  ;;  %6737 = vst [vmem:[#allocation8 + $0x70] sm:$0xff] %v6481_v8  ;;  %4141 = vmatmul.bf16.gmra.mxu3 %v8157_v46  ;;  %v7666_v8 = vor.u32 %v7934_v23, %v7665_v39 }
 0x4d2   :  { %v3933_v4 = vpop.f32.mrf.mxu2 }
 0x4d3   :  { %4424 = vmatpush.bf16.msrb.mxu1 %v7666_v8 }
 0x4d4   :  { %v4102_v10 = vpop.f32.mrf.mxu3  ;;  %v3597_v7 = vpop.f32.mrf.mxu0 }
 0x4d5   :  { %v4103_v22 = vadd.f32 %v4102_v10, %v3933_v4 }
 0x4d6   :  { %v3766_v29 = vpop.f32.mrf.mxu1 }
 0x4d7   :  { %v6485_v37 = vpack.c.bf16 %v4103_v22, %v3765_v45  ;;  %v3767_v34 = vadd.f32 %v3766_v29, %v3597_v7 }
 0x4d9   :  { %6741 = vst [vmem:[#allocation8 + $0x90] sm:$0xff] %v6485_v37 }
 0x4da   :  { %v3935_v38 = vpop.f32.mrf.mxu2 }
 0x4dc   :  { %v4104_v41 = vpop.f32.mrf.mxu3  ;;  %v3600_v13 = vpop.f32.mrf.mxu0 }
 0x4dd   :  { %v4105_v36 = vadd.f32 %v4104_v41, %v3935_v38 }
 0x4de   :  { %v3769_v61 = vpop.f32.mrf.mxu1 }
 0x4df   :  { %v6489_v11 = vpack.c.bf16 %v4105_v36, %v3767_v34  ;;  %3639 = vmatmul.bf16.gmra.mxu0 %v8163_v25  ;;  %3977 = vmatmul.bf16.gmra.mxu2 %v8163_v25  ;;  %v3770_v17 = vadd.f32 %v3769_v61, %v3600_v13 }
 0x4e1   :  { %3808 = vmatmul.bf16.gmra.mxu1 %v8165_v31  ;;  %6745 = vst [vmem:[#allocation8 + $0xb0] sm:$0xff] %v6489_v11  ;;  %4146 = vmatmul.bf16.gmra.mxu3 %v8165_v31 }
 0x4e2   :  { %v3938_v45 = vpop.f32.mrf.mxu2 }
 0x4e4   :  { %v4107_v4 = vpop.f32.mrf.mxu3  ;;  %v3602_v60 = vpop.f32.mrf.mxu0 }
 0x4e5   :  { %v4108_v10 = vadd.f32 %v4107_v4, %v3938_v45 }
 0x4e6   :  { %v3771_v22 = vpop.f32.mrf.mxu1 }
 0x4e7   :  { %v6493_v7 = vpack.c.bf16 %v4108_v10, %v3770_v17  ;;  %v3772_v48 = vadd.f32 %v3771_v22, %v3602_v60 }
 0x4e9   :  { %6749 = vst [vmem:[#allocation8 + $0xd0] sm:$0xff] %v6493_v7 }
 0x4ea   :  { %v3940_v29 = vpop.f32.mrf.mxu2 }
 0x4ec   :  { %v4109_v37 = vpop.f32.mrf.mxu3  ;;  %v3605_v2 = vpop.f32.mrf.mxu0 }
 0x4ed   :  { %v4110_v12 = vadd.f32 %v4109_v37, %v3940_v29 }
 0x4ee   :  { %v3774_v39 = vpop.f32.mrf.mxu1 }
 0x4ef   :  { %v6497_v23 = vpack.c.bf16 %v4110_v12, %v3772_v48  ;;  %3644 = vmatmul.bf16.gmra.mxu0 %v8171_v58  ;;  %3982 = vmatmul.bf16.gmra.mxu2 %v8171_v58  ;;  %v3775_v38 = vadd.f32 %v3774_v39, %v3605_v2 }
 0x4f1   :  { %3813 = vmatmul.bf16.gmra.mxu1 %v8173_v1  ;;  %6753 = vst [vmem:[#allocation8 + $0xf0] sm:$0xff] %v6497_v23  ;;  %4151 = vmatmul.bf16.gmra.mxu3 %v8173_v1 }
 0x4f2   :  { %v3943_v8 = vpop.f32.mrf.mxu2 }
 0x4f4   :  { %v4112_v41 = vpop.f32.mrf.mxu3  ;;  %v3607_v13 = vpop.f32.mrf.mxu0 }
 0x4f5   :  { %v4113_v34 = vadd.f32 %v4112_v41, %v3943_v8 }
 0x4f6   :  { %v3776_v36 = vpop.f32.mrf.mxu1 }
 0x4f7   :  { %v6501_v61 = vpack.c.bf16 %v4113_v34, %v3775_v38  ;;  %v3777_v4 = vadd.f32 %v3776_v36, %v3607_v13 }
 0x4f9   :  { %6757 = vst [vmem:[#allocation8 + $0x110] sm:$0xff] %v6501_v61  ;;  %v7858_v61 = vld [vmem:[#allocation6 + $0xdc] sm:$0xf] }
 0x4fa   :  { %v3945_v11 = vpop.f32.mrf.mxu2 }
 0x4fc   :  { %v4114_v17 = vpop.f32.mrf.mxu3  ;;  %v3610_v45 = vpop.f32.mrf.mxu0 }
 0x4fd   :  { %v4115_v60 = vadd.f32 %v4114_v17, %v3945_v11  ;;  %v7379_v11 = vld [vmem:[#allocation6 + $0xf8] sm:$0xf0] }
 0x4fe   :  { %v3779_v10 = vpop.f32.mrf.mxu1  ;;  %v7382_v17 = vor.u32 %v7858_v61, %v7379_v11 }
 0x4ff   :  { %v6505_v22 = vpack.c.bf16 %v4115_v60, %v3777_v4  ;;  %3649 = vmatmul.bf16.gmra.mxu0 %v8179_v24  ;;  %3987 = vmatmul.bf16.gmra.mxu2 %v8179_v24  ;;  %v3780_v7 = vadd.f32 %v3779_v10, %v3610_v45  ;;  %v7922_v45 = vld [vmem:[#allocation6 + $0x2dc] sm:$0xf] }
 0x500   :  { %v7635_v4 = vld [vmem:[#allocation6 + $0x2f8] sm:$0xf0]  ;;  %4594 = vmatpush.bf16.msrb.mxu2 %v7382_v17 }
 0x501   :  { %3818 = vmatmul.bf16.gmra.mxu1 %v8181_v30  ;;  %6761 = vst [vmem:[#allocation8 + $0x130] sm:$0xff] %v6505_v22  ;;  %4156 = vmatmul.bf16.gmra.mxu3 %v8181_v30  ;;  %v7638_v22 = vor.u32 %v7922_v45, %v7635_v4 }
 0x502   :  { %v3948_v29 = vpop.f32.mrf.mxu2 }
 0x503   :  { %4763 = vmatpush.bf16.msrb.mxu3 %v7638_v22 }
 0x504   :  { %v4117_v37 = vpop.f32.mrf.mxu3  ;;  %v3612_v2 = vpop.f32.mrf.mxu0 }
 0x505   :  { %v4118_v48 = vadd.f32 %v4117_v37, %v3948_v29 }
 0x506   :  { %v3781_v12 = vpop.f32.mrf.mxu1 }
 0x507   :  { %v6509_v39 = vpack.c.bf16 %v4118_v48, %v3780_v7  ;;  %v3782_v41 = vadd.f32 %v3781_v12, %v3612_v2  ;;  %v7377_v12 = vld [vmem:[#allocation6 + $0xd8] sm:$0xf] }
 0x509   :  { %6765 = vst [vmem:[#allocation8 + $0x150] sm:$0xff] %v6509_v39  ;;  %v7862_v39 = vld [vmem:[#allocation6 + $0xf4] sm:$0xf0] }
 0x50a   :  { %v3950_v23 = vpop.f32.mrf.mxu2 }
 0x50c   :  { %v4119_v38 = vpop.f32.mrf.mxu3  ;;  %v3615_v8 = vpop.f32.mrf.mxu0 }
 0x50d   :  { %v4120_v13 = vadd.f32 %v4119_v38, %v3950_v23  ;;  %v7378_v23 = vor.u32 %v7862_v39, %v7377_v12  ;;  %v7633_v38 = vld [vmem:[#allocation6 + $0x2d8] sm:$0xf] }
 0x50e   :  { %v3784_v34 = vpop.f32.mrf.mxu1 }
 0x50f   :  { %v6513_v36 = vpack.c.bf16 %v4120_v13, %v3782_v41  ;;  %3654 = vmatmul.bf16.gmra.mxu0 %v8187_v59  ;;  %3992 = vmatmul.bf16.gmra.mxu2 %v8187_v59  ;;  %v3785_v60 = vadd.f32 %v3784_v34, %v3615_v8  ;;  %v7926_v41 = vld [vmem:[#allocation6 + $0x2f4] sm:$0xf0] }
 0x510   :  { %4256 = vmatpush.bf16.msrb.mxu0 %v7378_v23 }
 0x511   :  { %3823 = vmatmul.bf16.gmra.mxu1 %v8189_v3  ;;  %6769 = vst [vmem:[#allocation8 + $0x170] sm:$0xff] %v6513_v36  ;;  %4161 = vmatmul.bf16.gmra.mxu3 %v8189_v3  ;;  %v7634_v36 = vor.u32 %v7926_v41, %v7633_v38 }
 0x512   :  { %v3953_v10 = vpop.f32.mrf.mxu2 }
 0x513   :  { %4425 = vmatpush.bf16.msrb.mxu1 %v7634_v36 }
 0x514   :  { %v4122_v7 = vpop.f32.mrf.mxu3  ;;  %v3617_v29 = vpop.f32.mrf.mxu0 }
 0x515   :  { %v4123_v37 = vadd.f32 %v4122_v7, %v3953_v10 }
 0x516   :  { %v3786_v2 = vpop.f32.mrf.mxu1 }
 0x517   :  { %v6517_v48 = vpack.c.bf16 %v4123_v37, %v3785_v60  ;;  %v3787_v8 = vadd.f32 %v3786_v2, %v3617_v29 }
 0x519   :  { %6773 = vst [vmem:[#allocation8 + $0x190] sm:$0xff] %v6517_v48 }
 0x51a   :  { %v3955_v13 = vpop.f32.mrf.mxu2 }
 0x51c   :  { %v4124_v61 = vpop.f32.mrf.mxu3  ;;  %v3620_v11 = vpop.f32.mrf.mxu0 }
 0x51d   :  { %v4125_v34 = vadd.f32 %v4124_v61, %v3955_v13 }
 0x51e   :  { %v3789_v45 = vpop.f32.mrf.mxu1 }
 0x51f   :  { %v6521_v17 = vpack.c.bf16 %v4125_v34, %v3787_v8  ;;  %3659 = vmatmul.bf16.gmra.mxu0 %v8195_v49  ;;  %3997 = vmatmul.bf16.gmra.mxu2 %v8195_v49  ;;  %v3790_v4 = vadd.f32 %v3789_v45, %v3620_v11 }
 0x521   :  { %3828 = vmatmul.bf16.gmra.mxu1 %v8197_v57  ;;  %6777 = vst [vmem:[#allocation8 + $0x1b0] sm:$0xff] %v6521_v17  ;;  %4166 = vmatmul.bf16.gmra.mxu3 %v8197_v57 }
 0x522   :  { %v3958_v60 = vpop.f32.mrf.mxu2 }
 0x524   :  { %v4127_v10 = vpop.f32.mrf.mxu3  ;;  %v3622_v22 = vpop.f32.mrf.mxu0 }
 0x525   :  { %v4128_v7 = vadd.f32 %v4127_v10, %v3958_v60 }
 0x526   :  { %v3791_v37 = vpop.f32.mrf.mxu1 }
 0x527   :  { %v6525_v29 = vpack.c.bf16 %v4128_v7, %v3790_v4  ;;  %v3792_v39 = vadd.f32 %v3791_v37, %v3622_v22 }
 0x529   :  { %6781 = vst [vmem:[#allocation8 + $0x1d0] sm:$0xff] %v6525_v29 }
 0x52a   :  { %v3960_v2 = vpop.f32.mrf.mxu2 }
 0x52c   :  { %v4129_v48 = vpop.f32.mrf.mxu3  ;;  %v3625_v12 = vpop.f32.mrf.mxu0 }
 0x52d   :  { %v4130_v23 = vadd.f32 %v4129_v48, %v3960_v2 }
 0x52e   :  { %v3794_v38 = vpop.f32.mrf.mxu1 }
 0x52f   :  { %v6529_v41 = vpack.c.bf16 %v4130_v23, %v3792_v39  ;;  %3664 = vmatmul.bf16.gmra.mxu0 %v8203_v28  ;;  %4002 = vmatmul.bf16.gmra.mxu2 %v8203_v28  ;;  %v3795_v13 = vadd.f32 %v3794_v38, %v3625_v12 }
 0x531   :  { %3833 = vmatmul.bf16.gmra.mxu1 %v8205_v35  ;;  %6785 = vst [vmem:[#allocation8 + $0x1f0] sm:$0xff] %v6529_v41  ;;  %4171 = vmatmul.bf16.gmra.mxu3 %v8205_v35 }
 0x532   :  { %v3963_v36 = vpop.f32.mrf.mxu2 }
 0x534   :  { %v4132_v61 = vpop.f32.mrf.mxu3  ;;  %v3627_v11 = vpop.f32.mrf.mxu0 }
 0x535   :  { %v4133_v8 = vadd.f32 %v4132_v61, %v3963_v36 }
 0x536   :  { %v3796_v34 = vpop.f32.mrf.mxu1 }
 0x537   :  { %v6533_v45 = vpack.c.bf16 %v4133_v8, %v3795_v13  ;;  %v3797_v10 = vadd.f32 %v3796_v34, %v3627_v11 }
 0x539   :  { %6789 = vst [vmem:[#allocation8 + $0x210] sm:$0xff] %v6533_v45  ;;  %v7850_v45 = vld [vmem:[#allocation6 + $0x9c] sm:$0xf] }
 0x53a   :  { %v3965_v17 = vpop.f32.mrf.mxu2 }
 0x53c   :  { %v4134_v4 = vpop.f32.mrf.mxu3  ;;  %v3630_v60 = vpop.f32.mrf.mxu0 }
 0x53d   :  { %v4135_v22 = vadd.f32 %v4134_v4, %v3965_v17  ;;  %v7347_v17 = vld [vmem:[#allocation6 + $0xb8] sm:$0xf0] }
 0x53e   :  { %v3799_v7 = vpop.f32.mrf.mxu1  ;;  %v7350_v4 = vor.u32 %v7850_v45, %v7347_v17 }
 0x53f   :  { %v6537_v37 = vpack.c.bf16 %v4135_v22, %v3797_v10  ;;  %3669 = vmatmul.bf16.gmra.mxu0 %v8211_v6  ;;  %4007 = vmatmul.bf16.gmra.mxu2 %v8211_v6  ;;  %v3800_v29 = vadd.f32 %v3799_v7, %v3630_v60  ;;  %v7914_v60 = vld [vmem:[#allocation6 + $0x29c] sm:$0xf] }
 0x540   :  { %v7603_v10 = vld [vmem:[#allocation6 + $0x2b8] sm:$0xf0]  ;;  %4595 = vmatpush.bf16.msrb.mxu2 %v7350_v4 }
 0x541   :  { %3838 = vmatmul.bf16.gmra.mxu1 %v8213_v9  ;;  %6793 = vst [vmem:[#allocation8 + $0x230] sm:$0xff] %v6537_v37  ;;  %4176 = vmatmul.bf16.gmra.mxu3 %v8213_v9  ;;  %v7606_v37 = vor.u32 %v7914_v60, %v7603_v10 }
 0x542   :  { %v3968_v2 = vpop.f32.mrf.mxu2 }
 0x543   :  { %4764 = vmatpush.bf16.msrb.mxu3 %v7606_v37 }
 0x544   :  { %v4137_v48 = vpop.f32.mrf.mxu3  ;;  %v3632_v12 = vpop.f32.mrf.mxu0 }
 0x545   :  { %v4138_v39 = vadd.f32 %v4137_v48, %v3968_v2 }
 0x546   :  { %v3801_v23 = vpop.f32.mrf.mxu1 }
 0x547   :  { %v6541_v38 = vpack.c.bf16 %v4138_v39, %v3800_v29  ;;  %v3802_v61 = vadd.f32 %v3801_v23, %v3632_v12  ;;  %v7345_v23 = vld [vmem:[#allocation6 + $0x98] sm:$0xf] }
 0x549   :  { %6797 = vst [vmem:[#allocation8 + $0x250] sm:$0xff] %v6541_v38  ;;  %v7854_v38 = vld [vmem:[#allocation6 + $0xb4] sm:$0xf0] }
 0x54a   :  { %v3970_v41 = vpop.f32.mrf.mxu2 }
 0x54c   :  { %v4139_v13 = vpop.f32.mrf.mxu3  ;;  %v3635_v36 = vpop.f32.mrf.mxu0 }
 0x54d   :  { %v4140_v11 = vadd.f32 %v4139_v13, %v3970_v41  ;;  %v7346_v41 = vor.u32 %v7854_v38, %v7345_v23  ;;  %v7601_v13 = vld [vmem:[#allocation6 + $0x298] sm:$0xf] }
 0x54e   :  { %v3804_v8 = vpop.f32.mrf.mxu1 }
 0x54f   :  { %v6545_v34 = vpack.c.bf16 %v4140_v11, %v3802_v61  ;;  %3674 = vmatmul.bf16.gmra.mxu0 %v8219_v44  ;;  %4012 = vmatmul.bf16.gmra.mxu2 %v8219_v44  ;;  %v3805_v22 = vadd.f32 %v3804_v8, %v3635_v36  ;;  %v7918_v61 = vld [vmem:[#allocation6 + $0x2b4] sm:$0xf0] }
 0x550   :  { %4257 = vmatpush.bf16.msrb.mxu0 %v7346_v41 }
 0x551   :  { %3843 = vmatmul.bf16.gmra.mxu1 %v8221_v50  ;;  %6801 = vst [vmem:[#allocation8 + $0x270] sm:$0xff] %v6545_v34  ;;  %4181 = vmatmul.bf16.gmra.mxu3 %v8221_v50  ;;  %v7602_v34 = vor.u32 %v7918_v61, %v7601_v13 }
 0x552   :  { %v3973_v7 = vpop.f32.mrf.mxu2 }
 0x553   :  { %4426 = vmatpush.bf16.msrb.mxu1 %v7602_v34 }
 0x554   :  { %v4142_v29 = vpop.f32.mrf.mxu3  ;;  %v3637_v2 = vpop.f32.mrf.mxu0 }
 0x555   :  { %v4143_v48 = vadd.f32 %v4142_v29, %v3973_v7 }
 0x556   :  { %v3806_v12 = vpop.f32.mrf.mxu1 }
 0x557   :  { %v6549_v39 = vpack.c.bf16 %v4143_v48, %v3805_v22  ;;  %v3807_v36 = vadd.f32 %v3806_v12, %v3637_v2 }
 0x559   :  { %6805 = vst [vmem:[#allocation8 + $0x290] sm:$0xff] %v6549_v39 }
 0x55a   :  { %v3975_v11 = vpop.f32.mrf.mxu2 }
 0x55c   :  { %v4144_v45 = vpop.f32.mrf.mxu3  ;;  %v3640_v17 = vpop.f32.mrf.mxu0 }
 0x55d   :  { %v4145_v8 = vadd.f32 %v4144_v45, %v3975_v11 }
 0x55e   :  { %v3809_v60 = vpop.f32.mrf.mxu1 }
 0x55f   :  { %v6553_v4 = vpack.c.bf16 %v4145_v8, %v3807_v36  ;;  %3679 = vmatmul.bf16.gmra.mxu0 %v8227_v56  ;;  %4017 = vmatmul.bf16.gmra.mxu2 %v8227_v56  ;;  %v3810_v10 = vadd.f32 %v3809_v60, %v3640_v17 }
 0x561   :  { %3848 = vmatmul.bf16.gmra.mxu1 %v8229_v5  ;;  %6809 = vst [vmem:[#allocation8 + $0x2b0] sm:$0xff] %v6553_v4  ;;  %4186 = vmatmul.bf16.gmra.mxu3 %v8229_v5 }
 0x562   :  { %v3978_v22 = vpop.f32.mrf.mxu2 }
 0x564   :  { %v4147_v7 = vpop.f32.mrf.mxu3  ;;  %v3642_v37 = vpop.f32.mrf.mxu0 }
 0x565   :  { %v4148_v29 = vadd.f32 %v4147_v7, %v3978_v22 }
 0x566   :  { %v3811_v48 = vpop.f32.mrf.mxu1 }
 0x567   :  { %v6557_v2 = vpack.c.bf16 %v4148_v29, %v3810_v10  ;;  %v3812_v38 = vadd.f32 %v3811_v48, %v3642_v37 }
 0x569   :  { %6813 = vst [vmem:[#allocation8 + $0x2d0] sm:$0xff] %v6557_v2  ;;  %v8849_v2 = vld [vmem:[#allocation14_spill] sm:$0xff] }
 0x56a   :  { %v3980_v12 = vpop.f32.mrf.mxu2 }
 0x56c   :  { %v4149_v39 = vpop.f32.mrf.mxu3  ;;  %v3645_v23 = vpop.f32.mrf.mxu0 }
 0x56d   :  { %v4150_v41 = vadd.f32 %v4149_v39, %v3980_v12  ;;  %v8850_v12 = vld [vmem:[#allocation15_spill] sm:$0xff] }
 0x56e   :  { %v3814_v13 = vpop.f32.mrf.mxu1 }
 0x56f   :  { %v6561_v61 = vpack.c.bf16 %v4150_v41, %v3812_v38  ;;  %3684 = vmatmul.bf16.gmra.mxu0 %v8235_v40  ;;  %4022 = vmatmul.bf16.gmra.mxu2 %v8235_v40  ;;  %v3815_v11 = vadd.f32 %v3814_v13, %v3645_v23 }
 0x571   :  { %3853 = vmatmul.bf16.gmra.mxu1 %v8237_v52  ;;  %6817 = vst [vmem:[#allocation8 + $0x2f0] sm:$0xff] %v6561_v61  ;;  %4191 = vmatmul.bf16.gmra.mxu3 %v8237_v52 }
 0x572   :  { %v3983_v34 = vpop.f32.mrf.mxu2 }
 0x574   :  { %v4152_v45 = vpop.f32.mrf.mxu3  ;;  %v3647_v17 = vpop.f32.mrf.mxu0 }
 0x575   :  { %v4153_v36 = vadd.f32 %v4152_v45, %v3983_v34 }
 0x576   :  { %v3816_v8 = vpop.f32.mrf.mxu1 }
 0x577   :  { %v6565_v60 = vpack.c.bf16 %v4153_v36, %v3815_v11  ;;  %v3817_v7 = vadd.f32 %v3816_v8, %v3647_v17 }
 0x579   :  { %6821 = vst [vmem:[#allocation8 + $0x310] sm:$0xff] %v6565_v60 }
 0x57a   :  { %v3985_v4 = vpop.f32.mrf.mxu2 }
 0x57c   :  { %v4154_v10 = vpop.f32.mrf.mxu3  ;;  %v3650_v22 = vpop.f32.mrf.mxu0 }
 0x57d   :  { %v4155_v37 = vadd.f32 %v4154_v10, %v3985_v4  ;;  %v8851_v10 = vld [vmem:[#allocation16_spill] sm:$0xff] }
 0x57e   :  { %v3819_v29 = vpop.f32.mrf.mxu1 }
 0x57f   :  { %v6569_v48 = vpack.c.bf16 %v4155_v37, %v3817_v7  ;;  %3689 = vmatmul.bf16.gmra.mxu0 %v8849_v2  ;;  %4027 = vmatmul.bf16.gmra.mxu2 %v8849_v2  ;;  %v3820_v39 = vadd.f32 %v3819_v29, %v3650_v22  ;;  %v8852_v7 = vld [vmem:[#allocation17_spill] sm:$0xff]  ;;  %v7842_v22 = vld [vmem:[#allocation6 + $0x5c] sm:$0xf] }
 0x580   :  { %v7315_v37 = vld [vmem:[#allocation6 + $0x78] sm:$0xf0] }
 0x581   :  { %3858 = vmatmul.bf16.gmra.mxu1 %v8850_v12  ;;  %6825 = vst [vmem:[#allocation8 + $0x330] sm:$0xff] %v6569_v48  ;;  %4196 = vmatmul.bf16.gmra.mxu3 %v8850_v12  ;;  %v7318_v29 = vor.u32 %v7842_v22, %v7315_v37  ;;  %v7906_v48 = vld [vmem:[#allocation6 + $0x25c] sm:$0xf] }
 0x582   :  { %v3988_v23 = vpop.f32.mrf.mxu2 }
 0x583   :  { %4596 = vmatpush.bf16.msrb.mxu2 %v7318_v29 }
 0x584   :  { %v4157_v38 = vpop.f32.mrf.mxu3  ;;  %v3652_v41 = vpop.f32.mrf.mxu0 }
 0x585   :  { %v4158_v13 = vadd.f32 %v4157_v38, %v3988_v23 }
 0x586   :  { %v3821_v61 = vpop.f32.mrf.mxu1 }
 0x587   :  { %v6573_v11 = vpack.c.bf16 %v4158_v13, %v3820_v39  ;;  %v3822_v36 = vadd.f32 %v3821_v61, %v3652_v41  ;;  %v7571_v39 = vld [vmem:[#allocation6 + $0x278] sm:$0xf0] }
 0x588   :  { %v7574_v41 = vor.u32 %v7906_v48, %v7571_v39  ;;  %v8853_v39 = vld [vmem:[#allocation18_spill] sm:$0xff] }
 0x589   :  { %6829 = vst [vmem:[#allocation8 + $0x350] sm:$0xff] %v6573_v11 }
 0x58a   :  { %v3990_v34 = vpop.f32.mrf.mxu2  ;;  %4765 = vmatpush.bf16.msrb.mxu3 %v7574_v41 }
 0x58c   :  { %v4159_v45 = vpop.f32.mrf.mxu3  ;;  %v3655_v17 = vpop.f32.mrf.mxu0 }
 0x58d   :  { %v4160_v8 = vadd.f32 %v4159_v45, %v3990_v34 }
 0x58e   :  { %v3824_v60 = vpop.f32.mrf.mxu1 }
 0x58f   :  { %v6577_v4 = vpack.c.bf16 %v4160_v8, %v3822_v36  ;;  %3694 = vmatmul.bf16.gmra.mxu0 %v8851_v10  ;;  %4032 = vmatmul.bf16.gmra.mxu2 %v8851_v10  ;;  %v3825_v23 = vadd.f32 %v3824_v60, %v3655_v17  ;;  %v7313_v36 = vld [vmem:[#allocation6 + $0x58] sm:$0xf] }
 0x590   :  { %v7846_v8 = vld [vmem:[#allocation6 + $0x74] sm:$0xf0] }
 0x591   :  { %3863 = vmatmul.bf16.gmra.mxu1 %v8852_v7  ;;  %6833 = vst [vmem:[#allocation8 + $0x370] sm:$0xff] %v6577_v4  ;;  %4201 = vmatmul.bf16.gmra.mxu3 %v8852_v7  ;;  %v7314_v4 = vor.u32 %v7846_v8, %v7313_v36  ;;  %v7569_v7 = vld [vmem:[#allocation6 + $0x258] sm:$0xf] }
 0x592   :  { %v3993_v38 = vpop.f32.mrf.mxu2  ;;  %v7910_v10 = vld [vmem:[#allocation6 + $0x274] sm:$0xf0] }
 0x593   :  { %v7570_v22 = vor.u32 %v7910_v10, %v7569_v7  ;;  %4258 = vmatpush.bf16.msrb.mxu0 %v7314_v4 }
 0x594   :  { %v4162_v13 = vpop.f32.mrf.mxu3  ;;  %v3657_v61 = vpop.f32.mrf.mxu0 }
 0x595   :  { %v4163_v11 = vadd.f32 %v4162_v13, %v3993_v38  ;;  %4427 = vmatpush.bf16.msrb.mxu1 %v7570_v22  ;;  %v8854_v38 = vld [vmem:[#allocation19_spill] sm:$0xff] }
 0x596   :  { %v3826_v34 = vpop.f32.mrf.mxu1 }
 0x597   :  { %v6581_v45 = vpack.c.bf16 %v4163_v11, %v3825_v23  ;;  %v3827_v17 = vadd.f32 %v3826_v34, %v3657_v61 }
 0x599   :  { %6837 = vst [vmem:[#allocation8 + $0x390] sm:$0xff] %v6581_v45 }
 0x59a   :  { %v3995_v12 = vpop.f32.mrf.mxu2 }
 0x59c   :  { %v4164_v37 = vpop.f32.mrf.mxu3  ;;  %v3660_v2 = vpop.f32.mrf.mxu0 }
 0x59d   :  { %v4165_v60 = vadd.f32 %v4164_v37, %v3995_v12  ;;  %v8855_v37 = vld [vmem:[#allocation20_spill] sm:$0xff] }
 0x59e   :  { %v3829_v48 = vpop.f32.mrf.mxu1 }
 0x59f   :  { %v6585_v29 = vpack.c.bf16 %v4165_v60, %v3827_v17  ;;  %3699 = vmatmul.bf16.gmra.mxu0 %v8853_v39  ;;  %4037 = vmatmul.bf16.gmra.mxu2 %v8853_v39  ;;  %v3830_v23 = vadd.f32 %v3829_v48, %v3660_v2  ;;  %v8856_v17 = vld [vmem:[#allocation21_spill] sm:$0xff] }
 0x5a1   :  { %3868 = vmatmul.bf16.gmra.mxu1 %v8854_v38  ;;  %6841 = vst [vmem:[#allocation8 + $0x3b0] sm:$0xff] %v6585_v29  ;;  %4206 = vmatmul.bf16.gmra.mxu3 %v8854_v38 }
 0x5a2   :  { %v3998_v41 = vpop.f32.mrf.mxu2 }
 0x5a4   :  { %v4167_v10 = vpop.f32.mrf.mxu3  ;;  %v3662_v7 = vpop.f32.mrf.mxu0 }
 0x5a5   :  { %v4168_v13 = vadd.f32 %v4167_v10, %v3998_v41 }
 0x5a6   :  { %v3831_v11 = vpop.f32.mrf.mxu1 }
 0x5a7   :  { %v6589_v61 = vpack.c.bf16 %v4168_v13, %v3830_v23  ;;  %v3832_v36 = vadd.f32 %v3831_v11, %v3662_v7 }
 0x5a9   :  { %6845 = vst [vmem:[#allocation8 + $0x3d0] sm:$0xff] %v6589_v61 }
 0x5aa   :  { %v4000_v12 = vpop.f32.mrf.mxu2 }
 0x5ac   :  { %v4169_v34 = vpop.f32.mrf.mxu3  ;;  %v3665_v45 = vpop.f32.mrf.mxu0 }
 0x5ad   :  { %v4170_v8 = vadd.f32 %v4169_v34, %v4000_v12 }
 0x5ae   :  { %v3834_v4 = vpop.f32.mrf.mxu1 }
 0x5af   :  { %v6593_v22 = vpack.c.bf16 %v4170_v8, %v3832_v36  ;;  %3704 = vmatmul.bf16.gmra.mxu0 %v8855_v37  ;;  %4042 = vmatmul.bf16.gmra.mxu2 %v8855_v37  ;;  %v3835_v2 = vadd.f32 %v3834_v4, %v3665_v45  ;;  %v8857_v8 = vld [vmem:[#allocation22_spill] sm:$0xff]  ;;  %v8859_v37 = vld [vmem:[#allocation24_spill] sm:$0xff] }
 0x5b1   :  { %3873 = vmatmul.bf16.gmra.mxu1 %v8856_v17  ;;  %6849 = vst [vmem:[#allocation8 + $0x3f0] sm:$0xff] %v6593_v22  ;;  %4211 = vmatmul.bf16.gmra.mxu3 %v8856_v17  ;;  %v8858_v22 = vld [vmem:[#allocation23_spill] sm:$0xff] }
 0x5b2   :  { %v4003_v60 = vpop.f32.mrf.mxu2 }
 0x5b4   :  { %v4172_v48 = vpop.f32.mrf.mxu3  ;;  %v3667_v29 = vpop.f32.mrf.mxu0 }
 0x5b5   :  { %v4173_v23 = vadd.f32 %v4172_v48, %v4003_v60 }
 0x5b6   :  { %v3836_v41 = vpop.f32.mrf.mxu1 }
 0x5b7   :  { %v6597_v10 = vpack.c.bf16 %v4173_v23, %v3835_v2  ;;  %v3837_v61 = vadd.f32 %v3836_v41, %v3667_v29 }
 0x5b9   :  { %6853 = vst [vmem:[#allocation8 + $0x410] sm:$0xff] %v6597_v10 }
 0x5ba   :  { %v4005_v7 = vpop.f32.mrf.mxu2 }
 0x5bc   :  { %v4174_v13 = vpop.f32.mrf.mxu3  ;;  %v3670_v11 = vpop.f32.mrf.mxu0 }
 0x5bd   :  { %v4175_v12 = vadd.f32 %v4174_v13, %v4005_v7 }
 0x5be   :  { %v3839_v34 = vpop.f32.mrf.mxu1 }
 0x5bf   :  { %v6601_v36 = vpack.c.bf16 %v4175_v12, %v3837_v61  ;;  %3709 = vmatmul.bf16.gmra.mxu0 %v8857_v8  ;;  %4047 = vmatmul.bf16.gmra.mxu2 %v8857_v8  ;;  %v3840_v45 = vadd.f32 %v3839_v34, %v3670_v11  ;;  %v7834_v11 = vld [vmem:[#allocation6 + $0x1c] sm:$0xf]  ;;  %v7902_v8 = vld [vmem:[#allocation6 + $0x234] sm:$0xf0] }
 0x5c0   :  { %v7283_v34 = vld [vmem:[#allocation6 + $0x38] sm:$0xf0] }
 0x5c1   :  { %3878 = vmatmul.bf16.gmra.mxu1 %v8858_v22  ;;  %6857 = vst [vmem:[#allocation8 + $0x430] sm:$0xff] %v6601_v36  ;;  %4216 = vmatmul.bf16.gmra.mxu3 %v8858_v22  ;;  %v8860_v36 = vld [vmem:[#allocation25_spill] sm:$0xff] }
 0x5c2   :  { %v4008_v4 = vpop.f32.mrf.mxu2 }
 0x5c4   :  { %v4177_v2 = vpop.f32.mrf.mxu3  ;;  %v3672_v60 = vpop.f32.mrf.mxu0 }
 0x5c5   :  { %v4178_v48 = vadd.f32 %v4177_v2, %v4008_v4  ;;  %v7898_v4 = vld [vmem:[#allocation6 + $0x21c] sm:$0xf] }
 0x5c6   :  { %v3841_v23 = vpop.f32.mrf.mxu1  ;;  %v7539_v2 = vld [vmem:[#allocation6 + $0x238] sm:$0xf0] }
 0x5c7   :  { %v6605_v10 = vpack.c.bf16 %v4178_v48, %v3840_v45  ;;  %v3842_v13 = vadd.f32 %v3841_v23, %v3672_v60  ;;  %v7286_v45 = vor.u32 %v7834_v11, %v7283_v34  ;;  %v7542_v60 = vor.u32 %v7898_v4, %v7539_v2  ;;  %v8861_v2 = vld [vmem:[#allocation26_spill] sm:$0xff] }
 0x5c9   :  { %6861 = vst [vmem:[#allocation8 + $0x450] sm:$0xff] %v6605_v10  ;;  %4597 = vmatpush.bf16.msrb.mxu2 %v7286_v45  ;;  %4766 = vmatpush.bf16.msrb.mxu3 %v7542_v60 }
 0x5ca   :  { %v4010_v29 = vpop.f32.mrf.mxu2 }
 0x5cc   :  { %v4179_v41 = vpop.f32.mrf.mxu3  ;;  %v3675_v7 = vpop.f32.mrf.mxu0 }
 0x5cd   :  { %v4180_v61 = vadd.f32 %v4179_v41, %v4010_v29 }
 0x5ce   :  { %v3844_v12 = vpop.f32.mrf.mxu1 }
 0x5cf   :  { %v6609_v17 = vpack.c.bf16 %v4180_v61, %v3842_v13  ;;  %3714 = vmatmul.bf16.gmra.mxu0 %v8859_v37  ;;  %4052 = vmatmul.bf16.gmra.mxu2 %v8859_v37  ;;  %v3845_v48 = vadd.f32 %v3844_v12, %v3675_v7  ;;  %v7281_v37 = vld [vmem:[#allocation6 + $0x18] sm:$0xf] }
 0x5d1   :  { %3883 = vmatmul.bf16.gmra.mxu1 %v8860_v36  ;;  %6865 = vst [vmem:[#allocation8 + $0x470] sm:$0xff] %v6609_v17  ;;  %4221 = vmatmul.bf16.gmra.mxu3 %v8860_v36  ;;  %v7838_v17 = vld [vmem:[#allocation6 + $0x34] sm:$0xf0] }
 0x5d2   :  { %v4013_v10 = vpop.f32.mrf.mxu2  ;;  %v7282_v22 = vor.u32 %v7838_v17, %v7281_v37  ;;  %v7537_v36 = vld [vmem:[#allocation6 + $0x218] sm:$0xf] }
 0x5d3   :  { %v7538_v11 = vor.u32 %v7902_v8, %v7537_v36 }
 0x5d4   :  { %v4182_v23 = vpop.f32.mrf.mxu3  ;;  %v3677_v29 = vpop.f32.mrf.mxu0  ;;  %4259 = vmatpush.bf16.msrb.mxu0 %v7282_v22 }
 0x5d5   :  { %v4183_v41 = vadd.f32 %v4182_v23, %v4013_v10  ;;  %4428 = vmatpush.bf16.msrb.mxu1 %v7538_v11  ;;  %v8862_v10 = vld [vmem:[#allocation27_spill] sm:$0xff] }
 0x5d6   :  { %v3846_v13 = vpop.f32.mrf.mxu1 }
 0x5d7   :  { %v6613_v61 = vpack.c.bf16 %v4183_v41, %v3845_v48  ;;  %v3847_v7 = vadd.f32 %v3846_v13, %v3677_v29 }
 0x5d9   :  { %6869 = vst [vmem:[#allocation8 + $0x490] sm:$0xff] %v6613_v61 }
 0x5da   :  { %v4015_v38 = vpop.f32.mrf.mxu2 }
 0x5dc   :  { %v4184_v34 = vpop.f32.mrf.mxu3  ;;  %v3680_v39 = vpop.f32.mrf.mxu0 }
 0x5dd   :  { %v4185_v12 = vadd.f32 %v4184_v34, %v4015_v38  ;;  %v8863_v34 = vld [vmem:[#allocation28_spill] sm:$0xff] }
 0x5de   :  { %v3849_v4 = vpop.f32.mrf.mxu1 }
 0x5df   :  { %v6617_v45 = vpack.c.bf16 %v4185_v12, %v3847_v7  ;;  %3719 = vmatmul.bf16.gmra.mxu0 %v8861_v2  ;;  %4057 = vmatmul.bf16.gmra.mxu2 %v8861_v2  ;;  %v3850_v37 = vadd.f32 %v3849_v4, %v3680_v39  ;;  %v8864_v7 = vld [vmem:[#allocation29_spill] sm:$0xff] }
 0x5e1   :  { %3888 = vmatmul.bf16.gmra.mxu1 %v8862_v10  ;;  %6873 = vst [vmem:[#allocation8 + $0x4b0] sm:$0xff] %v6617_v45  ;;  %4226 = vmatmul.bf16.gmra.mxu3 %v8862_v10 }
 0x5e2   :  { %v4018_v48 = vpop.f32.mrf.mxu2 }
 0x5e4   :  { %v4187_v8 = vpop.f32.mrf.mxu3  ;;  %v3682_v36 = vpop.f32.mrf.mxu0 }
 0x5e5   :  { %v4188_v60 = vadd.f32 %v4187_v8, %v4018_v48 }
 0x5e6   :  { %v3851_v22 = vpop.f32.mrf.mxu1 }
 0x5e7   :  { %v6621_v23 = vpack.c.bf16 %v4188_v60, %v3850_v37  ;;  %v3852_v13 = vadd.f32 %v3851_v22, %v3682_v36 }
 0x5e9   :  { %6877 = vst [vmem:[#allocation8 + $0x4d0] sm:$0xff] %v6621_v23 }
 0x5ea   :  { %v4020_v38 = vpop.f32.mrf.mxu2 }
 0x5ec   :  { %v4189_v29 = vpop.f32.mrf.mxu3  ;;  %v3685_v41 = vpop.f32.mrf.mxu0 }
 0x5ed   :  { %v4190_v61 = vadd.f32 %v4189_v29, %v4020_v38 }
 0x5ee   :  { %v3854_v17 = vpop.f32.mrf.mxu1 }
 0x5ef   :  { %v6625_v11 = vpack.c.bf16 %v4190_v61, %v3852_v13  ;;  %3724 = vmatmul.bf16.gmra.mxu0 %v8863_v34  ;;  %4062 = vmatmul.bf16.gmra.mxu2 %v8863_v34  ;;  %v3855_v39 = vadd.f32 %v3854_v17, %v3685_v41  ;;  %v8865_v61 = vld [vmem:[#allocation30_spill] sm:$0xff]  ;;  %v8867_v34 = vld [vmem:[#allocation32_spill] sm:$0xff] }
 0x5f1   :  { %3893 = vmatmul.bf16.gmra.mxu1 %v8864_v7  ;;  %6881 = vst [vmem:[#allocation8 + $0x4f0] sm:$0xff] %v6625_v11  ;;  %4231 = vmatmul.bf16.gmra.mxu3 %v8864_v7  ;;  %v8866_v11 = vld [vmem:[#allocation31_spill] sm:$0xff] }
 0x5f2   :  { %v4023_v12 = vpop.f32.mrf.mxu2 }
 0x5f4   :  { %v4192_v4 = vpop.f32.mrf.mxu3  ;;  %v3687_v45 = vpop.f32.mrf.mxu0 }
 0x5f5   :  { %v4193_v37 = vadd.f32 %v4192_v4, %v4023_v12 }
 0x5f6   :  { %v3856_v48 = vpop.f32.mrf.mxu1 }
 0x5f7   :  { %v6629_v8 = vpack.c.bf16 %v4193_v37, %v3855_v39  ;;  %v3857_v23 = vadd.f32 %v3856_v48, %v3687_v45 }
 0x5f9   :  { %6885 = vst [vmem:[#allocation8 + $0x510] sm:$0xff] %v6629_v8 }
 0x5fa   :  { %v4025_v36 = vpop.f32.mrf.mxu2 }
 0x5fc   :  { %v4194_v60 = vpop.f32.mrf.mxu3  ;;  %v3690_v22 = vpop.f32.mrf.mxu0 }
 0x5fd   :  { %v4195_v38 = vadd.f32 %v4194_v60, %v4025_v36 }
 0x5fe   :  { %v3859_v29 = vpop.f32.mrf.mxu1 }
 0x5ff   :  { %v6633_v13 = vpack.c.bf16 %v4195_v38, %v3857_v23  ;;  %3729 = vmatmul.bf16.gmra.mxu0 %v8865_v61  ;;  %4067 = vmatmul.bf16.gmra.mxu2 %v8865_v61  ;;  %v3860_v41 = vadd.f32 %v3859_v29, %v3690_v22 }
 0x601   :  { %3898 = vmatmul.bf16.gmra.mxu1 %v8866_v11  ;;  %6889 = vst [vmem:[#allocation8 + $0x530] sm:$0xff] %v6633_v13  ;;  %4236 = vmatmul.bf16.gmra.mxu3 %v8866_v11  ;;  %v8868_v13 = vld [vmem:[#allocation33_spill] sm:$0xff] }
 0x602   :  { %v4028_v17 = vpop.f32.mrf.mxu2 }
 0x604   :  { %v4197_v39 = vpop.f32.mrf.mxu3  ;;  %v3692_v12 = vpop.f32.mrf.mxu0 }
 0x605   :  { %v4198_v4 = vadd.f32 %v4197_v39, %v4028_v17 }
 0x606   :  { %v3861_v37 = vpop.f32.mrf.mxu1 }
 0x607   :  { %v6637_v8 = vpack.c.bf16 %v4198_v4, %v3860_v41  ;;  %v3862_v60 = vadd.f32 %v3861_v37, %v3692_v12 }
 0x609   :  { %6893 = vst [vmem:[#allocation8 + $0x550] sm:$0xff] %v6637_v8 }
 0x60a   :  { %v4030_v45 = vpop.f32.mrf.mxu2 }
 0x60c   :  { %v4199_v48 = vpop.f32.mrf.mxu3  ;;  %v3695_v36 = vpop.f32.mrf.mxu0 }
 0x60d   :  { %v4200_v23 = vadd.f32 %v4199_v48, %v4030_v45 }
 0x60e   :  { %v3864_v38 = vpop.f32.mrf.mxu1 }
 0x60f   :  { %v6641_v7 = vpack.c.bf16 %v4200_v23, %v3862_v60  ;;  %3734 = vmatmul.bf16.gmra.mxu0 %v8867_v34  ;;  %4072 = vmatmul.bf16.gmra.mxu2 %v8867_v34  ;;  %v3865_v22 = vadd.f32 %v3864_v38, %v3695_v36 }
 0x611   :  { %3903 = vmatmul.bf16.gmra.mxu1 %v8868_v13  ;;  %6897 = vst [vmem:[#allocation8 + $0x570] sm:$0xff] %v6641_v7  ;;  %4241 = vmatmul.bf16.gmra.mxu3 %v8868_v13 }
 0x612   :  { %v4033_v29 = vpop.f32.mrf.mxu2 }
 0x614   :  { %v4202_v41 = vpop.f32.mrf.mxu3  ;;  %v3697_v17 = vpop.f32.mrf.mxu0 }
 0x615   :  { %v4203_v39 = vadd.f32 %v4202_v41, %v4033_v29 }
 0x616   :  { %v3866_v4 = vpop.f32.mrf.mxu1 }
 0x617   :  { %v6645_v8 = vpack.c.bf16 %v4203_v39, %v3865_v22  ;;  %v3867_v48 = vadd.f32 %v3866_v4, %v3697_v17 }
 0x619   :  { %6901 = vst [vmem:[#allocation8 + $0x590] sm:$0xff] %v6645_v8 }
 0x61a   :  { %v4035_v12 = vpop.f32.mrf.mxu2 }
 0x61c   :  { %v4204_v37 = vpop.f32.mrf.mxu3  ;;  %v3700_v45 = vpop.f32.mrf.mxu0 }
 0x61d   :  { %v4205_v60 = vadd.f32 %v4204_v37, %v4035_v12 }
 0x61e   :  { %v3869_v23 = vpop.f32.mrf.mxu1 }
 0x61f   :  { %v6649_v11 = vpack.c.bf16 %v4205_v60, %v3867_v48  ;;  %3739 = vmatmul.bf16.gmra.mxu0 %v8323_v18  ;;  %4077 = vmatmul.bf16.gmra.mxu2 %v8323_v18  ;;  %v3870_v7 = vadd.f32 %v3869_v23, %v3700_v45 }
 0x621   :  { %3908 = vmatmul.bf16.gmra.mxu1 %v8325_v63  ;;  %6905 = vst [vmem:[#allocation8 + $0x5b0] sm:$0xff] %v6649_v11  ;;  %4246 = vmatmul.bf16.gmra.mxu3 %v8325_v63 }
 0x622   :  { %v4038_v36 = vpop.f32.mrf.mxu2 }
 0x624   :  { %v4207_v38 = vpop.f32.mrf.mxu3  ;;  %v3702_v22 = vpop.f32.mrf.mxu0 }
 0x625   :  { %v4208_v29 = vadd.f32 %v4207_v38, %v4038_v36 }
 0x626   :  { %v3871_v41 = vpop.f32.mrf.mxu1 }
 0x627   :  { %v6653_v39 = vpack.c.bf16 %v4208_v29, %v3870_v7  ;;  %v3872_v12 = vadd.f32 %v3871_v41, %v3702_v22 }
 0x629   :  { %6909 = vst [vmem:[#allocation8 + $0x5d0] sm:$0xff] %v6653_v39 }
 0x62a   :  { %v4040_v17 = vpop.f32.mrf.mxu2 }
 0x62c   :  { %v4209_v4 = vpop.f32.mrf.mxu3  ;;  %v3705_v8 = vpop.f32.mrf.mxu0 }
 0x62d   :  { %v4210_v37 = vadd.f32 %v4209_v4, %v4040_v17 }
 0x62e   :  { %v3874_v48 = vpop.f32.mrf.mxu1 }
 0x62f   :  { %v6657_v60 = vpack.c.bf16 %v4210_v37, %v3872_v12  ;;  %4260 = vmatmul.bf16.vlgmr.msrb.gmra.mxu0 %v8075_v43  ;;  %4598 = vmatmul.bf16.vlgmr.msrb.gmra.mxu2 %v8075_v43  ;;  %v3875_v11 = vadd.f32 %v3874_v48, %v3705_v8 }
 0x631   :  { %4429 = vmatmul.bf16.vlgmr.msrb.gmra.mxu1 %v8077_v47  ;;  %6913 = vst [vmem:[#allocation8 + $0x5f0] sm:$0xff] %v6657_v60  ;;  %4767 = vmatmul.bf16.vlgmr.msrb.gmra.mxu3 %v8077_v47 }
 0x632   :  { %v4043_v45 = vpop.f32.mrf.mxu2 }
 0x634   :  { %v4212_v23 = vpop.f32.mrf.mxu3  ;;  %v3707_v7 = vpop.f32.mrf.mxu0 }
 0x635   :  { %v4213_v36 = vadd.f32 %v4212_v23, %v4043_v45 }
 0x636   :  { %v3876_v38 = vpop.f32.mrf.mxu1 }
 0x637   :  { %v6661_v29 = vpack.c.bf16 %v4213_v36, %v3875_v11  ;;  %v3877_v17 = vadd.f32 %v3876_v38, %v3707_v7 }
 0x639   :  { %6917 = vst [vmem:[#allocation8 + $0x610] sm:$0xff] %v6661_v29 }
 0x63a   :  { %v4045_v22 = vpop.f32.mrf.mxu2 }
 0x63c   :  { %v4214_v41 = vpop.f32.mrf.mxu3  ;;  %v3710_v39 = vpop.f32.mrf.mxu0 }
 0x63d   :  { %v4215_v4 = vadd.f32 %v4214_v41, %v4045_v22 }
 0x63e   :  { %v3879_v12 = vpop.f32.mrf.mxu1 }
 0x63f   :  { %v6665_v37 = vpack.c.bf16 %v4215_v4, %v3877_v17  ;;  %4265 = vmatmul.bf16.gmra.mxu0 %v8083_v54  ;;  %4603 = vmatmul.bf16.gmra.mxu2 %v8083_v54  ;;  %v3880_v43 = vadd.f32 %v3879_v12, %v3710_v39  ;;  %v8869_v17 = vld [vmem:[#allocation12_spill] sm:$0xff]  ;;  %v8870_v54 = vld [vmem:[#allocation13_spill] sm:$0xff] }
 0x641   :  { %4434 = vmatmul.bf16.gmra.mxu1 %v8085_v55  ;;  %6921 = vst [vmem:[#allocation8 + $0x630] sm:$0xff] %v6665_v37  ;;  %4772 = vmatmul.bf16.gmra.mxu3 %v8085_v55 }
 0x642   :  { %v4048_v47 = vpop.f32.mrf.mxu2 }
 0x644   :  { %v4217_v8 = vpop.f32.mrf.mxu3  ;;  %v3712_v48 = vpop.f32.mrf.mxu0 }
 0x645   :  { %v4218_v60 = vadd.f32 %v4217_v8, %v4048_v47 }
 0x646   :  { %v3881_v11 = vpop.f32.mrf.mxu1 }
 0x647   :  { %v6669_v45 = vpack.c.bf16 %v4218_v60, %v3880_v43  ;;  %v3882_v38 = vadd.f32 %v3881_v11, %v3712_v48 }
 0x649   :  { %6925 = vst [vmem:[#allocation8 + $0x650] sm:$0xff] %v6669_v45 }
 0x64a   :  { %v4050_v23 = vpop.f32.mrf.mxu2 }
 0x64c   :  { %v4219_v7 = vpop.f32.mrf.mxu3  ;;  %v3715_v36 = vpop.f32.mrf.mxu0 }
 0x64d   :  { %v4220_v29 = vadd.f32 %v4219_v7, %v4050_v23 }
 0x64e   :  { %v3884_v22 = vpop.f32.mrf.mxu1 }
 0x64f   :  { %v6673_v41 = vpack.c.bf16 %v4220_v29, %v3882_v38  ;;  %4270 = vmatmul.bf16.gmra.mxu0 %v8869_v17  ;;  %4608 = vmatmul.bf16.gmra.mxu2 %v8869_v17  ;;  %v3885_v55 = vadd.f32 %v3884_v22, %v3715_v36 }
 0x651   :  { %4439 = vmatmul.bf16.gmra.mxu1 %v8870_v54  ;;  %6929 = vst [vmem:[#allocation8 + $0x670] sm:$0xff] %v6673_v41  ;;  %4777 = vmatmul.bf16.gmra.mxu3 %v8870_v54 }
 0x652   :  { %v4053_v39 = vpop.f32.mrf.mxu2 }
 0x654   :  { %v4222_v4 = vpop.f32.mrf.mxu3  ;;  %v3717_v12 = vpop.f32.mrf.mxu0 }
 0x655   :  { %v4223_v37 = vadd.f32 %v4222_v4, %v4053_v39 }
 0x656   :  { %v3886_v43 = vpop.f32.mrf.mxu1 }
 0x657   :  { %v6677_v47 = vpack.c.bf16 %v4223_v37, %v3885_v55  ;;  %v3887_v11 = vadd.f32 %v3886_v43, %v3717_v12 }
 0x659   :  { %6933 = vst [vmem:[#allocation8 + $0x690] sm:$0xff] %v6677_v47 }
 0x65a   :  { %v4055_v8 = vpop.f32.mrf.mxu2 }
 0x65c   :  { %v4224_v48 = vpop.f32.mrf.mxu3  ;;  %v3720_v60 = vpop.f32.mrf.mxu0 }
 0x65d   :  { %v4225_v45 = vadd.f32 %v4224_v48, %v4055_v8 }
 0x65e   :  { %v3889_v23 = vpop.f32.mrf.mxu1 }
 0x65f   :  { %v6681_v7 = vpack.c.bf16 %v4225_v45, %v3887_v11  ;;  %4275 = vmatmul.bf16.gmra.mxu0 %v8099_v14  ;;  %4613 = vmatmul.bf16.gmra.mxu2 %v8099_v14  ;;  %v3890_v36 = vadd.f32 %v3889_v23, %v3720_v60 }
 0x661   :  { %4444 = vmatmul.bf16.gmra.mxu1 %v8101_v15  ;;  %6937 = vst [vmem:[#allocation8 + $0x6b0] sm:$0xff] %v6681_v7  ;;  %4782 = vmatmul.bf16.gmra.mxu3 %v8101_v15 }
 0x662   :  { %v4058_v38 = vpop.f32.mrf.mxu2 }
 0x664   :  { %v4227_v29 = vpop.f32.mrf.mxu3  ;;  %v3722_v22 = vpop.f32.mrf.mxu0 }
 0x665   :  { %v4228_v41 = vadd.f32 %v4227_v29, %v4058_v38 }
 0x666   :  { %v3891_v17 = vpop.f32.mrf.mxu1 }
 0x667   :  { %v6685_v54 = vpack.c.bf16 %v4228_v41, %v3890_v36  ;;  %v3892_v12 = vadd.f32 %v3891_v17, %v3722_v22 }
 0x669   :  { %6941 = vst [vmem:[#allocation8 + $0x6d0] sm:$0xff] %v6685_v54 }
 0x66a   :  { %v4060_v55 = vpop.f32.mrf.mxu2 }
 0x66c   :  { %v4229_v39 = vpop.f32.mrf.mxu3  ;;  %v3725_v4 = vpop.f32.mrf.mxu0 }
 0x66d   :  { %v4230_v37 = vadd.f32 %v4229_v39, %v4060_v55 }
 0x66e   :  { %v3894_v43 = vpop.f32.mrf.mxu1 }
 0x66f   :  { %v6689_v47 = vpack.c.bf16 %v4230_v37, %v3892_v12  ;;  %4280 = vmatmul.bf16.gmra.mxu0 %v8107_v20  ;;  %4618 = vmatmul.bf16.gmra.mxu2 %v8107_v20  ;;  %v3895_v14 = vadd.f32 %v3894_v43, %v3725_v4 }
 0x671   :  { %4449 = vmatmul.bf16.gmra.mxu1 %v8109_v21  ;;  %6945 = vst [vmem:[#allocation8 + $0x6f0] sm:$0xff] %v6689_v47  ;;  %4787 = vmatmul.bf16.gmra.mxu3 %v8109_v21 }
 0x672   :  { %v4063_v15 = vpop.f32.mrf.mxu2 }
 0x674   :  { %v4232_v8 = vpop.f32.mrf.mxu3  ;;  %v3727_v48 = vpop.f32.mrf.mxu0 }
 0x675   :  { %v4233_v60 = vadd.f32 %v4232_v8, %v4063_v15 }
 0x676   :  { %v3896_v11 = vpop.f32.mrf.mxu1 }
 0x677   :  { %v6693_v45 = vpack.c.bf16 %v4233_v60, %v3895_v14  ;;  %v3897_v38 = vadd.f32 %v3896_v11, %v3727_v48 }
 0x679   :  { %6949 = vst [vmem:[#allocation8 + $0x710] sm:$0xff] %v6693_v45 }
 0x67a   :  { %v4065_v23 = vpop.f32.mrf.mxu2 }
 0x67c   :  { %v4234_v7 = vpop.f32.mrf.mxu3  ;;  %v3730_v36 = vpop.f32.mrf.mxu0 }
 0x67d   :  { %v4235_v29 = vadd.f32 %v4234_v7, %v4065_v23 }
 0x67e   :  { %v3899_v22 = vpop.f32.mrf.mxu1 }
 0x67f   :  { %v6697_v41 = vpack.c.bf16 %v4235_v29, %v3897_v38  ;;  %4285 = vmatmul.bf16.gmra.mxu0 %v8115_v26  ;;  %4623 = vmatmul.bf16.gmra.mxu2 %v8115_v26  ;;  %v3900_v20 = vadd.f32 %v3899_v22, %v3730_v36 }
 0x681   :  { %4454 = vmatmul.bf16.gmra.mxu1 %v8117_v27  ;;  %6953 = vst [vmem:[#allocation8 + $0x730] sm:$0xff] %v6697_v41  ;;  %4792 = vmatmul.bf16.gmra.mxu3 %v8117_v27 }
 0x682   :  { %v4068_v21 = vpop.f32.mrf.mxu2 }
 0x684   :  { %v4237_v17 = vpop.f32.mrf.mxu3  ;;  %v3732_v54 = vpop.f32.mrf.mxu0 }
 0x685   :  { %v4238_v55 = vadd.f32 %v4237_v17, %v4068_v21 }
 0x686   :  { %v3901_v39 = vpop.f32.mrf.mxu1 }
 0x687   :  { %v6701_v4 = vpack.c.bf16 %v4238_v55, %v3900_v20  ;;  %v3902_v47 = vadd.f32 %v3901_v39, %v3732_v54 }
 0x689   :  { %6957 = vst [vmem:[#allocation8 + $0x750] sm:$0xff] %v6701_v4 }
 0x68a   :  { %v4070_v12 = vpop.f32.mrf.mxu2 }
 0x68c   :  { %v4239_v37 = vpop.f32.mrf.mxu3  ;;  %v3735_v43 = vpop.f32.mrf.mxu0 }
 0x68d   :  { %v4240_v14 = vadd.f32 %v4239_v37, %v4070_v12 }
 0x68e   :  { %v3904_v15 = vpop.f32.mrf.mxu1 }
 0x68f   :  { %v6705_v8 = vpack.c.bf16 %v4240_v14, %v3902_v47  ;;  %4290 = vmatmul.bf16.gmra.mxu0 %v8123_v32  ;;  %4628 = vmatmul.bf16.gmra.mxu2 %v8123_v32  ;;  %v3905_v26 = vadd.f32 %v3904_v15, %v3735_v43 }
 0x691   :  { %4459 = vmatmul.bf16.gmra.mxu1 %v8125_v33  ;;  %6961 = vst [vmem:[#allocation8 + $0x770] sm:$0xff] %v6705_v8  ;;  %4797 = vmatmul.bf16.gmra.mxu3 %v8125_v33 }
 0x692   :  { %v4073_v27 = vpop.f32.mrf.mxu2 }
 0x694   :  { %v4242_v48 = vpop.f32.mrf.mxu3  ;;  %v3737_v60 = vpop.f32.mrf.mxu0 }
 0x695   :  { %v4243_v11 = vadd.f32 %v4242_v48, %v4073_v27 }
 0x696   :  { %v3906_v45 = vpop.f32.mrf.mxu1 }
 0x697   :  { %v6709_v23 = vpack.c.bf16 %v4243_v11, %v3905_v26  ;;  %v3907_v29 = vadd.f32 %v3906_v45, %v3737_v60 }
 0x699   :  { %6965 = vst [vmem:[#allocation8 + $0x790] sm:$0xff] %v6709_v23 }
 0x69a   :  { %v4075_v7 = vpop.f32.mrf.mxu2 }
 0x69c   :  { %v4244_v36 = vpop.f32.mrf.mxu3  ;;  %v3740_v38 = vpop.f32.mrf.mxu0 }
 0x69d   :  { %v4245_v22 = vadd.f32 %v4244_v36, %v4075_v7 }
 0x69e   :  { %v3909_v41 = vpop.f32.mrf.mxu1 }
 0x69f   :  { %v6713_v20 = vpack.c.bf16 %v4245_v22, %v3907_v29  ;;  %4295 = vmatmul.bf16.gmra.mxu0 %v8131_v51  ;;  %4633 = vmatmul.bf16.gmra.mxu2 %v8131_v51  ;;  %v3910_v32 = vadd.f32 %v3909_v41, %v3740_v38 }
 0x6a1   :  { %4464 = vmatmul.bf16.gmra.mxu1 %v8133_v53  ;;  %6969 = vst [vmem:[#allocation8 + $0x7b0] sm:$0xff] %v6713_v20  ;;  %4802 = vmatmul.bf16.gmra.mxu3 %v8133_v53 }
 0x6a2   :  { %v4078_v33 = vpop.f32.mrf.mxu2 }
 0x6a4   :  { %v4247_v21 = vpop.f32.mrf.mxu3  ;;  %v3742_v17 = vpop.f32.mrf.mxu0 }
 0x6a5   :  { %v4248_v54 = vadd.f32 %v4247_v21, %v4078_v33 }
 0x6a6   :  { %v3911_v55 = vpop.f32.mrf.mxu1 }
 0x6a7   :  { %v6717_v39 = vpack.c.bf16 %v4248_v54, %v3910_v32  ;;  %v3912_v43 = vadd.f32 %v3911_v55, %v3742_v17 }
 0x6a9   :  { %6973 = vst [vmem:[#allocation8 + $0x7d0] sm:$0xff] %v6717_v39 }
 0x6aa   :  { %v4080_v4 = vpop.f32.mrf.mxu2 }
 0x6ac   :  { %v4249_v12 = vpop.f32.mrf.mxu3  ;;  %v4261_v37 = vpop.f32.mrf.mxu0 }
 0x6ad   :  { %v4250_v47 = vadd.f32 %v4249_v12, %v4080_v4 }
 0x6ae   :  { %v4430_v14 = vpop.f32.mrf.mxu1 }
 0x6af   :  { %v6721_v15 = vpack.c.bf16 %v4250_v47, %v3912_v43  ;;  %4300 = vmatmul.bf16.gmra.mxu0 %v8139_v62  ;;  %4638 = vmatmul.bf16.gmra.mxu2 %v8139_v62  ;;  %v4431_v51 = vadd.f32 %v4430_v14, %v4261_v37 }
 0x6b1   :  { %4469 = vmatmul.bf16.gmra.mxu1 %v8141_v0  ;;  %6977 = vst [vmem:[#allocation8 + $0x7f0] sm:$0xff] %v6721_v15  ;;  %4807 = vmatmul.bf16.gmra.mxu3 %v8141_v0 }
 0x6b2   :  { %v4599_v53 = vpop.f32.mrf.mxu2 }
 0x6b4   :  { %v4768_v8 = vpop.f32.mrf.mxu3  ;;  %v4263_v26 = vpop.f32.mrf.mxu0 }
 0x6b5   :  { %v4769_v27 = vadd.f32 %v4768_v8, %v4599_v53 }
 0x6b6   :  { %v4432_v48 = vpop.f32.mrf.mxu1 }
 0x6b7   :  { %v6470_v60 = vpack.c.bf16 %v4769_v27, %v4431_v51  ;;  %v4433_v7 = vadd.f32 %v4432_v48, %v4263_v26 }
 0x6b9   :  { %6726 = vst [vmem:[#allocation8 + $0x18] sm:$0xff] %v6470_v60 }
 0x6ba   :  { %v4601_v11 = vpop.f32.mrf.mxu2 }
 0x6bc   :  { %v4770_v45 = vpop.f32.mrf.mxu3  ;;  %v4266_v23 = vpop.f32.mrf.mxu0 }
 0x6bd   :  { %v4771_v36 = vadd.f32 %v4770_v45, %v4601_v11 }
 0x6be   :  { %v4435_v38 = vpop.f32.mrf.mxu1 }
 0x6bf   :  { %v6474_v29 = vpack.c.bf16 %v4771_v36, %v4433_v7  ;;  %4305 = vmatmul.bf16.gmra.mxu0 %v8147_v16  ;;  %4643 = vmatmul.bf16.gmra.mxu2 %v8147_v16  ;;  %v4436_v62 = vadd.f32 %v4435_v38, %v4266_v23 }
 0x6c1   :  { %4474 = vmatmul.bf16.gmra.mxu1 %v8149_v19  ;;  %6730 = vst [vmem:[#allocation8 + $0x38] sm:$0xff] %v6474_v29  ;;  %4812 = vmatmul.bf16.gmra.mxu3 %v8149_v19 }
 0x6c2   :  { %v4604_v0 = vpop.f32.mrf.mxu2 }
 0x6c4   :  { %v4773_v22 = vpop.f32.mrf.mxu3  ;;  %v4268_v41 = vpop.f32.mrf.mxu0 }
 0x6c5   :  { %v4774_v20 = vadd.f32 %v4773_v22, %v4604_v0 }
 0x6c6   :  { %v4437_v32 = vpop.f32.mrf.mxu1 }
 0x6c7   :  { %v6478_v33 = vpack.c.bf16 %v4774_v20, %v4436_v62  ;;  %v4438_v55 = vadd.f32 %v4437_v32, %v4268_v41 }
 0x6c9   :  { %6734 = vst [vmem:[#allocation8 + $0x58] sm:$0xff] %v6478_v33 }
 0x6ca   :  { %v4606_v21 = vpop.f32.mrf.mxu2 }
 0x6cc   :  { %v4775_v17 = vpop.f32.mrf.mxu3  ;;  %v4271_v54 = vpop.f32.mrf.mxu0 }
 0x6cd   :  { %v4776_v39 = vadd.f32 %v4775_v17, %v4606_v21 }
 0x6ce   :  { %v4440_v4 = vpop.f32.mrf.mxu1 }
 0x6cf   :  { %v6482_v12 = vpack.c.bf16 %v4776_v39, %v4438_v55  ;;  %4310 = vmatmul.bf16.gmra.mxu0 %v8155_v42  ;;  %4648 = vmatmul.bf16.gmra.mxu2 %v8155_v42  ;;  %v4441_v16 = vadd.f32 %v4440_v4, %v4271_v54 }
 0x6d1   :  { %4479 = vmatmul.bf16.gmra.mxu1 %v8157_v46  ;;  %6738 = vst [vmem:[#allocation8 + $0x78] sm:$0xff] %v6482_v12  ;;  %4817 = vmatmul.bf16.gmra.mxu3 %v8157_v46 }
 0x6d2   :  { %v4609_v19 = vpop.f32.mrf.mxu2 }
 0x6d4   :  { %v4778_v37 = vpop.f32.mrf.mxu3  ;;  %v4273_v43 = vpop.f32.mrf.mxu0 }
 0x6d5   :  { %v4779_v47 = vadd.f32 %v4778_v37, %v4609_v19 }
 0x6d6   :  { %v4442_v14 = vpop.f32.mrf.mxu1 }
 0x6d7   :  { %v6486_v15 = vpack.c.bf16 %v4779_v47, %v4441_v16  ;;  %v4443_v26 = vadd.f32 %v4442_v14, %v4273_v43 }
 0x6d9   :  { %6742 = vst [vmem:[#allocation8 + $0x98] sm:$0xff] %v6486_v15 }
 0x6da   :  { %v4611_v51 = vpop.f32.mrf.mxu2 }
 0x6dc   :  { %v4780_v53 = vpop.f32.mrf.mxu3  ;;  %v4276_v8 = vpop.f32.mrf.mxu0 }
 0x6dd   :  { %v4781_v27 = vadd.f32 %v4780_v53, %v4611_v51 }
 0x6de   :  { %v4445_v48 = vpop.f32.mrf.mxu1 }
 0x6df   :  { %v6490_v60 = vpack.c.bf16 %v4781_v27, %v4443_v26  ;;  %4315 = vmatmul.bf16.gmra.mxu0 %v8163_v25  ;;  %4653 = vmatmul.bf16.gmra.mxu2 %v8163_v25  ;;  %v4446_v42 = vadd.f32 %v4445_v48, %v4276_v8 }
 0x6e1   :  { %4484 = vmatmul.bf16.gmra.mxu1 %v8165_v31  ;;  %6746 = vst [vmem:[#allocation8 + $0xb8] sm:$0xff] %v6490_v60  ;;  %4822 = vmatmul.bf16.gmra.mxu3 %v8165_v31 }
 0x6e2   :  { %v4614_v46 = vpop.f32.mrf.mxu2 }
 0x6e4   :  { %v4783_v11 = vpop.f32.mrf.mxu3  ;;  %v4278_v45 = vpop.f32.mrf.mxu0 }
 0x6e5   :  { %v4784_v23 = vadd.f32 %v4783_v11, %v4614_v46 }
 0x6e6   :  { %v4447_v7 = vpop.f32.mrf.mxu1 }
 0x6e7   :  { %v6494_v36 = vpack.c.bf16 %v4784_v23, %v4446_v42  ;;  %v4448_v0 = vadd.f32 %v4447_v7, %v4278_v45 }
 0x6e9   :  { %6750 = vst [vmem:[#allocation8 + $0xd8] sm:$0xff] %v6494_v36 }
 0x6ea   :  { %v4616_v38 = vpop.f32.mrf.mxu2 }
 0x6ec   :  { %v4785_v29 = vpop.f32.mrf.mxu3  ;;  %v4281_v62 = vpop.f32.mrf.mxu0 }
 0x6ed   :  { %v4786_v22 = vadd.f32 %v4785_v29, %v4616_v38 }
 0x6ee   :  { %v4450_v41 = vpop.f32.mrf.mxu1 }
 0x6ef   :  { %v6498_v20 = vpack.c.bf16 %v4786_v22, %v4448_v0  ;;  %4320 = vmatmul.bf16.gmra.mxu0 %v8171_v58  ;;  %4658 = vmatmul.bf16.gmra.mxu2 %v8171_v58  ;;  %v4451_v25 = vadd.f32 %v4450_v41, %v4281_v62 }
 0x6f1   :  { %4489 = vmatmul.bf16.gmra.mxu1 %v8173_v1  ;;  %6754 = vst [vmem:[#allocation8 + $0xf8] sm:$0xff] %v6498_v20  ;;  %4827 = vmatmul.bf16.gmra.mxu3 %v8173_v1 }
 0x6f2   :  { %v4619_v31 = vpop.f32.mrf.mxu2 }
 0x6f4   :  { %v4788_v32 = vpop.f32.mrf.mxu3  ;;  %v4283_v33 = vpop.f32.mrf.mxu0 }
 0x6f5   :  { %v4789_v21 = vadd.f32 %v4788_v32, %v4619_v31 }
 0x6f6   :  { %v4452_v17 = vpop.f32.mrf.mxu1 }
 0x6f7   :  { %v6502_v54 = vpack.c.bf16 %v4789_v21, %v4451_v25  ;;  %v4453_v12 = vadd.f32 %v4452_v17, %v4283_v33 }
 0x6f9   :  { %6758 = vst [vmem:[#allocation8 + $0x118] sm:$0xff] %v6502_v54 }
 0x6fa   :  { %v4621_v55 = vpop.f32.mrf.mxu2 }
 0x6fc   :  { %v4790_v39 = vpop.f32.mrf.mxu3  ;;  %v4286_v4 = vpop.f32.mrf.mxu0 }
 0x6fd   :  { %v4791_v16 = vadd.f32 %v4790_v39, %v4621_v55 }
 0x6fe   :  { %v4455_v19 = vpop.f32.mrf.mxu1 }
 0x6ff   :  { %v6506_v37 = vpack.c.bf16 %v4791_v16, %v4453_v12  ;;  %4325 = vmatmul.bf16.gmra.mxu0 %v8179_v24  ;;  %4663 = vmatmul.bf16.gmra.mxu2 %v8179_v24  ;;  %v4456_v58 = vadd.f32 %v4455_v19, %v4286_v4 }
 0x701   :  { %4494 = vmatmul.bf16.gmra.mxu1 %v8181_v30  ;;  %6762 = vst [vmem:[#allocation8 + $0x138] sm:$0xff] %v6506_v37  ;;  %4832 = vmatmul.bf16.gmra.mxu3 %v8181_v30 }
 0x702   :  { %v4624_v1 = vpop.f32.mrf.mxu2 }
 0x704   :  { %v4793_v43 = vpop.f32.mrf.mxu3  ;;  %v4288_v47 = vpop.f32.mrf.mxu0 }
 0x705   :  { %v4794_v14 = vadd.f32 %v4793_v43, %v4624_v1 }
 0x706   :  { %v4457_v15 = vpop.f32.mrf.mxu1 }
 0x707   :  { %v6510_v51 = vpack.c.bf16 %v4794_v14, %v4456_v58  ;;  %v4458_v27 = vadd.f32 %v4457_v15, %v4288_v47 }
 0x709   :  { %6766 = vst [vmem:[#allocation8 + $0x158] sm:$0xff] %v6510_v51 }
 0x70a   :  { %v4626_v53 = vpop.f32.mrf.mxu2 }
 0x70c   :  { %v4795_v8 = vpop.f32.mrf.mxu3  ;;  %v4291_v26 = vpop.f32.mrf.mxu0 }
 0x70d   :  { %v4796_v48 = vadd.f32 %v4795_v8, %v4626_v53 }
 0x70e   :  { %v4460_v60 = vpop.f32.mrf.mxu1 }
 0x70f   :  { %v6514_v42 = vpack.c.bf16 %v4796_v48, %v4458_v27  ;;  %4330 = vmatmul.bf16.gmra.mxu0 %v8187_v59  ;;  %4668 = vmatmul.bf16.gmra.mxu2 %v8187_v59  ;;  %v4461_v24 = vadd.f32 %v4460_v60, %v4291_v26 }
 0x711   :  { %4499 = vmatmul.bf16.gmra.mxu1 %v8189_v3  ;;  %6770 = vst [vmem:[#allocation8 + $0x178] sm:$0xff] %v6514_v42  ;;  %4837 = vmatmul.bf16.gmra.mxu3 %v8189_v3 }
 0x712   :  { %v4629_v30 = vpop.f32.mrf.mxu2 }
 0x714   :  { %v4798_v46 = vpop.f32.mrf.mxu3  ;;  %v4293_v11 = vpop.f32.mrf.mxu0 }
 0x715   :  { %v4799_v45 = vadd.f32 %v4798_v46, %v4629_v30 }
 0x716   :  { %v4462_v23 = vpop.f32.mrf.mxu1 }
 0x717   :  { %v6518_v7 = vpack.c.bf16 %v4799_v45, %v4461_v24  ;;  %v4463_v62 = vadd.f32 %v4462_v23, %v4293_v11 }
 0x719   :  { %6774 = vst [vmem:[#allocation8 + $0x198] sm:$0xff] %v6518_v7 }
 0x71a   :  { %v4631_v36 = vpop.f32.mrf.mxu2 }
 0x71c   :  { %v4800_v38 = vpop.f32.mrf.mxu3  ;;  %v4296_v29 = vpop.f32.mrf.mxu0 }
 0x71d   :  { %v4801_v0 = vadd.f32 %v4800_v38, %v4631_v36 }
 0x71e   :  { %v4465_v22 = vpop.f32.mrf.mxu1 }
 0x71f   :  { %v6522_v41 = vpack.c.bf16 %v4801_v0, %v4463_v62  ;;  %4335 = vmatmul.bf16.gmra.mxu0 %v8195_v49  ;;  %4673 = vmatmul.bf16.gmra.mxu2 %v8195_v49  ;;  %v4466_v59 = vadd.f32 %v4465_v22, %v4296_v29 }
 0x721   :  { %4504 = vmatmul.bf16.gmra.mxu1 %v8197_v57  ;;  %6778 = vst [vmem:[#allocation8 + $0x1b8] sm:$0xff] %v6522_v41  ;;  %4842 = vmatmul.bf16.gmra.mxu3 %v8197_v57 }
 0x722   :  { %v4634_v3 = vpop.f32.mrf.mxu2 }
 0x724   :  { %v4803_v20 = vpop.f32.mrf.mxu3  ;;  %v4298_v25 = vpop.f32.mrf.mxu0 }
 0x725   :  { %v4804_v31 = vadd.f32 %v4803_v20, %v4634_v3 }
 0x726   :  { %v4467_v32 = vpop.f32.mrf.mxu1 }
 0x727   :  { %v6526_v33 = vpack.c.bf16 %v4804_v31, %v4466_v59  ;;  %v4468_v55 = vadd.f32 %v4467_v32, %v4298_v25 }
 0x729   :  { %6782 = vst [vmem:[#allocation8 + $0x1d8] sm:$0xff] %v6526_v33 }
 0x72a   :  { %v4636_v21 = vpop.f32.mrf.mxu2 }
 0x72c   :  { %v4805_v17 = vpop.f32.mrf.mxu3  ;;  %v4301_v54 = vpop.f32.mrf.mxu0 }
 0x72d   :  { %v4806_v39 = vadd.f32 %v4805_v17, %v4636_v21 }
 0x72e   :  { %v4470_v4 = vpop.f32.mrf.mxu1 }
 0x72f   :  { %v6530_v12 = vpack.c.bf16 %v4806_v39, %v4468_v55  ;;  %4340 = vmatmul.bf16.gmra.mxu0 %v8203_v28  ;;  %4678 = vmatmul.bf16.gmra.mxu2 %v8203_v28  ;;  %v4471_v49 = vadd.f32 %v4470_v4, %v4301_v54 }
 0x731   :  { %4509 = vmatmul.bf16.gmra.mxu1 %v8205_v35  ;;  %6786 = vst [vmem:[#allocation8 + $0x1f8] sm:$0xff] %v6530_v12  ;;  %4847 = vmatmul.bf16.gmra.mxu3 %v8205_v35 }
 0x732   :  { %v4639_v57 = vpop.f32.mrf.mxu2 }
 0x734   :  { %v4808_v16 = vpop.f32.mrf.mxu3  ;;  %v4303_v19 = vpop.f32.mrf.mxu0 }
 0x735   :  { %v4809_v37 = vadd.f32 %v4808_v16, %v4639_v57 }
 0x736   :  { %v4472_v58 = vpop.f32.mrf.mxu1 }
 0x737   :  { %v6534_v1 = vpack.c.bf16 %v4809_v37, %v4471_v49  ;;  %v4473_v15 = vadd.f32 %v4472_v58, %v4303_v19 }
 0x739   :  { %6790 = vst [vmem:[#allocation8 + $0x218] sm:$0xff] %v6534_v1 }
 0x73a   :  { %v4641_v43 = vpop.f32.mrf.mxu2 }
 0x73c   :  { %v4810_v47 = vpop.f32.mrf.mxu3  ;;  %v4306_v14 = vpop.f32.mrf.mxu0 }
 0x73d   :  { %v4811_v51 = vadd.f32 %v4810_v47, %v4641_v43 }
 0x73e   :  { %v4475_v53 = vpop.f32.mrf.mxu1 }
 0x73f   :  { %v6538_v8 = vpack.c.bf16 %v4811_v51, %v4473_v15  ;;  %4345 = vmatmul.bf16.gmra.mxu0 %v8211_v6  ;;  %4683 = vmatmul.bf16.gmra.mxu2 %v8211_v6  ;;  %v4476_v28 = vadd.f32 %v4475_v53, %v4306_v14 }
 0x741   :  { %4514 = vmatmul.bf16.gmra.mxu1 %v8213_v9  ;;  %6794 = vst [vmem:[#allocation8 + $0x238] sm:$0xff] %v6538_v8  ;;  %4852 = vmatmul.bf16.gmra.mxu3 %v8213_v9 }
 0x742   :  { %v4644_v35 = vpop.f32.mrf.mxu2 }
 0x744   :  { %v4813_v26 = vpop.f32.mrf.mxu3  ;;  %v4308_v27 = vpop.f32.mrf.mxu0 }
 0x745   :  { %v4814_v48 = vadd.f32 %v4813_v26, %v4644_v35  ;;  %v8871_v35 = vld [vmem:[#allocation14_spill] sm:$0xff] }
 0x746   :  { %v4477_v60 = vpop.f32.mrf.mxu1 }
 0x747   :  { %v6542_v42 = vpack.c.bf16 %v4814_v48, %v4476_v28  ;;  %v4478_v11 = vadd.f32 %v4477_v60, %v4308_v27 }
 0x749   :  { %6798 = vst [vmem:[#allocation8 + $0x258] sm:$0xff] %v6542_v42 }
 0x74a   :  { %v4646_v24 = vpop.f32.mrf.mxu2 }
 0x74c   :  { %v4815_v30 = vpop.f32.mrf.mxu3  ;;  %v4311_v46 = vpop.f32.mrf.mxu0 }
 0x74d   :  { %v4816_v45 = vadd.f32 %v4815_v30, %v4646_v24 }
 0x74e   :  { %v4480_v23 = vpop.f32.mrf.mxu1 }
 0x74f   :  { %v6546_v7 = vpack.c.bf16 %v4816_v45, %v4478_v11  ;;  %4350 = vmatmul.bf16.gmra.mxu0 %v8219_v44  ;;  %4688 = vmatmul.bf16.gmra.mxu2 %v8219_v44  ;;  %v4481_v6 = vadd.f32 %v4480_v23, %v4311_v46 }
 0x751   :  { %4519 = vmatmul.bf16.gmra.mxu1 %v8221_v50  ;;  %6802 = vst [vmem:[#allocation8 + $0x278] sm:$0xff] %v6546_v7  ;;  %4857 = vmatmul.bf16.gmra.mxu3 %v8221_v50 }
 0x752   :  { %v4649_v9 = vpop.f32.mrf.mxu2 }
 0x754   :  { %v4818_v36 = vpop.f32.mrf.mxu3  ;;  %v4313_v38 = vpop.f32.mrf.mxu0 }
 0x755   :  { %v4819_v29 = vadd.f32 %v4818_v36, %v4649_v9  ;;  %v8873_v9 = vld [vmem:[#allocation16_spill] sm:$0xff]  ;;  %v8874_v36 = vld [vmem:[#allocation17_spill] sm:$0xff] }
 0x756   :  { %v4482_v62 = vpop.f32.mrf.mxu1 }
 0x757   :  { %v6550_v0 = vpack.c.bf16 %v4819_v29, %v4481_v6  ;;  %v4483_v3 = vadd.f32 %v4482_v62, %v4313_v38 }
 0x759   :  { %6806 = vst [vmem:[#allocation8 + $0x298] sm:$0xff] %v6550_v0 }
 0x75a   :  { %v4651_v22 = vpop.f32.mrf.mxu2 }
 0x75c   :  { %v4820_v41 = vpop.f32.mrf.mxu3  ;;  %v4316_v59 = vpop.f32.mrf.mxu0 }
 0x75d   :  { %v4821_v20 = vadd.f32 %v4820_v41, %v4651_v22 }
 0x75e   :  { %v4485_v25 = vpop.f32.mrf.mxu1 }
 0x75f   :  { %v6554_v31 = vpack.c.bf16 %v4821_v20, %v4483_v3  ;;  %4355 = vmatmul.bf16.gmra.mxu0 %v8227_v56  ;;  %4693 = vmatmul.bf16.gmra.mxu2 %v8227_v56  ;;  %v4486_v44 = vadd.f32 %v4485_v25, %v4316_v59 }
 0x761   :  { %4524 = vmatmul.bf16.gmra.mxu1 %v8229_v5  ;;  %6810 = vst [vmem:[#allocation8 + $0x2b8] sm:$0xff] %v6554_v31  ;;  %4862 = vmatmul.bf16.gmra.mxu3 %v8229_v5 }
 0x762   :  { %v4654_v50 = vpop.f32.mrf.mxu2 }
 0x764   :  { %v4823_v32 = vpop.f32.mrf.mxu3  ;;  %v4318_v33 = vpop.f32.mrf.mxu0 }
 0x765   :  { %v4824_v21 = vadd.f32 %v4823_v32, %v4654_v50 }
 0x766   :  { %v4487_v17 = vpop.f32.mrf.mxu1 }
 0x767   :  { %v6558_v54 = vpack.c.bf16 %v4824_v21, %v4486_v44  ;;  %v4488_v12 = vadd.f32 %v4487_v17, %v4318_v33  ;;  %v8875_v33 = vld [vmem:[#allocation18_spill] sm:$0xff]  ;;  %v8876_v21 = vld [vmem:[#allocation19_spill] sm:$0xff] }
 0x769   :  { %6814 = vst [vmem:[#allocation8 + $0x2d8] sm:$0xff] %v6558_v54 }
 0x76a   :  { %v4656_v55 = vpop.f32.mrf.mxu2 }
 0x76c   :  { %v4825_v39 = vpop.f32.mrf.mxu3  ;;  %v4321_v4 = vpop.f32.mrf.mxu0 }
 0x76d   :  { %v4826_v49 = vadd.f32 %v4825_v39, %v4656_v55 }
 0x76e   :  { %v4490_v57 = vpop.f32.mrf.mxu1 }
 0x76f   :  { %v6562_v16 = vpack.c.bf16 %v4826_v49, %v4488_v12  ;;  %4360 = vmatmul.bf16.gmra.mxu0 %v8235_v40  ;;  %4698 = vmatmul.bf16.gmra.mxu2 %v8235_v40  ;;  %v4491_v56 = vadd.f32 %v4490_v57, %v4321_v4  ;;  %v8872_v40 = vld [vmem:[#allocation15_spill] sm:$0xff] }
 0x771   :  { %4529 = vmatmul.bf16.gmra.mxu1 %v8237_v52  ;;  %6818 = vst [vmem:[#allocation8 + $0x2f8] sm:$0xff] %v6562_v16  ;;  %4867 = vmatmul.bf16.gmra.mxu3 %v8237_v52 }
 0x772   :  { %v4659_v5 = vpop.f32.mrf.mxu2 }
 0x774   :  { %v4828_v19 = vpop.f32.mrf.mxu3  ;;  %v4323_v37 = vpop.f32.mrf.mxu0 }
 0x775   :  { %v4829_v58 = vadd.f32 %v4828_v19, %v4659_v5 }
 0x776   :  { %v4492_v1 = vpop.f32.mrf.mxu1 }
 0x777   :  { %v6566_v43 = vpack.c.bf16 %v4829_v58, %v4491_v56  ;;  %v4493_v51 = vadd.f32 %v4492_v1, %v4323_v37  ;;  %v8877_v1 = vld [vmem:[#allocation20_spill] sm:$0xff] }
 0x779   :  { %6822 = vst [vmem:[#allocation8 + $0x318] sm:$0xff] %v6566_v43  ;;  %v8878_v43 = vld [vmem:[#allocation21_spill] sm:$0xff] }
 0x77a   :  { %v4661_v47 = vpop.f32.mrf.mxu2 }
 0x77c   :  { %v4830_v14 = vpop.f32.mrf.mxu3  ;;  %v4326_v15 = vpop.f32.mrf.mxu0 }
 0x77d   :  { %v4831_v53 = vadd.f32 %v4830_v14, %v4661_v47 }
 0x77e   :  { %v4495_v8 = vpop.f32.mrf.mxu1 }
 0x77f   :  { %v6570_v28 = vpack.c.bf16 %v4831_v53, %v4493_v51  ;;  %4365 = vmatmul.bf16.gmra.mxu0 %v8871_v35  ;;  %4703 = vmatmul.bf16.gmra.mxu2 %v8871_v35  ;;  %v4496_v52 = vadd.f32 %v4495_v8, %v4326_v15 }
 0x781   :  { %4534 = vmatmul.bf16.gmra.mxu1 %v8872_v40  ;;  %6826 = vst [vmem:[#allocation8 + $0x338] sm:$0xff] %v6570_v28  ;;  %4872 = vmatmul.bf16.gmra.mxu3 %v8872_v40 }
 0x782   :  { %v4664_v26 = vpop.f32.mrf.mxu2 }
 0x784   :  { %v4833_v27 = vpop.f32.mrf.mxu3  ;;  %v4328_v48 = vpop.f32.mrf.mxu0 }
 0x785   :  { %v4834_v60 = vadd.f32 %v4833_v27, %v4664_v26 }
 0x786   :  { %v4497_v42 = vpop.f32.mrf.mxu1 }
 0x787   :  { %v6574_v24 = vpack.c.bf16 %v4834_v60, %v4496_v52  ;;  %v4498_v45 = vadd.f32 %v4497_v42, %v4328_v48  ;;  %v8879_v42 = vld [vmem:[#allocation22_spill] sm:$0xff] }
 0x789   :  { %6830 = vst [vmem:[#allocation8 + $0x358] sm:$0xff] %v6574_v24  ;;  %v8880_v24 = vld [vmem:[#allocation23_spill] sm:$0xff] }
 0x78a   :  { %v4666_v30 = vpop.f32.mrf.mxu2 }
 0x78c   :  { %v4835_v46 = vpop.f32.mrf.mxu3  ;;  %v4331_v11 = vpop.f32.mrf.mxu0 }
 0x78d   :  { %v4836_v23 = vadd.f32 %v4835_v46, %v4666_v30 }
 0x78e   :  { %v4500_v7 = vpop.f32.mrf.mxu1 }
 0x78f   :  { %v6578_v6 = vpack.c.bf16 %v4836_v23, %v4498_v45  ;;  %4370 = vmatmul.bf16.gmra.mxu0 %v8873_v9  ;;  %4708 = vmatmul.bf16.gmra.mxu2 %v8873_v9  ;;  %v4501_v38 = vadd.f32 %v4500_v7, %v4331_v11 }
 0x791   :  { %4539 = vmatmul.bf16.gmra.mxu1 %v8874_v36  ;;  %6834 = vst [vmem:[#allocation8 + $0x378] sm:$0xff] %v6578_v6  ;;  %4877 = vmatmul.bf16.gmra.mxu3 %v8874_v36 }
 0x792   :  { %v4669_v29 = vpop.f32.mrf.mxu2 }
 0x794   :  { %v4838_v62 = vpop.f32.mrf.mxu3  ;;  %v4333_v0 = vpop.f32.mrf.mxu0 }
 0x795   :  { %v4839_v22 = vadd.f32 %v4838_v62, %v4669_v29 }
 0x796   :  { %v4502_v41 = vpop.f32.mrf.mxu1 }
 0x797   :  { %v6582_v59 = vpack.c.bf16 %v4839_v22, %v4501_v38  ;;  %v4503_v31 = vadd.f32 %v4502_v41, %v4333_v0  ;;  %v8881_v41 = vld [vmem:[#allocation24_spill] sm:$0xff] }
 0x799   :  { %6838 = vst [vmem:[#allocation8 + $0x398] sm:$0xff] %v6582_v59  ;;  %v8882_v59 = vld [vmem:[#allocation25_spill] sm:$0xff] }
 0x79a   :  { %v4671_v3 = vpop.f32.mrf.mxu2 }
 0x79c   :  { %v4840_v20 = vpop.f32.mrf.mxu3  ;;  %v4336_v25 = vpop.f32.mrf.mxu0 }
 0x79d   :  { %v4841_v44 = vadd.f32 %v4840_v20, %v4671_v3 }
 0x79e   :  { %v4505_v50 = vpop.f32.mrf.mxu1 }
 0x79f   :  { %v6586_v32 = vpack.c.bf16 %v4841_v44, %v4503_v31  ;;  %4375 = vmatmul.bf16.gmra.mxu0 %v8875_v33  ;;  %4713 = vmatmul.bf16.gmra.mxu2 %v8875_v33  ;;  %v4506_v17 = vadd.f32 %v4505_v50, %v4336_v25 }
 0x7a1   :  { %4544 = vmatmul.bf16.gmra.mxu1 %v8876_v21  ;;  %6842 = vst [vmem:[#allocation8 + $0x3b8] sm:$0xff] %v6586_v32  ;;  %4882 = vmatmul.bf16.gmra.mxu3 %v8876_v21 }
 0x7a2   :  { %v4674_v54 = vpop.f32.mrf.mxu2 }
 0x7a4   :  { %v4843_v55 = vpop.f32.mrf.mxu3  ;;  %v4338_v39 = vpop.f32.mrf.mxu0 }
 0x7a5   :  { %v4844_v4 = vadd.f32 %v4843_v55, %v4674_v54 }
 0x7a6   :  { %v4507_v12 = vpop.f32.mrf.mxu1 }
 0x7a7   :  { %v6590_v49 = vpack.c.bf16 %v4844_v4, %v4506_v17  ;;  %v4508_v5 = vadd.f32 %v4507_v12, %v4338_v39 }
 0x7a9   :  { %6846 = vst [vmem:[#allocation8 + $0x3d8] sm:$0xff] %v6590_v49 }
 0x7aa   :  { %v4676_v57 = vpop.f32.mrf.mxu2 }
 0x7ac   :  { %v4845_v16 = vpop.f32.mrf.mxu3  ;;  %v4341_v56 = vpop.f32.mrf.mxu0 }
 0x7ad   :  { %v4846_v19 = vadd.f32 %v4845_v16, %v4676_v57 }
 0x7ae   :  { %v4510_v37 = vpop.f32.mrf.mxu1 }
 0x7af   :  { %v6594_v58 = vpack.c.bf16 %v4846_v19, %v4508_v5  ;;  %4380 = vmatmul.bf16.gmra.mxu0 %v8877_v1  ;;  %4718 = vmatmul.bf16.gmra.mxu2 %v8877_v1  ;;  %v4511_v47 = vadd.f32 %v4510_v37, %v4341_v56 }
 0x7b1   :  { %4549 = vmatmul.bf16.gmra.mxu1 %v8878_v43  ;;  %6850 = vst [vmem:[#allocation8 + $0x3f8] sm:$0xff] %v6594_v58  ;;  %4887 = vmatmul.bf16.gmra.mxu3 %v8878_v43 }
 0x7b2   :  { %v4679_v14 = vpop.f32.mrf.mxu2 }
 0x7b4   :  { %v4848_v15 = vpop.f32.mrf.mxu3  ;;  %v4343_v51 = vpop.f32.mrf.mxu0 }
 0x7b5   :  { %v4849_v53 = vadd.f32 %v4848_v15, %v4679_v14 }
 0x7b6   :  { %v4512_v8 = vpop.f32.mrf.mxu1 }
 0x7b7   :  { %v6598_v28 = vpack.c.bf16 %v4849_v53, %v4511_v47  ;;  %v4513_v26 = vadd.f32 %v4512_v8, %v4343_v51  ;;  %v8883_v51 = vld [vmem:[#allocation28_spill] sm:$0xff] }
 0x7b9   :  { %6854 = vst [vmem:[#allocation8 + $0x418] sm:$0xff] %v6598_v28 }
 0x7ba   :  { %v4681_v35 = vpop.f32.mrf.mxu2 }
 0x7bc   :  { %v4850_v40 = vpop.f32.mrf.mxu3  ;;  %v4346_v52 = vpop.f32.mrf.mxu0 }
 0x7bd   :  { %v4851_v27 = vadd.f32 %v4850_v40, %v4681_v35 }
 0x7be   :  { %v4515_v48 = vpop.f32.mrf.mxu1 }
 0x7bf   :  { %v6602_v60 = vpack.c.bf16 %v4851_v27, %v4513_v26  ;;  %4385 = vmatmul.bf16.gmra.mxu0 %v8879_v42  ;;  %4723 = vmatmul.bf16.gmra.mxu2 %v8879_v42  ;;  %v4516_v30 = vadd.f32 %v4515_v48, %v4346_v52 }
 0x7c1   :  { %4554 = vmatmul.bf16.gmra.mxu1 %v8880_v24  ;;  %6858 = vst [vmem:[#allocation8 + $0x438] sm:$0xff] %v6602_v60  ;;  %4892 = vmatmul.bf16.gmra.mxu3 %v8880_v24 }
 0x7c2   :  { %v4684_v46 = vpop.f32.mrf.mxu2 }
 0x7c4   :  { %v4853_v11 = vpop.f32.mrf.mxu3  ;;  %v4348_v45 = vpop.f32.mrf.mxu0 }
 0x7c5   :  { %v4854_v23 = vadd.f32 %v4853_v11, %v4684_v46  ;;  %v8885_v46 = vld [vmem:[#allocation31_spill] sm:$0xff] }
 0x7c6   :  { %v4517_v7 = vpop.f32.mrf.mxu1 }
 0x7c7   :  { %v6606_v6 = vpack.c.bf16 %v4854_v23, %v4516_v30  ;;  %v4518_v29 = vadd.f32 %v4517_v7, %v4348_v45 }
 0x7c9   :  { %6862 = vst [vmem:[#allocation8 + $0x458] sm:$0xff] %v6606_v6 }
 0x7ca   :  { %v4686_v9 = vpop.f32.mrf.mxu2 }
 0x7cc   :  { %v4855_v36 = vpop.f32.mrf.mxu3  ;;  %v4351_v38 = vpop.f32.mrf.mxu0 }
 0x7cd   :  { %v4856_v62 = vadd.f32 %v4855_v36, %v4686_v9 }
 0x7ce   :  { %v4520_v0 = vpop.f32.mrf.mxu1 }
 0x7cf   :  { %v6610_v22 = vpack.c.bf16 %v4856_v62, %v4518_v29  ;;  %4390 = vmatmul.bf16.gmra.mxu0 %v8881_v41  ;;  %4728 = vmatmul.bf16.gmra.mxu2 %v8881_v41  ;;  %v4521_v3 = vadd.f32 %v4520_v0, %v4351_v38 }
 0x7d1   :  { %4559 = vmatmul.bf16.gmra.mxu1 %v8882_v59  ;;  %6866 = vst [vmem:[#allocation8 + $0x478] sm:$0xff] %v6610_v22  ;;  %4897 = vmatmul.bf16.gmra.mxu3 %v8882_v59 }
 0x7d2   :  { %v4689_v20 = vpop.f32.mrf.mxu2 }
 0x7d4   :  { %v4858_v25 = vpop.f32.mrf.mxu3  ;;  %v4353_v31 = vpop.f32.mrf.mxu0 }
 0x7d5   :  { %v4859_v44 = vadd.f32 %v4858_v25, %v4689_v20 }
 0x7d6   :  { %v4522_v50 = vpop.f32.mrf.mxu1 }
 0x7d7   :  { %v6614_v32 = vpack.c.bf16 %v4859_v44, %v4521_v3  ;;  %v4523_v54 = vadd.f32 %v4522_v50, %v4353_v31 }
 0x7d9   :  { %6870 = vst [vmem:[#allocation8 + $0x498] sm:$0xff] %v6614_v32 }
 0x7da   :  { %v4691_v33 = vpop.f32.mrf.mxu2 }
 0x7dc   :  { %v4860_v21 = vpop.f32.mrf.mxu3  ;;  %v4356_v17 = vpop.f32.mrf.mxu0 }
 0x7dd   :  { %v4861_v55 = vadd.f32 %v4860_v21, %v4691_v33 }
 0x7de   :  { %v4525_v39 = vpop.f32.mrf.mxu1 }
 0x7df   :  { %v6618_v4 = vpack.c.bf16 %v4861_v55, %v4523_v54  ;;  %4395 = vmatmul.bf16.gmra.mxu0 %v8861_v2  ;;  %4733 = vmatmul.bf16.gmra.mxu2 %v8861_v2  ;;  %v4526_v12 = vadd.f32 %v4525_v39, %v4356_v17  ;;  %v8884_v2 = vld [vmem:[#allocation29_spill] sm:$0xff] }
 0x7e1   :  { %4564 = vmatmul.bf16.gmra.mxu1 %v8862_v10  ;;  %6874 = vst [vmem:[#allocation8 + $0x4b8] sm:$0xff] %v6618_v4  ;;  %4902 = vmatmul.bf16.gmra.mxu3 %v8862_v10 }
 0x7e2   :  { %v4694_v49 = vpop.f32.mrf.mxu2 }
 0x7e4   :  { %v4863_v57 = vpop.f32.mrf.mxu3  ;;  %v4358_v16 = vpop.f32.mrf.mxu0 }
 0x7e5   :  { %v4864_v56 = vadd.f32 %v4863_v57, %v4694_v49 }
 0x7e6   :  { %v4527_v5 = vpop.f32.mrf.mxu1 }
 0x7e7   :  { %v6622_v19 = vpack.c.bf16 %v4864_v56, %v4526_v12  ;;  %v4528_v43 = vadd.f32 %v4527_v5, %v4358_v16 }
 0x7e9   :  { %6878 = vst [vmem:[#allocation8 + $0x4d8] sm:$0xff] %v6622_v19 }
 0x7ea   :  { %v4696_v37 = vpop.f32.mrf.mxu2 }
 0x7ec   :  { %v4865_v58 = vpop.f32.mrf.mxu3  ;;  %v4361_v1 = vpop.f32.mrf.mxu0 }
 0x7ed   :  { %v4866_v47 = vadd.f32 %v4865_v58, %v4696_v37 }
 0x7ee   :  { %v4530_v14 = vpop.f32.mrf.mxu1 }
 0x7ef   :  { %v6626_v15 = vpack.c.bf16 %v4866_v47, %v4528_v43  ;;  %4400 = vmatmul.bf16.gmra.mxu0 %v8883_v51  ;;  %4738 = vmatmul.bf16.gmra.mxu2 %v8883_v51  ;;  %v4531_v10 = vadd.f32 %v4530_v14, %v4361_v1 }
 0x7f1   :  { %4569 = vmatmul.bf16.gmra.mxu1 %v8884_v2  ;;  %6882 = vst [vmem:[#allocation8 + $0x4f8] sm:$0xff] %v6626_v15  ;;  %4907 = vmatmul.bf16.gmra.mxu3 %v8884_v2 }
 0x7f2   :  { %v4699_v53 = vpop.f32.mrf.mxu2 }
 0x7f4   :  { %v4868_v8 = vpop.f32.mrf.mxu3  ;;  %v4363_v28 = vpop.f32.mrf.mxu0 }
 0x7f5   :  { %v4869_v35 = vadd.f32 %v4868_v8, %v4699_v53 }
 0x7f6   :  { %v4532_v40 = vpop.f32.mrf.mxu1 }
 0x7f7   :  { %v6630_v52 = vpack.c.bf16 %v4869_v35, %v4531_v10  ;;  %v4533_v60 = vadd.f32 %v4532_v40, %v4363_v28 }
 0x7f9   :  { %6886 = vst [vmem:[#allocation8 + $0x518] sm:$0xff] %v6630_v52 }
 0x7fa   :  { %v4701_v26 = vpop.f32.mrf.mxu2 }
 0x7fc   :  { %v4870_v27 = vpop.f32.mrf.mxu3  ;;  %v4366_v48 = vpop.f32.mrf.mxu0 }
 0x7fd   :  { %v4871_v42 = vadd.f32 %v4870_v27, %v4701_v26 }
 0x7fe   :  { %v4535_v24 = vpop.f32.mrf.mxu1 }
 0x7ff   :  { %v6634_v30 = vpack.c.bf16 %v4871_v42, %v4533_v60  ;;  %4405 = vmatmul.bf16.gmra.mxu0 %v8865_v61  ;;  %4743 = vmatmul.bf16.gmra.mxu2 %v8865_v61  ;;  %v4536_v11 = vadd.f32 %v4535_v24, %v4366_v48 }
 0x801   :  { %4574 = vmatmul.bf16.gmra.mxu1 %v8885_v46  ;;  %6890 = vst [vmem:[#allocation8 + $0x538] sm:$0xff] %v6634_v30  ;;  %4912 = vmatmul.bf16.gmra.mxu3 %v8885_v46 }
 0x802   :  { %v4704_v45 = vpop.f32.mrf.mxu2 }
 0x804   :  { %v4873_v23 = vpop.f32.mrf.mxu3  ;;  %v4368_v7 = vpop.f32.mrf.mxu0 }
 0x805   :  { %v4874_v6 = vadd.f32 %v4873_v23, %v4704_v45 }
 0x806   :  { %v4537_v9 = vpop.f32.mrf.mxu1 }
 0x807   :  { %v6638_v36 = vpack.c.bf16 %v4874_v6, %v4536_v11  ;;  %v4538_v0 = vadd.f32 %v4537_v9, %v4368_v7 }
 0x809   :  { %6894 = vst [vmem:[#allocation8 + $0x558] sm:$0xff] %v6638_v36 }
 0x80a   :  { %v4706_v38 = vpop.f32.mrf.mxu2 }
 0x80c   :  { %v4875_v29 = vpop.f32.mrf.mxu3  ;;  %v4371_v62 = vpop.f32.mrf.mxu0 }
 0x80d   :  { %v4876_v22 = vadd.f32 %v4875_v29, %v4706_v38 }
 0x80e   :  { %v4540_v41 = vpop.f32.mrf.mxu1 }
 0x80f   :  { %v6642_v59 = vpack.c.bf16 %v4876_v22, %v4538_v0  ;;  %4410 = vmatmul.bf16.gmra.mxu0 %v8867_v34  ;;  %4748 = vmatmul.bf16.gmra.mxu2 %v8867_v34  ;;  %v4541_v61 = vadd.f32 %v4540_v41, %v4371_v62 }
 0x811   :  { %4579 = vmatmul.bf16.gmra.mxu1 %v8868_v13  ;;  %6898 = vst [vmem:[#allocation8 + $0x578] sm:$0xff] %v6642_v59  ;;  %4917 = vmatmul.bf16.gmra.mxu3 %v8868_v13 }
 0x812   :  { %v4709_v3 = vpop.f32.mrf.mxu2 }
 0x814   :  { %v4878_v20 = vpop.f32.mrf.mxu3  ;;  %v4373_v25 = vpop.f32.mrf.mxu0 }
 0x815   :  { %v4879_v31 = vadd.f32 %v4878_v20, %v4709_v3 }
 0x816   :  { %v4542_v44 = vpop.f32.mrf.mxu1 }
 0x817   :  { %v6646_v50 = vpack.c.bf16 %v4879_v31, %v4541_v61  ;;  %v4543_v17 = vadd.f32 %v4542_v44, %v4373_v25 }
 0x819   :  { %6902 = vst [vmem:[#allocation8 + $0x598] sm:$0xff] %v6646_v50 }
 0x81a   :  { %v4711_v32 = vpop.f32.mrf.mxu2 }
 0x81c   :  { %v4880_v33 = vpop.f32.mrf.mxu3  ;;  %v4376_v21 = vpop.f32.mrf.mxu0 }
 0x81d   :  { %v4881_v54 = vadd.f32 %v4880_v33, %v4711_v32 }
 0x81e   :  { %v4545_v55 = vpop.f32.mrf.mxu1 }
 0x81f   :  { %v6650_v39 = vpack.c.bf16 %v4881_v54, %v4543_v17  ;;  %4415 = vmatmul.bf16.gmra.mxu0 %v8323_v18  ;;  %4753 = vmatmul.bf16.gmra.mxu2 %v8323_v18  ;;  %v4546_v34 = vadd.f32 %v4545_v55, %v4376_v21 }
 0x821   :  { %4584 = vmatmul.bf16.gmra.mxu1 %v8325_v63  ;;  %6906 = vst [vmem:[#allocation8 + $0x5b8] sm:$0xff] %v6650_v39  ;;  %4922 = vmatmul.bf16.gmra.mxu3 %v8325_v63 }
 0x822   :  { %v4714_v13 = vpop.f32.mrf.mxu2 }
 0x824   :  { %v4883_v4 = vpop.f32.mrf.mxu3  ;;  %v4378_v12 = vpop.f32.mrf.mxu0 }
 0x825   :  { %v4884_v49 = vadd.f32 %v4883_v4, %v4714_v13 }
 0x826   :  { %v4547_v57 = vpop.f32.mrf.mxu1 }
 0x827   :  { %v6654_v16 = vpack.c.bf16 %v4884_v49, %v4546_v34  ;;  %v4548_v37 = vadd.f32 %v4547_v57, %v4378_v12 }
 0x829   :  { %6910 = vst [vmem:[#allocation8 + $0x5d8] sm:$0xff] %v6654_v16 }
 0x82a   :  { %v4716_v56 = vpop.f32.mrf.mxu2 }
 0x82c   :  { %v4885_v5 = vpop.f32.mrf.mxu3  ;;  %v4381_v19 = vpop.f32.mrf.mxu0 }
 0x82d   :  { %v4886_v58 = vadd.f32 %v4885_v5, %v4716_v56 }
 0x82e   :  { %v4550_v1 = vpop.f32.mrf.mxu1 }
 0x82f   :  { %v6658_v43 = vpack.c.bf16 %v4886_v58, %v4548_v37  ;;  %v4551_v18 = vadd.f32 %v4550_v1, %v4381_v19 }
 0x831   :  { %6914 = vst [vmem:[#allocation8 + $0x5f8] sm:$0xff] %v6658_v43 }
 0x832   :  { %v4719_v47 = vpop.f32.mrf.mxu2 }
 0x834   :  { %v4888_v14 = vpop.f32.mrf.mxu3  ;;  %v4383_v63 = vpop.f32.mrf.mxu0 }
 0x835   :  { %v4889_v15 = vadd.f32 %v4888_v14, %v4719_v47 }
 0x836   :  { %v4552_v51 = vpop.f32.mrf.mxu1 }
 0x837   :  { %v6662_v2 = vpack.c.bf16 %v4889_v15, %v4551_v18  ;;  %v4553_v28 = vadd.f32 %v4552_v51, %v4383_v63 }
 0x839   :  { %6918 = vst [vmem:[#allocation8 + $0x618] sm:$0xff] %v6662_v2 }
 0x83a   :  { %v4721_v10 = vpop.f32.mrf.mxu2 }
 0x83c   :  { %v4890_v53 = vpop.f32.mrf.mxu3  ;;  %v4386_v8 = vpop.f32.mrf.mxu0 }
 0x83d   :  { %v4891_v35 = vadd.f32 %v4890_v53, %v4721_v10 }
 0x83e   :  { %v4555_v40 = vpop.f32.mrf.mxu1 }
 0x83f   :  { %v6666_v52 = vpack.c.bf16 %v4891_v35, %v4553_v28  ;;  %v4556_v26 = vadd.f32 %v4555_v40, %v4386_v8 }
 0x841   :  { %6922 = vst [vmem:[#allocation8 + $0x638] sm:$0xff] %v6666_v52 }
 0x842   :  { %v4724_v27 = vpop.f32.mrf.mxu2 }
 0x844   :  { %v4893_v48 = vpop.f32.mrf.mxu3  ;;  %v4388_v60 = vpop.f32.mrf.mxu0 }
 0x845   :  { %v4894_v42 = vadd.f32 %v4893_v48, %v4724_v27 }
 0x846   :  { %v4557_v24 = vpop.f32.mrf.mxu1 }
 0x847   :  { %v6670_v30 = vpack.c.bf16 %v4894_v42, %v4556_v26  ;;  %v4558_v23 = vadd.f32 %v4557_v24, %v4388_v60 }
 0x849   :  { %6926 = vst [vmem:[#allocation8 + $0x658] sm:$0xff] %v6670_v30 }
 0x84a   :  { %v4726_v46 = vpop.f32.mrf.mxu2 }
 0x84c   :  { %v4895_v11 = vpop.f32.mrf.mxu3  ;;  %v4391_v45 = vpop.f32.mrf.mxu0 }
 0x84d   :  { %v4896_v7 = vadd.f32 %v4895_v11, %v4726_v46 }
 0x84e   :  { %v4560_v6 = vpop.f32.mrf.mxu1 }
 0x84f   :  { %v6674_v9 = vpack.c.bf16 %v4896_v7, %v4558_v23  ;;  %v4561_v36 = vadd.f32 %v4560_v6, %v4391_v45 }
 0x851   :  { %6930 = vst [vmem:[#allocation8 + $0x678] sm:$0xff] %v6674_v9 }
 0x852   :  { %v4729_v38 = vpop.f32.mrf.mxu2 }
 0x854   :  { %v4898_v29 = vpop.f32.mrf.mxu3  ;;  %v4393_v62 = vpop.f32.mrf.mxu0 }
 0x855   :  { %v4899_v0 = vadd.f32 %v4898_v29, %v4729_v38 }
 0x856   :  { %v4562_v22 = vpop.f32.mrf.mxu1 }
 0x857   :  { %v6678_v41 = vpack.c.bf16 %v4899_v0, %v4561_v36  ;;  %v4563_v20 = vadd.f32 %v4562_v22, %v4393_v62 }
 0x859   :  { %6934 = vst [vmem:[#allocation8 + $0x698] sm:$0xff] %v6678_v41 }
 0x85a   :  { %v4731_v59 = vpop.f32.mrf.mxu2 }
 0x85c   :  { %v4900_v61 = vpop.f32.mrf.mxu3  ;;  %v4396_v3 = vpop.f32.mrf.mxu0 }
 0x85d   :  { %v4901_v25 = vadd.f32 %v4900_v61, %v4731_v59 }
 0x85e   :  { %v4565_v31 = vpop.f32.mrf.mxu1 }
 0x85f   :  { %v6682_v44 = vpack.c.bf16 %v4901_v25, %v4563_v20  ;;  %v4566_v50 = vadd.f32 %v4565_v31, %v4396_v3 }
 0x861   :  { %6938 = vst [vmem:[#allocation8 + $0x6b8] sm:$0xff] %v6682_v44 }
 0x862   :  { %v4734_v32 = vpop.f32.mrf.mxu2 }
 0x864   :  { %v4903_v33 = vpop.f32.mrf.mxu3  ;;  %v4398_v21 = vpop.f32.mrf.mxu0 }
 0x865   :  { %v4904_v17 = vadd.f32 %v4903_v33, %v4734_v32 }
 0x866   :  { %v4567_v54 = vpop.f32.mrf.mxu1 }
 0x867   :  { %v6686_v55 = vpack.c.bf16 %v4904_v17, %v4566_v50  ;;  %v4568_v4 = vadd.f32 %v4567_v54, %v4398_v21 }
 0x869   :  { %6942 = vst [vmem:[#allocation8 + $0x6d8] sm:$0xff] %v6686_v55 }
 0x86a   :  { %v4736_v39 = vpop.f32.mrf.mxu2 }
 0x86c   :  { %v4905_v34 = vpop.f32.mrf.mxu3  ;;  %v4401_v13 = vpop.f32.mrf.mxu0 }
 0x86d   :  { %v4906_v12 = vadd.f32 %v4905_v34, %v4736_v39 }
 0x86e   :  { %v4570_v49 = vpop.f32.mrf.mxu1 }
 0x86f   :  { %v6690_v57 = vpack.c.bf16 %v4906_v12, %v4568_v4  ;;  %v4571_v16 = vadd.f32 %v4570_v49, %v4401_v13 }
 0x871   :  { %6946 = vst [vmem:[#allocation8 + $0x6f8] sm:$0xff] %v6690_v57 }
 0x872   :  { %v4739_v56 = vpop.f32.mrf.mxu2 }
 0x874   :  { %v4908_v5 = vpop.f32.mrf.mxu3  ;;  %v4403_v19 = vpop.f32.mrf.mxu0 }
 0x875   :  { %v4909_v37 = vadd.f32 %v4908_v5, %v4739_v56 }
 0x876   :  { %v4572_v58 = vpop.f32.mrf.mxu1 }
 0x877   :  { %v6694_v1 = vpack.c.bf16 %v4909_v37, %v4571_v16  ;;  %v4573_v14 = vadd.f32 %v4572_v58, %v4403_v19 }
 0x879   :  { %6950 = vst [vmem:[#allocation8 + $0x718] sm:$0xff] %v6694_v1 }
 0x87a   :  { %v4741_v43 = vpop.f32.mrf.mxu2 }
 0x87c   :  { %v4910_v18 = vpop.f32.mrf.mxu3  ;;  %v4406_v47 = vpop.f32.mrf.mxu0 }
 0x87d   :  { %v4911_v63 = vadd.f32 %v4910_v18, %v4741_v43 }
 0x87e   :  { %v4575_v15 = vpop.f32.mrf.mxu1 }
 0x87f   :  { %v6698_v51 = vpack.c.bf16 %v4911_v63, %v4573_v14  ;;  %v4576_v2 = vadd.f32 %v4575_v15, %v4406_v47 }
 0x881   :  { %6954 = vst [vmem:[#allocation8 + $0x738] sm:$0xff] %v6698_v51 }
 0x882   :  { %v4744_v10 = vpop.f32.mrf.mxu2 }
 0x884   :  { %v4913_v53 = vpop.f32.mrf.mxu3  ;;  %v4408_v8 = vpop.f32.mrf.mxu0 }
 0x885   :  { %v4914_v28 = vadd.f32 %v4913_v53, %v4744_v10 }
 0x886   :  { %v4577_v35 = vpop.f32.mrf.mxu1 }
 0x887   :  { %v6702_v40 = vpack.c.bf16 %v4914_v28, %v4576_v2  ;;  %v4578_v48 = vadd.f32 %v4577_v35, %v4408_v8 }
 0x889   :  { %6958 = vst [vmem:[#allocation8 + $0x758] sm:$0xff] %v6702_v40 }
 0x88a   :  { %v4746_v52 = vpop.f32.mrf.mxu2 }
 0x88c   :  { %v4915_v26 = vpop.f32.mrf.mxu3  ;;  %v4411_v27 = vpop.f32.mrf.mxu0 }
 0x88d   :  { %v4916_v60 = vadd.f32 %v4915_v26, %v4746_v52 }
 0x88e   :  { %v4580_v42 = vpop.f32.mrf.mxu1 }
 0x88f   :  { %v6706_v24 = vpack.c.bf16 %v4916_v60, %v4578_v48  ;;  %v4581_v30 = vadd.f32 %v4580_v42, %v4411_v27 }
 0x891   :  { %6962 = vst [vmem:[#allocation8 + $0x778] sm:$0xff] %v6706_v24 }
 0x892   :  { %v4749_v46 = vpop.f32.mrf.mxu2 }
 0x894   :  { %v4918_v11 = vpop.f32.mrf.mxu3  ;;  %v4413_v23 = vpop.f32.mrf.mxu0 }
 0x895   :  { %v4919_v45 = vadd.f32 %v4918_v11, %v4749_v46 }
 0x896   :  { %v4582_v7 = vpop.f32.mrf.mxu1 }
 0x897   :  { %v6710_v6 = vpack.c.bf16 %v4919_v45, %v4581_v30  ;;  %v4583_v38 = vadd.f32 %v4582_v7, %v4413_v23 }
 0x899   :  { %6966 = vst [vmem:[#allocation8 + $0x798] sm:$0xff] %v6710_v6 }
 0x89a   :  { %v4751_v9 = vpop.f32.mrf.mxu2 }
 0x89c   :  { %v4920_v36 = vpop.f32.mrf.mxu3  ;;  %v4416_v0 = vpop.f32.mrf.mxu0 }
 0x89d   :  { %v4921_v29 = vadd.f32 %v4920_v36, %v4751_v9 }
 0x89e   :  { %v4585_v22 = vpop.f32.mrf.mxu1 }
 0x89f   :  { %v6714_v62 = vpack.c.bf16 %v4921_v29, %v4583_v38  ;;  %v4586_v41 = vadd.f32 %v4585_v22, %v4416_v0 }
 0x8a1   :  { %6970 = vst [vmem:[#allocation8 + $0x7b8] sm:$0xff] %v6714_v62 }
 0x8a2   :  { %v4754_v59 = vpop.f32.mrf.mxu2 }
 0x8a4   :  { %v4923_v61 = vpop.f32.mrf.mxu3  ;;  %v4418_v25 = vpop.f32.mrf.mxu0 }
 0x8a5   :  { %v4924_v3 = vadd.f32 %v4923_v61, %v4754_v59 }
 0x8a6   :  { %v4587_v31 = vpop.f32.mrf.mxu1 }
 0x8a7   :  { %v6718_v20 = vpack.c.bf16 %v4924_v3, %v4586_v41  ;;  %v4588_v32 = vadd.f32 %v4587_v31, %v4418_v25 }
 0x8a9   :  { %6974 = vst [vmem:[#allocation8 + $0x7d8] sm:$0xff] %v6718_v20 }
 0x8aa   :  { %v4756_v44 = vpop.f32.mrf.mxu2 }
 0x8ac   :  { %v4925_v50 = vpop.f32.mrf.mxu3 }
 0x8ad   :  { %v4926_v33 = vadd.f32 %v4925_v50, %v4756_v44 }
 0x8af   :  { %v6722_v21 = vpack.c.bf16 %v4926_v33, %v4588_v32 }
 0x8b1   :  { %6978 = vst [vmem:[#allocation8 + $0x7f8] sm:$0xff] %v6722_v21 }
 0x8b2   :  { %6991 = dma.vmem_to_hbm [thread:$0]  %s6984_s1, 32768, %s6986_s25, [#allocation5], %s8048_s21, %s8048_s21, %s8049_s22  }
 0x8b3   :  { %8042 = dma.done.wait [#allocation5], 32768  }
 0x8b4   :  { %8043 = vsyncadd [#allocation5], 4294934528 }
 0x8b5   :  { %6996 = vsyncpa [#allocation4], 1 }
 0x8b6   :  { %6997 = vsyncpa [#allocation7], 1 }
 0x8b7   :  { %6998 = vsyncpa [#allocation5], 1 }

</bundles_post_ra>
